<compile_context>
chip_gen: v7x
topology: tpu7x:2x2x1
jax: 0.10.0
libtpu: 0.0.40
codegen_flags: <defaults>
</compile_context>

<pallas_src>
import functools
import math

import jax
import jax.numpy as jnp
from jax import lax
from jax.experimental import pallas as pl
from jax.experimental.pallas import tpu as pltpu

BN_EPS = 1e-5
_INV_SQRT2 = 1.0 / math.sqrt(2.0)
_VMEM_LIMIT = 32 * 1024 * 1024


# ---------------------------------------------------------------------------
# In-kernel helpers.
# ---------------------------------------------------------------------------
def _gelu_exact(y):
    # nn.GELU() default (erf formulation).
    return 0.5 * y * (1.0 + lax.erf(y * _INV_SQRT2))


def _bn_gelu(x, ss):
    # x: (rows, C) f32;  ss: (2, C) f32 with row 0 = scale, row 1 = shift.
    return _gelu_exact(x * ss[0:1, :] + ss[1:2, :])


def _partial_stats(x):
    # x: (rows, C) f32 -> (2, C) = [sum; sum of squares]
    s = jnp.sum(x, axis=0, keepdims=True)
    q = jnp.sum(x * x, axis=0, keepdims=True)
    return jnp.concatenate([s, q], axis=0)


def _conv1_halves(phases, w1_ref, h1, w2sp, cin):
    """Conv(Cin->C1, 3x3, stride 2, pad 1) from the 8 host phase tensors.

    Returns two (H1*W2, C1) f32 accumulators: conv1 output for even (s=0)
    and odd (s=1) output columns, rows in (ho, b) row-major order,
    where H1 = H//2 and W2 = W//4.
    """
    halves = []
    for s in (0, 1):
        acc = None
        for kh in range(3):
            for kw in range(3):
                rp, dh = kh % 2, kh // 2
                cidx = 2 * s + kw
                cq, dw = cidx % 4, cidx // 4
                p = phases[rp * 4 + cq]                      # (1, H1+1, W2+1, Cin)
                tap = p[0, dh:dh + h1, dw:dw + w2sp, :]      # (H1, W2, Cin)
                tap = tap.reshape(h1 * w2sp, cin)
                part = jnp.dot(tap, w1_ref[kh * 3 + kw],
                               preferred_element_type=jnp.float32)
                acc = part if acc is None else acc + part
        halves.append(acc)
    return halves


def _conv2_accumulate(y0, y1, w2_ref, acc_ref, h2, w2sp, c1, c2):
    """Conv(C1->C2, 3x3, stride 2, pad 1) on the VMEM-resident activations.

    y0 / y1: (H1*W2, C1) post-GELU conv1 activations for even / odd output
    columns.  "Matmul then shift": each of the 4 row/col-parity pieces is
    flattened once, matmul'ed against the tap weights, and the result lands
    in an offset slice of the (H2, W2, C2) f32 scratch accumulator -- the
    unwritten first row/column is the conv2 zero halo.
    """
    def split_rows(y):
        y = y.reshape(h2, 2, w2sp, c1)       # leading-dim split only (free)
        return y[:, 0], y[:, 1]              # even rows, odd rows: (H2, W2, C1)

    ye0, yo0 = split_rows(y0)
    ye1, yo1 = split_rows(y1)
    flat = {key: v.reshape(h2 * w2sp, c1)
            for key, v in (((0, 0), ye0), ((0, 1), ye1),
                           ((1, 0), yo0), ((1, 1), yo1))}

    acc_ref[...] = jnp.zeros_like(acc_ref)
    for kh in range(3):
        rpar = 0 if kh == 1 else 1           # parity of the y1 row being read
        for kw in range(3):
            cpar = 0 if kw == 1 else 1       # parity of the y1 col being read
            part = jnp.dot(flat[(rpar, cpar)], w2_ref[kh * 3 + kw],
                           preferred_element_type=jnp.float32)
            part = part.reshape(h2, w2sp, c2)
            if kh == 0 and kw == 0:
                acc_ref[1:, 1:, :] += part[:h2 - 1, :w2sp - 1, :]
            elif kh == 0:
                acc_ref[1:, :, :] += part[:h2 - 1, :, :]
            elif kw == 0:
                acc_ref[:, 1:, :] += part[:, :w2sp - 1, :]
            else:
                acc_ref[...] += part


def _make_kernel(stage, h1, w2sp, cin, c1, c2, cdtype):
    """stage 1: conv1 -> stats;  2: +BN1+GELU+conv2 -> stats;  3: full output."""
    h2 = h1 // 2
    m2 = h2 * w2sp

    def kernel(*refs):
        phases, w1_ref = refs[:8], refs[8]
        a0, a1 = _conv1_halves(phases, w1_ref, h1, w2sp, cin)

        if stage == 1:
            out_ref = refs[9]
            out_ref[0] = _partial_stats(a0) + _partial_stats(a1)
            return

        ss1_ref, w2_ref = refs[9], refs[10]
        ss1 = ss1_ref[...]
        # Folded BN1 (scale/shift) + exact GELU in f32, then back to the MXU
        # operand dtype for the second conv.
        y0 = _bn_gelu(a0, ss1).astype(cdtype)
        y1 = _bn_gelu(a1, ss1).astype(cdtype)

        if stage == 2:
            out_ref, acc_ref = refs[11], refs[12]
        else:
            ss2_ref, out_ref, acc_ref = refs[11], refs[12], refs[13]

        _conv2_accumulate(y0, y1, w2_ref, acc_ref, h2, w2sp, c1, c2)
        acc2 = acc_ref[...].reshape(m2, c2)

        if stage == 2:
            out_ref[0] = _partial_stats(acc2)
        else:
            out_ref[0] = _bn_gelu(acc2, ss2_ref[...]).astype(out_ref.dtype)

    return kernel


# ---------------------------------------------------------------------------
# XLA-side glue: BN fold (a few hundred FLOPs) between sweeps.
# ---------------------------------------------------------------------------
def _fold_bn(partials, gamma, beta, count):
    """(B, 2, C) per-image [sum; sumsq] -> (2, C) [scale; shift] (f32)."""
    s = jnp.sum(partials[:, 0, :], axis=0)
    q = jnp.sum(partials[:, 1, :], axis=0)
    inv = 1.0 / float(count)
    mean = s * inv
    var = jnp.maximum(q * inv - mean * mean, 0.0)    # clamp: one-pass variance
    scale = gamma * lax.rsqrt(var + BN_EPS)
    shift = beta - mean * scale
    return jnp.stack([scale, shift], axis=0).astype(jnp.float32)


# ---------------------------------------------------------------------------
# SVTRPatchEmbed forward.
# ---------------------------------------------------------------------------
def svtr_patch_embed(x_nchw, params, *, compute_dtype=jnp.bfloat16):
    """x: (B, Cin, H, W) float32 with H % 4 == W % 4 == 0.

    params = ((w1, b1, g1, be1), (w2, b2, g2, be2)) in PyTorch layouts.
    Conv biases are accepted but unused (cancelled by training-mode BN).
    Returns (B, (H//4)*(W//4), output_dim) float32.
    """
    (w1, _b1, g1, be1), (w2, _b2, g2, be2) = params
    batch, cin, h, w = x_nchw.shape
    assert h % 4 == 0 and w % 4 == 0, "phase-split conv assumes H, W % 4 == 0"
    c1, c2 = w1.shape[0], w2.shape[0]
    assert w2.shape[1] == c1
    h1, w1sp = h // 2, w // 2          # conv1 output spatial
    h2, w2sp = h // 4, w // 4          # conv2 output spatial
    m2 = h2 * w2sp

    # ---- host-side layout prep (one cheap pass over the input) -------------
    x_nhwc = jnp.transpose(x_nchw, (0, 2, 3, 1))
    xpad = jnp.pad(x_nhwc, ((0, 0), (1, 1), (1, 3), (0, 0)))
    # Phase (rp, cq): padded rows == rp (mod 2), padded cols == cq (mod 4).
    phases = [xpad[:, rp::2, cq::4, :].astype(compute_dtype)
              for rp in (0, 1) for cq in (0, 1, 2, 3)]
    # (Cout, Cin, 3, 3) OIHW -> (9, Cin, Cout), tap index = kh*3 + kw.
    w1_t = jnp.transpose(w1, (2, 3, 1, 0)).reshape(9, cin, c1).astype(compute_dtype)
    w2_t = jnp.transpose(w2, (2, 3, 1, 0)).reshape(9, c1, c2).astype(compute_dtype)

    # ---- specs ---------------------------------------------------------------
    phase_spec = pl.BlockSpec((1, h1 + 1, w2sp + 1, cin), lambda b: (b, 0, 0, 0))
    w1_spec = pl.BlockSpec((9, cin, c1), lambda b: (0, 0, 0))
    w2_spec = pl.BlockSpec((9, c1, c2), lambda b: (0, 0, 0))
    ss1_spec = pl.BlockSpec((2, c1), lambda b: (0, 0))
    ss2_spec = pl.BlockSpec((2, c2), lambda b: (0, 0))
    cparams = pltpu.CompilerParams(dimension_semantics=("parallel",),
                                   vmem_limit_bytes=_VMEM_LIMIT)
    acc_scratch = pltpu.VMEM((h2, w2sp, c2), jnp.float32)

    isz = jnp.dtype(compute_dtype).itemsize
    phase_bytes = sum(p.size for p in phases) * isz
    w_bytes = (w1_t.size + w2_t.size) * isz
    flops1 = 2 * batch * h1 * w1sp * 9 * cin * c1
    flops2 = 2 * batch * m2 * 9 * c1 * c2

    # ---- sweep 1: conv1 -> per-image (sum, sumsq), BN1 fold in XLA ----------
    st1 = pl.pallas_call(
        _make_kernel(1, h1, w2sp, cin, c1, c2, compute_dtype),
        out_shape=jax.ShapeDtypeStruct((batch, 2, c1), jnp.float32),
        grid=(batch,),
        in_specs=[phase_spec] * 8 + [w1_spec],
        out_specs=pl.BlockSpec((1, 2, c1), lambda b: (b, 0, 0)),
        compiler_params=cparams,
        cost_estimate=pl.CostEstimate(
            flops=flops1, transcendentals=0,
            bytes_accessed=phase_bytes + w_bytes + batch * 2 * c1 * 4),
    )(*phases, w1_t)
    ss1 = _fold_bn(st1, g1, be1, batch * h1 * w1sp)

    # ---- sweep 2: conv1+BN1+GELU+conv2 -> per-image (sum, sumsq) ------------
    st2 = pl.pallas_call(
        _make_kernel(2, h1, w2sp, cin, c1, c2, compute_dtype),
        out_shape=jax.ShapeDtypeStruct((batch, 2, c2), jnp.float32),
        grid=(batch,),
        in_specs=[phase_spec] * 8 + [w1_spec, ss1_spec, w2_spec],
        out_specs=pl.BlockSpec((1, 2, c2), lambda b: (b, 0, 0)),
        scratch_shapes=[acc_scratch],
        compiler_params=cparams,
        cost_estimate=pl.CostEstimate(
            flops=flops1 + flops2, transcendentals=batch * h1 * w1sp * c1,
            bytes_accessed=phase_bytes + w_bytes + batch * 2 * c2 * 4),
    )(*phases, w1_t, ss1, w2_t)
    ss2 = _fold_bn(st2, g2, be2, batch * m2)

    # ---- sweep 3: full pipeline -> (B, m2, C2), no trailing slice ------------
    out = pl.pallas_call(
        _make_kernel(3, h1, w2sp, cin, c1, c2, compute_dtype),
        out_shape=jax.ShapeDtypeStruct((batch, m2, c2), jnp.float32),
        grid=(batch,),
        in_specs=[phase_spec] * 8 + [w1_spec, ss1_spec, w2_spec, ss2_spec],
        out_specs=pl.BlockSpec((1, m2, c2), lambda b: (b, 0, 0)),
        scratch_shapes=[acc_scratch],
        compiler_params=cparams,
        cost_estimate=pl.CostEstimate(
            flops=flops1 + flops2,
            transcendentals=batch * (h1 * w1sp * c1 + m2 * c2),
            bytes_accessed=phase_bytes + w_bytes + batch * m2 * c2 * 4),
    )(*phases, w1_t, ss1, w2_t, ss2)
    return out


# ---------------------------------------------------------------------------
# Pure-JAX reference (lax.conv + training-mode BN + exact GELU).
# ---------------------------------------------------------------------------
def _ref_block(x, w, b, gamma, beta):
    y = lax.conv_general_dilated(
        x, w, (2, 2), ((1, 1), (1, 1)),
        dimension_numbers=("NCHW", "OIHW", "NCHW"),
        precision=lax.Precision.HIGHEST)
    y = y + b[None, :, None, None]
    mean = y.mean(axis=(0, 2, 3), keepdims=True)
    var = jnp.square(y - mean).mean(axis=(0, 2, 3), keepdims=True)
    y = (y - mean) / jnp.sqrt(var + BN_EPS)
    y = y * gamma[None, :, None, None] + beta[None, :, None, None]
    return jax.nn.gelu(y, approximate=False)


def ref_forward(x, params):
    y = _ref_block(x, *params[0])
    y = _ref_block(y, *params[1])
    b, c, hh, ww = y.shape
    return y.reshape(b, c, hh * ww).transpose(0, 2, 1)


# ---------------------------------------------------------------------------
if __name__ == "__main__":
    input_dim, output_dim = 4, 32
    B, H, W = 2, 16, 16
    C1, C2 = output_dim // 2, output_dim

    key = jax.random.PRNGKey(0)
    k_x, k_w1, k_b1, k_w2, k_b2 = jax.random.split(key, 5)

    x = jax.random.normal(k_x, (B, input_dim, H, W), dtype=jnp.float32)

    # nn.Conv2d / nn.BatchNorm2d shaped parameters, default BN init.
    w1 = 0.1 * jax.random.normal(k_w1, (C1, input_dim, 3, 3), dtype=jnp.float32)
    b1 = 0.1 * jax.random.normal(k_b1, (C1,), dtype=jnp.float32)
    g1 = jnp.ones((C1,), jnp.float32)
    be1 = jnp.zeros((C1,), jnp.float32)

    w2 = 0.1 * jax.random.normal(k_w2, (C2, C1, 3, 3), dtype=jnp.float32)
    b2 = 0.1 * jax.random.normal(k_b2, (C2,), dtype=jnp.float32)
    g2 = jnp.ones((C2,), jnp.float32)
    be2 = jnp.zeros((C2,), jnp.float32)

    params = ((w1, b1, g1, be1), (w2, b2, g2, be2))

    ref = jax.block_until_ready(ref_forward(x, params))

    # f32 matmul-operand path (tolerance allows for TPU default f32-dot passes).
    fwd_f32 = jax.jit(functools.partial(svtr_patch_embed,
                                        compute_dtype=jnp.float32))
    out = jax.block_until_ready(fwd_f32(x, params))
    assert out.shape == (B, (H // 4) * (W // 4), output_dim), out.shape
    err = float(jnp.max(jnp.abs(out - ref)))
    assert jnp.allclose(out, ref, rtol=3e-2, atol=3e-2), err

    # Default bf16 matmul-operand path (f32 accumulate / BN / GELU): loose check.
    fwd_bf16 = jax.jit(svtr_patch_embed)
    out_bf16 = jax.block_until_ready(fwd_bf16(x, params))
    assert out_bf16.shape == out.shape, out_bf16.shape
    err_bf16 = float(jnp.max(jnp.abs(out_bf16 - ref)))
    assert jnp.allclose(out_bf16, ref, rtol=0.1, atol=0.2), err_bf16

    print("KERNEL_OK")
</pallas_src>

<mosaic_0001>
module attributes {stable_mosaic.version = 11 : i64} {
  func.func @kernel(%arg0: i32, %arg1: memref<1x9x5x4xf32, #tpu.memory_space<vmem>>, %arg2: memref<1x9x5x4xf32, #tpu.memory_space<vmem>>, %arg3: memref<1x9x5x4xf32, #tpu.memory_space<vmem>>, %arg4: memref<1x9x5x4xf32, #tpu.memory_space<vmem>>, %arg5: memref<1x9x5x4xf32, #tpu.memory_space<vmem>>, %arg6: memref<1x9x5x4xf32, #tpu.memory_space<vmem>>, %arg7: memref<1x9x5x4xf32, #tpu.memory_space<vmem>>, %arg8: memref<1x9x5x4xf32, #tpu.memory_space<vmem>>, %arg9: memref<9x4x16xf32, #tpu.memory_space<vmem>>, %arg10: memref<1x2x16xf32, #tpu.memory_space<vmem>>) attributes {dimension_semantics = [#tpu.dimension_semantics<parallel>], iteration_bounds = array<i64: 2>, scalar_prefetch = 0 : i64, scratch_operands = 0 : i64, tpu.core_type = #tpu.core_type<tc>, window_params = [{transform_indices = @transform_0, window_bounds = array<i64: 1, 9, 5, 4>}, {transform_indices = @transform_1, window_bounds = array<i64: 1, 9, 5, 4>}, {transform_indices = @transform_2, window_bounds = array<i64: 1, 9, 5, 4>}, {transform_indices = @transform_3, window_bounds = array<i64: 1, 9, 5, 4>}, {transform_indices = @transform_4, window_bounds = array<i64: 1, 9, 5, 4>}, {transform_indices = @transform_5, window_bounds = array<i64: 1, 9, 5, 4>}, {transform_indices = @transform_6, window_bounds = array<i64: 1, 9, 5, 4>}, {transform_indices = @transform_7, window_bounds = array<i64: 1, 9, 5, 4>}, {pipeline_mode = #tpu.pipeline_mode<synchronous>, transform_indices = @transform_8, window_bounds = array<i64: 9, 4, 16>}, {transform_indices = @transform_9, window_bounds = array<i64: 1, 2, 16>}]} {
    %c0 = arith.constant 0 : index
    %c0_0 = arith.constant 0 : index
    %c0_1 = arith.constant 0 : index
    %c0_2 = arith.constant 0 : index
    %0 = vector.load %arg1[%c0, %c0_0, %c0_1, %c0_2] : memref<1x9x5x4xf32, #tpu.memory_space<vmem>>, vector<1x8x4x4xf32>
    %1 = vector.shape_cast %0 : vector<1x8x4x4xf32> to vector<8x4x4xf32>
    %2 = vector.shape_cast %1 : vector<8x4x4xf32> to vector<32x4xf32>
    %c0_3 = arith.constant 0 : index
    %c0_4 = arith.constant 0 : index
    %c0_5 = arith.constant 0 : index
    %3 = vector.load %arg9[%c0_3, %c0_4, %c0_5] : memref<9x4x16xf32, #tpu.memory_space<vmem>>, vector<1x4x16xf32>
    %4 = vector.shape_cast %3 : vector<1x4x16xf32> to vector<4x16xf32>
    %cst = arith.constant dense<0.000000e+00> : vector<32x16xf32>
    %5 = tpu.matmul %2, %4, %cst {dimension_numbers = #tpu.dot_dimension_numbers<[1], [0], [0], [1], [0, 0, 1, 1], [], []>} : vector<32x4xf32>, vector<4x16xf32>, vector<32x16xf32> -> vector<32x16xf32>
    %c0_6 = arith.constant 0 : index
    %c0_7 = arith.constant 0 : index
    %c0_8 = arith.constant 0 : index
    %c0_9 = arith.constant 0 : index
    %6 = vector.load %arg2[%c0_6, %c0_7, %c0_8, %c0_9] : memref<1x9x5x4xf32, #tpu.memory_space<vmem>>, vector<1x8x4x4xf32>
    %7 = vector.shape_cast %6 : vector<1x8x4x4xf32> to vector<8x4x4xf32>
    %8 = vector.shape_cast %7 : vector<8x4x4xf32> to vector<32x4xf32>
    %c1 = arith.constant 1 : index
    %c0_10 = arith.constant 0 : index
    %c0_11 = arith.constant 0 : index
    %9 = vector.load %arg9[%c1, %c0_10, %c0_11] : memref<9x4x16xf32, #tpu.memory_space<vmem>>, vector<1x4x16xf32>
    %10 = vector.shape_cast %9 : vector<1x4x16xf32> to vector<4x16xf32>
    %cst_12 = arith.constant dense<0.000000e+00> : vector<32x16xf32>
    %11 = tpu.matmul %8, %10, %cst_12 {dimension_numbers = #tpu.dot_dimension_numbers<[1], [0], [0], [1], [0, 0, 1, 1], [], []>} : vector<32x4xf32>, vector<4x16xf32>, vector<32x16xf32> -> vector<32x16xf32>
    %12 = arith.addf %5, %11 : vector<32x16xf32>
    %c0_13 = arith.constant 0 : index
    %c0_14 = arith.constant 0 : index
    %c0_15 = arith.constant 0 : index
    %c0_16 = arith.constant 0 : index
    %13 = vector.load %arg3[%c0_13, %c0_14, %c0_15, %c0_16] : memref<1x9x5x4xf32, #tpu.memory_space<vmem>>, vector<1x8x4x4xf32>
    %14 = vector.shape_cast %13 : vector<1x8x4x4xf32> to vector<8x4x4xf32>
    %15 = vector.shape_cast %14 : vector<8x4x4xf32> to vector<32x4xf32>
    %c2 = arith.constant 2 : index
    %c0_17 = arith.constant 0 : index
    %c0_18 = arith.constant 0 : index
    %16 = vector.load %arg9[%c2, %c0_17, %c0_18] : memref<9x4x16xf32, #tpu.memory_space<vmem>>, vector<1x4x16xf32>
    %17 = vector.shape_cast %16 : vector<1x4x16xf32> to vector<4x16xf32>
    %cst_19 = arith.constant dense<0.000000e+00> : vector<32x16xf32>
    %18 = tpu.matmul %15, %17, %cst_19 {dimension_numbers = #tpu.dot_dimension_numbers<[1], [0], [0], [1], [0, 0, 1, 1], [], []>} : vector<32x4xf32>, vector<4x16xf32>, vector<32x16xf32> -> vector<32x16xf32>
    %19 = arith.addf %12, %18 : vector<32x16xf32>
    %c0_20 = arith.constant 0 : index
    %c0_21 = arith.constant 0 : index
    %c0_22 = arith.constant 0 : index
    %c0_23 = arith.constant 0 : index
    %20 = vector.load %arg5[%c0_20, %c0_21, %c0_22, %c0_23] : memref<1x9x5x4xf32, #tpu.memory_space<vmem>>, vector<1x8x4x4xf32>
    %21 = vector.shape_cast %20 : vector<1x8x4x4xf32> to vector<8x4x4xf32>
    %22 = vector.shape_cast %21 : vector<8x4x4xf32> to vector<32x4xf32>
    %c3 = arith.constant 3 : index
    %c0_24 = arith.constant 0 : index
    %c0_25 = arith.constant 0 : index
    %23 = vector.load %arg9[%c3, %c0_24, %c0_25] : memref<9x4x16xf32, #tpu.memory_space<vmem>>, vector<1x4x16xf32>
    %24 = vector.shape_cast %23 : vector<1x4x16xf32> to vector<4x16xf32>
    %cst_26 = arith.constant dense<0.000000e+00> : vector<32x16xf32>
    %25 = tpu.matmul %22, %24, %cst_26 {dimension_numbers = #tpu.dot_dimension_numbers<[1], [0], [0], [1], [0, 0, 1, 1], [], []>} : vector<32x4xf32>, vector<4x16xf32>, vector<32x16xf32> -> vector<32x16xf32>
    %26 = arith.addf %19, %25 : vector<32x16xf32>
    %c0_27 = arith.constant 0 : index
    %c0_28 = arith.constant 0 : index
    %c0_29 = arith.constant 0 : index
    %c0_30 = arith.constant 0 : index
    %27 = vector.load %arg6[%c0_27, %c0_28, %c0_29, %c0_30] : memref<1x9x5x4xf32, #tpu.memory_space<vmem>>, vector<1x8x4x4xf32>
    %28 = vector.shape_cast %27 : vector<1x8x4x4xf32> to vector<8x4x4xf32>
    %29 = vector.shape_cast %28 : vector<8x4x4xf32> to vector<32x4xf32>
    %c4 = arith.constant 4 : index
    %c0_31 = arith.constant 0 : index
    %c0_32 = arith.constant 0 : index
    %30 = vector.load %arg9[%c4, %c0_31, %c0_32] : memref<9x4x16xf32, #tpu.memory_space<vmem>>, vector<1x4x16xf32>
    %31 = vector.shape_cast %30 : vector<1x4x16xf32> to vector<4x16xf32>
    %cst_33 = arith.constant dense<0.000000e+00> : vector<32x16xf32>
    %32 = tpu.matmul %29, %31, %cst_33 {dimension_numbers = #tpu.dot_dimension_numbers<[1], [0], [0], [1], [0, 0, 1, 1], [], []>} : vector<32x4xf32>, vector<4x16xf32>, vector<32x16xf32> -> vector<32x16xf32>
    %33 = arith.addf %26, %32 : vector<32x16xf32>
    %c0_34 = arith.constant 0 : index
    %c0_35 = arith.constant 0 : index
    %c0_36 = arith.constant 0 : index
    %c0_37 = arith.constant 0 : index
    %34 = vector.load %arg7[%c0_34, %c0_35, %c0_36, %c0_37] : memref<1x9x5x4xf32, #tpu.memory_space<vmem>>, vector<1x8x4x4xf32>
    %35 = vector.shape_cast %34 : vector<1x8x4x4xf32> to vector<8x4x4xf32>
    %36 = vector.shape_cast %35 : vector<8x4x4xf32> to vector<32x4xf32>
    %c5 = arith.constant 5 : index
    %c0_38 = arith.constant 0 : index
    %c0_39 = arith.constant 0 : index
    %37 = vector.load %arg9[%c5, %c0_38, %c0_39] : memref<9x4x16xf32, #tpu.memory_space<vmem>>, vector<1x4x16xf32>
    %38 = vector.shape_cast %37 : vector<1x4x16xf32> to vector<4x16xf32>
    %cst_40 = arith.constant dense<0.000000e+00> : vector<32x16xf32>
    %39 = tpu.matmul %36, %38, %cst_40 {dimension_numbers = #tpu.dot_dimension_numbers<[1], [0], [0], [1], [0, 0, 1, 1], [], []>} : vector<32x4xf32>, vector<4x16xf32>, vector<32x16xf32> -> vector<32x16xf32>
    %40 = arith.addf %33, %39 : vector<32x16xf32>
    %c0_41 = arith.constant 0 : index
    %c1_42 = arith.constant 1 : index
    %c0_43 = arith.constant 0 : index
    %c0_44 = arith.constant 0 : index
    %41 = vector.load %arg1[%c0_41, %c1_42, %c0_43, %c0_44] : memref<1x9x5x4xf32, #tpu.memory_space<vmem>>, vector<1x8x4x4xf32>
    %42 = vector.shape_cast %41 : vector<1x8x4x4xf32> to vector<8x4x4xf32>
    %43 = vector.shape_cast %42 : vector<8x4x4xf32> to vector<32x4xf32>
    %c6 = arith.constant 6 : index
    %c0_45 = arith.constant 0 : index
    %c0_46 = arith.constant 0 : index
    %44 = vector.load %arg9[%c6, %c0_45, %c0_46] : memref<9x4x16xf32, #tpu.memory_space<vmem>>, vector<1x4x16xf32>
    %45 = vector.shape_cast %44 : vector<1x4x16xf32> to vector<4x16xf32>
    %cst_47 = arith.constant dense<0.000000e+00> : vector<32x16xf32>
    %46 = tpu.matmul %43, %45, %cst_47 {dimension_numbers = #tpu.dot_dimension_numbers<[1], [0], [0], [1], [0, 0, 1, 1], [], []>} : vector<32x4xf32>, vector<4x16xf32>, vector<32x16xf32> -> vector<32x16xf32>
    %47 = arith.addf %40, %46 : vector<32x16xf32>
    %c0_48 = arith.constant 0 : index
    %c1_49 = arith.constant 1 : index
    %c0_50 = arith.constant 0 : index
    %c0_51 = arith.constant 0 : index
    %48 = vector.load %arg2[%c0_48, %c1_49, %c0_50, %c0_51] : memref<1x9x5x4xf32, #tpu.memory_space<vmem>>, vector<1x8x4x4xf32>
    %49 = vector.shape_cast %48 : vector<1x8x4x4xf32> to vector<8x4x4xf32>
    %50 = vector.shape_cast %49 : vector<8x4x4xf32> to vector<32x4xf32>
    %c7 = arith.constant 7 : index
    %c0_52 = arith.constant 0 : index
    %c0_53 = arith.constant 0 : index
    %51 = vector.load %arg9[%c7, %c0_52, %c0_53] : memref<9x4x16xf32, #tpu.memory_space<vmem>>, vector<1x4x16xf32>
    %52 = vector.shape_cast %51 : vector<1x4x16xf32> to vector<4x16xf32>
    %cst_54 = arith.constant dense<0.000000e+00> : vector<32x16xf32>
    %53 = tpu.matmul %50, %52, %cst_54 {dimension_numbers = #tpu.dot_dimension_numbers<[1], [0], [0], [1], [0, 0, 1, 1], [], []>} : vector<32x4xf32>, vector<4x16xf32>, vector<32x16xf32> -> vector<32x16xf32>
    %54 = arith.addf %47, %53 : vector<32x16xf32>
    %c0_55 = arith.constant 0 : index
    %c1_56 = arith.constant 1 : index
    %c0_57 = arith.constant 0 : index
    %c0_58 = arith.constant 0 : index
    %55 = vector.load %arg3[%c0_55, %c1_56, %c0_57, %c0_58] : memref<1x9x5x4xf32, #tpu.memory_space<vmem>>, vector<1x8x4x4xf32>
    %56 = vector.shape_cast %55 : vector<1x8x4x4xf32> to vector<8x4x4xf32>
    %57 = vector.shape_cast %56 : vector<8x4x4xf32> to vector<32x4xf32>
    %c8 = arith.constant 8 : index
    %c0_59 = arith.constant 0 : index
    %c0_60 = arith.constant 0 : index
    %58 = vector.load %arg9[%c8, %c0_59, %c0_60] : memref<9x4x16xf32, #tpu.memory_space<vmem>>, vector<1x4x16xf32>
    %59 = vector.shape_cast %58 : vector<1x4x16xf32> to vector<4x16xf32>
    %cst_61 = arith.constant dense<0.000000e+00> : vector<32x16xf32>
    %60 = tpu.matmul %57, %59, %cst_61 {dimension_numbers = #tpu.dot_dimension_numbers<[1], [0], [0], [1], [0, 0, 1, 1], [], []>} : vector<32x4xf32>, vector<4x16xf32>, vector<32x16xf32> -> vector<32x16xf32>
    %61 = arith.addf %54, %60 : vector<32x16xf32>
    %c0_62 = arith.constant 0 : index
    %c0_63 = arith.constant 0 : index
    %c0_64 = arith.constant 0 : index
    %c0_65 = arith.constant 0 : index
    %62 = vector.load %arg3[%c0_62, %c0_63, %c0_64, %c0_65] : memref<1x9x5x4xf32, #tpu.memory_space<vmem>>, vector<1x8x4x4xf32>
    %63 = vector.shape_cast %62 : vector<1x8x4x4xf32> to vector<8x4x4xf32>
    %64 = vector.shape_cast %63 : vector<8x4x4xf32> to vector<32x4xf32>
    %c0_66 = arith.constant 0 : index
    %c0_67 = arith.constant 0 : index
    %c0_68 = arith.constant 0 : index
    %65 = vector.load %arg9[%c0_66, %c0_67, %c0_68] : memref<9x4x16xf32, #tpu.memory_space<vmem>>, vector<1x4x16xf32>
    %66 = vector.shape_cast %65 : vector<1x4x16xf32> to vector<4x16xf32>
    %cst_69 = arith.constant dense<0.000000e+00> : vector<32x16xf32>
    %67 = tpu.matmul %64, %66, %cst_69 {dimension_numbers = #tpu.dot_dimension_numbers<[1], [0], [0], [1], [0, 0, 1, 1], [], []>} : vector<32x4xf32>, vector<4x16xf32>, vector<32x16xf32> -> vector<32x16xf32>
    %c0_70 = arith.constant 0 : index
    %c0_71 = arith.constant 0 : index
    %c0_72 = arith.constant 0 : index
    %c0_73 = arith.constant 0 : index
    %68 = vector.load %arg4[%c0_70, %c0_71, %c0_72, %c0_73] : memref<1x9x5x4xf32, #tpu.memory_space<vmem>>, vector<1x8x4x4xf32>
    %69 = vector.shape_cast %68 : vector<1x8x4x4xf32> to vector<8x4x4xf32>
    %70 = vector.shape_cast %69 : vector<8x4x4xf32> to vector<32x4xf32>
    %c1_74 = arith.constant 1 : index
    %c0_75 = arith.constant 0 : index
    %c0_76 = arith.constant 0 : index
    %71 = vector.load %arg9[%c1_74, %c0_75, %c0_76] : memref<9x4x16xf32, #tpu.memory_space<vmem>>, vector<1x4x16xf32>
    %72 = vector.shape_cast %71 : vector<1x4x16xf32> to vector<4x16xf32>
    %cst_77 = arith.constant dense<0.000000e+00> : vector<32x16xf32>
    %73 = tpu.matmul %70, %72, %cst_77 {dimension_numbers = #tpu.dot_dimension_numbers<[1], [0], [0], [1], [0, 0, 1, 1], [], []>} : vector<32x4xf32>, vector<4x16xf32>, vector<32x16xf32> -> vector<32x16xf32>
    %74 = arith.addf %67, %73 : vector<32x16xf32>
    %c0_78 = arith.constant 0 : index
    %c0_79 = arith.constant 0 : index
    %c1_80 = arith.constant 1 : index
    %c0_81 = arith.constant 0 : index
    %75 = vector.load %arg1[%c0_78, %c0_79, %c1_80, %c0_81] : memref<1x9x5x4xf32, #tpu.memory_space<vmem>>, vector<1x8x4x4xf32>
    %76 = vector.shape_cast %75 : vector<1x8x4x4xf32> to vector<8x4x4xf32>
    %77 = vector.shape_cast %76 : vector<8x4x4xf32> to vector<32x4xf32>
    %c2_82 = arith.constant 2 : index
    %c0_83 = arith.constant 0 : index
    %c0_84 = arith.constant 0 : index
    %78 = vector.load %arg9[%c2_82, %c0_83, %c0_84] : memref<9x4x16xf32, #tpu.memory_space<vmem>>, vector<1x4x16xf32>
    %79 = vector.shape_cast %78 : vector<1x4x16xf32> to vector<4x16xf32>
    %cst_85 = arith.constant dense<0.000000e+00> : vector<32x16xf32>
    %80 = tpu.matmul %77, %79, %cst_85 {dimension_numbers = #tpu.dot_dimension_numbers<[1], [0], [0], [1], [0, 0, 1, 1], [], []>} : vector<32x4xf32>, vector<4x16xf32>, vector<32x16xf32> -> vector<32x16xf32>
    %81 = arith.addf %74, %80 : vector<32x16xf32>
    %c0_86 = arith.constant 0 : index
    %c0_87 = arith.constant 0 : index
    %c0_88 = arith.constant 0 : index
    %c0_89 = arith.constant 0 : index
    %82 = vector.load %arg7[%c0_86, %c0_87, %c0_88, %c0_89] : memref<1x9x5x4xf32, #tpu.memory_space<vmem>>, vector<1x8x4x4xf32>
    %83 = vector.shape_cast %82 : vector<1x8x4x4xf32> to vector<8x4x4xf32>
    %84 = vector.shape_cast %83 : vector<8x4x4xf32> to vector<32x4xf32>
    %c3_90 = arith.constant 3 : index
    %c0_91 = arith.constant 0 : index
    %c0_92 = arith.constant 0 : index
    %85 = vector.load %arg9[%c3_90, %c0_91, %c0_92] : memref<9x4x16xf32, #tpu.memory_space<vmem>>, vector<1x4x16xf32>
    %86 = vector.shape_cast %85 : vector<1x4x16xf32> to vector<4x16xf32>
    %cst_93 = arith.constant dense<0.000000e+00> : vector<32x16xf32>
    %87 = tpu.matmul %84, %86, %cst_93 {dimension_numbers = #tpu.dot_dimension_numbers<[1], [0], [0], [1], [0, 0, 1, 1], [], []>} : vector<32x4xf32>, vector<4x16xf32>, vector<32x16xf32> -> vector<32x16xf32>
    %88 = arith.addf %81, %87 : vector<32x16xf32>
    %c0_94 = arith.constant 0 : index
    %c0_95 = arith.constant 0 : index
    %c0_96 = arith.constant 0 : index
    %c0_97 = arith.constant 0 : index
    %89 = vector.load %arg8[%c0_94, %c0_95, %c0_96, %c0_97] : memref<1x9x5x4xf32, #tpu.memory_space<vmem>>, vector<1x8x4x4xf32>
    %90 = vector.shape_cast %89 : vector<1x8x4x4xf32> to vector<8x4x4xf32>
    %91 = vector.shape_cast %90 : vector<8x4x4xf32> to vector<32x4xf32>
    %c4_98 = arith.constant 4 : index
    %c0_99 = arith.constant 0 : index
    %c0_100 = arith.constant 0 : index
    %92 = vector.load %arg9[%c4_98, %c0_99, %c0_100] : memref<9x4x16xf32, #tpu.memory_space<vmem>>, vector<1x4x16xf32>
    %93 = vector.shape_cast %92 : vector<1x4x16xf32> to vector<4x16xf32>
    %cst_101 = arith.constant dense<0.000000e+00> : vector<32x16xf32>
    %94 = tpu.matmul %91, %93, %cst_101 {dimension_numbers = #tpu.dot_dimension_numbers<[1], [0], [0], [1], [0, 0, 1, 1], [], []>} : vector<32x4xf32>, vector<4x16xf32>, vector<32x16xf32> -> vector<32x16xf32>
    %95 = arith.addf %88, %94 : vector<32x16xf32>
    %c0_102 = arith.constant 0 : index
    %c0_103 = arith.constant 0 : index
    %c1_104 = arith.constant 1 : index
    %c0_105 = arith.constant 0 : index
    %96 = vector.load %arg5[%c0_102, %c0_103, %c1_104, %c0_105] : memref<1x9x5x4xf32, #tpu.memory_space<vmem>>, vector<1x8x4x4xf32>
    %97 = vector.shape_cast %96 : vector<1x8x4x4xf32> to vector<8x4x4xf32>
    %98 = vector.shape_cast %97 : vector<8x4x4xf32> to vector<32x4xf32>
    %c5_106 = arith.constant 5 : index
    %c0_107 = arith.constant 0 : index
    %c0_108 = arith.constant 0 : index
    %99 = vector.load %arg9[%c5_106, %c0_107, %c0_108] : memref<9x4x16xf32, #tpu.memory_space<vmem>>, vector<1x4x16xf32>
    %100 = vector.shape_cast %99 : vector<1x4x16xf32> to vector<4x16xf32>
    %cst_109 = arith.constant dense<0.000000e+00> : vector<32x16xf32>
    %101 = tpu.matmul %98, %100, %cst_109 {dimension_numbers = #tpu.dot_dimension_numbers<[1], [0], [0], [1], [0, 0, 1, 1], [], []>} : vector<32x4xf32>, vector<4x16xf32>, vector<32x16xf32> -> vector<32x16xf32>
    %102 = arith.addf %95, %101 : vector<32x16xf32>
    %c0_110 = arith.constant 0 : index
    %c1_111 = arith.constant 1 : index
    %c0_112 = arith.constant 0 : index
    %c0_113 = arith.constant 0 : index
    %103 = vector.load %arg3[%c0_110, %c1_111, %c0_112, %c0_113] : memref<1x9x5x4xf32, #tpu.memory_space<vmem>>, vector<1x8x4x4xf32>
    %104 = vector.shape_cast %103 : vector<1x8x4x4xf32> to vector<8x4x4xf32>
    %105 = vector.shape_cast %104 : vector<8x4x4xf32> to vector<32x4xf32>
    %c6_114 = arith.constant 6 : index
    %c0_115 = arith.constant 0 : index
    %c0_116 = arith.constant 0 : index
    %106 = vector.load %arg9[%c6_114, %c0_115, %c0_116] : memref<9x4x16xf32, #tpu.memory_space<vmem>>, vector<1x4x16xf32>
    %107 = vector.shape_cast %106 : vector<1x4x16xf32> to vector<4x16xf32>
    %cst_117 = arith.constant dense<0.000000e+00> : vector<32x16xf32>
    %108 = tpu.matmul %105, %107, %cst_117 {dimension_numbers = #tpu.dot_dimension_numbers<[1], [0], [0], [1], [0, 0, 1, 1], [], []>} : vector<32x4xf32>, vector<4x16xf32>, vector<32x16xf32> -> vector<32x16xf32>
    %109 = arith.addf %102, %108 : vector<32x16xf32>
    %c0_118 = arith.constant 0 : index
    %c1_119 = arith.constant 1 : index
    %c0_120 = arith.constant 0 : index
    %c0_121 = arith.constant 0 : index
    %110 = vector.load %arg4[%c0_118, %c1_119, %c0_120, %c0_121] : memref<1x9x5x4xf32, #tpu.memory_space<vmem>>, vector<1x8x4x4xf32>
    %111 = vector.shape_cast %110 : vector<1x8x4x4xf32> to vector<8x4x4xf32>
    %112 = vector.shape_cast %111 : vector<8x4x4xf32> to vector<32x4xf32>
    %c7_122 = arith.constant 7 : index
    %c0_123 = arith.constant 0 : index
    %c0_124 = arith.constant 0 : index
    %113 = vector.load %arg9[%c7_122, %c0_123, %c0_124] : memref<9x4x16xf32, #tpu.memory_space<vmem>>, vector<1x4x16xf32>
    %114 = vector.shape_cast %113 : vector<1x4x16xf32> to vector<4x16xf32>
    %cst_125 = arith.constant dense<0.000000e+00> : vector<32x16xf32>
    %115 = tpu.matmul %112, %114, %cst_125 {dimension_numbers = #tpu.dot_dimension_numbers<[1], [0], [0], [1], [0, 0, 1, 1], [], []>} : vector<32x4xf32>, vector<4x16xf32>, vector<32x16xf32> -> vector<32x16xf32>
    %116 = arith.addf %109, %115 : vector<32x16xf32>
    %c0_126 = arith.constant 0 : index
    %c1_127 = arith.constant 1 : index
    %c1_128 = arith.constant 1 : index
    %c0_129 = arith.constant 0 : index
    %117 = vector.load %arg1[%c0_126, %c1_127, %c1_128, %c0_129] : memref<1x9x5x4xf32, #tpu.memory_space<vmem>>, vector<1x8x4x4xf32>
    %118 = vector.shape_cast %117 : vector<1x8x4x4xf32> to vector<8x4x4xf32>
    %119 = vector.shape_cast %118 : vector<8x4x4xf32> to vector<32x4xf32>
    %c8_130 = arith.constant 8 : index
    %c0_131 = arith.constant 0 : index
    %c0_132 = arith.constant 0 : index
    %120 = vector.load %arg9[%c8_130, %c0_131, %c0_132] : memref<9x4x16xf32, #tpu.memory_space<vmem>>, vector<1x4x16xf32>
    %121 = vector.shape_cast %120 : vector<1x4x16xf32> to vector<4x16xf32>
    %cst_133 = arith.constant dense<0.000000e+00> : vector<32x16xf32>
    %122 = tpu.matmul %119, %121, %cst_133 {dimension_numbers = #tpu.dot_dimension_numbers<[1], [0], [0], [1], [0, 0, 1, 1], [], []>} : vector<32x4xf32>, vector<4x16xf32>, vector<32x16xf32> -> vector<32x16xf32>
    %123 = arith.addf %116, %122 : vector<32x16xf32>
    %cst_134 = arith.constant dense<0.000000e+00> : vector<16xf32>
    %124 = vector.multi_reduction <add>, %61, %cst_134 [0] : vector<32x16xf32> to vector<16xf32>
    %125 = vector.shape_cast %124 : vector<16xf32> to vector<1x16xf32>
    %126 = arith.mulf %61, %61 : vector<32x16xf32>
    %cst_135 = arith.constant dense<0.000000e+00> : vector<16xf32>
    %127 = vector.multi_reduction <add>, %126, %cst_135 [0] : vector<32x16xf32> to vector<16xf32>
    %128 = vector.shape_cast %127 : vector<16xf32> to vector<1x16xf32>
    %129 = tpu.concatenate %125, %128 in 0 : vector<1x16xf32>, vector<1x16xf32> -> vector<2x16xf32>
    %cst_136 = arith.constant dense<0.000000e+00> : vector<16xf32>
    %130 = vector.multi_reduction <add>, %123, %cst_136 [0] : vector<32x16xf32> to vector<16xf32>
    %131 = vector.shape_cast %130 : vector<16xf32> to vector<1x16xf32>
    %132 = arith.mulf %123, %123 : vector<32x16xf32>
    %cst_137 = arith.constant dense<0.000000e+00> : vector<16xf32>
    %133 = vector.multi_reduction <add>, %132, %cst_137 [0] : vector<32x16xf32> to vector<16xf32>
    %134 = vector.shape_cast %133 : vector<16xf32> to vector<1x16xf32>
    %135 = tpu.concatenate %131, %134 in 0 : vector<1x16xf32>, vector<1x16xf32> -> vector<2x16xf32>
    %136 = arith.addf %129, %135 : vector<2x16xf32>
    %c0_138 = arith.constant 0 : index
    %c0_139 = arith.constant 0 : index
    %c0_140 = arith.constant 0 : index
    %137 = vector.load %arg10[%c0_138, %c0_139, %c0_140] : memref<1x2x16xf32, #tpu.memory_space<vmem>>, vector<1x2x16xf32>
    %138 = vector.shape_cast %137 : vector<1x2x16xf32> to vector<2x16xf32>
    %139 = vector.shape_cast %136 : vector<2x16xf32> to vector<1x2x16xf32>
    tpu.vector_store %arg10[%c0_138, %c0_139, %c0_140], %139 {strides = array<i32>} : memref<1x2x16xf32, #tpu.memory_space<vmem>>, vector<1x2x16xf32>,
    return
  }
  func.func @transform_0(%arg0: i32) -> (i32, i32, i32, i32) {
    %c0_i32 = arith.constant 0 : i32
    %c0_i32_0 = arith.constant 0 : i32
    %c0_i32_1 = arith.constant 0 : i32
    %c0_i32_2 = arith.constant 0 : i32
    return %arg0, %c0_i32, %c0_i32_0, %c0_i32_1 : i32, i32, i32, i32
  }
  func.func @transform_1(%arg0: i32) -> (i32, i32, i32, i32) {
    %c0_i32 = arith.constant 0 : i32
    %c0_i32_0 = arith.constant 0 : i32
    %c0_i32_1 = arith.constant 0 : i32
    %c0_i32_2 = arith.constant 0 : i32
    return %arg0, %c0_i32, %c0_i32_0, %c0_i32_1 : i32, i32, i32, i32
  }
  func.func @transform_2(%arg0: i32) -> (i32, i32, i32, i32) {
    %c0_i32 = arith.constant 0 : i32
    %c0_i32_0 = arith.constant 0 : i32
    %c0_i32_1 = arith.constant 0 : i32
    %c0_i32_2 = arith.constant 0 : i32
    return %arg0, %c0_i32, %c0_i32_0, %c0_i32_1 : i32, i32, i32, i32
  }
  func.func @transform_3(%arg0: i32) -> (i32, i32, i32, i32) {
    %c0_i32 = arith.constant 0 : i32
    %c0_i32_0 = arith.constant 0 : i32
    %c0_i32_1 = arith.constant 0 : i32
    %c0_i32_2 = arith.constant 0 : i32
    return %arg0, %c0_i32, %c0_i32_0, %c0_i32_1 : i32, i32, i32, i32
  }
  func.func @transform_4(%arg0: i32) -> (i32, i32, i32, i32) {
    %c0_i32 = arith.constant 0 : i32
    %c0_i32_0 = arith.constant 0 : i32
    %c0_i32_1 = arith.constant 0 : i32
    %c0_i32_2 = arith.constant 0 : i32
    return %arg0, %c0_i32, %c0_i32_0, %c0_i32_1 : i32, i32, i32, i32
  }
  func.func @transform_5(%arg0: i32) -> (i32, i32, i32, i32) {
    %c0_i32 = arith.constant 0 : i32
    %c0_i32_0 = arith.constant 0 : i32
    %c0_i32_1 = arith.constant 0 : i32
    %c0_i32_2 = arith.constant 0 : i32
    return %arg0, %c0_i32, %c0_i32_0, %c0_i32_1 : i32, i32, i32, i32
  }
  func.func @transform_6(%arg0: i32) -> (i32, i32, i32, i32) {
    %c0_i32 = arith.constant 0 : i32
    %c0_i32_0 = arith.constant 0 : i32
    %c0_i32_1 = arith.constant 0 : i32
    %c0_i32_2 = arith.constant 0 : i32
    return %arg0, %c0_i32, %c0_i32_0, %c0_i32_1 : i32, i32, i32, i32
  }
  func.func @transform_7(%arg0: i32) -> (i32, i32, i32, i32) {
    %c0_i32 = arith.constant 0 : i32
    %c0_i32_0 = arith.constant 0 : i32
    %c0_i32_1 = arith.constant 0 : i32
    %c0_i32_2 = arith.constant 0 : i32
    return %arg0, %c0_i32, %c0_i32_0, %c0_i32_1 : i32, i32, i32, i32
  }
  func.func @transform_8(%arg0: i32) -> (i32, i32, i32) {
    %c0_i32 = arith.constant 0 : i32
    %c0_i32_0 = arith.constant 0 : i32
    %c0_i32_1 = arith.constant 0 : i32
    %c0_i32_2 = arith.constant 0 : i32
    return %c0_i32, %c0_i32_0, %c0_i32_1 : i32, i32, i32
  }
  func.func @transform_9(%arg0: i32) -> (i32, i32, i32) {
    %c0_i32 = arith.constant 0 : i32
    %c0_i32_0 = arith.constant 0 : i32
    %c0_i32_1 = arith.constant 0 : i32
    return %arg0, %c0_i32, %c0_i32_0 : i32, i32, i32
  }
}

module attributes {stable_mosaic.version = 11 : i64} {
  func.func @kernel(%arg0: i32, %arg1: memref<1x9x5x4xf32, #tpu.memory_space<vmem>>, %arg2: memref<1x9x5x4xf32, #tpu.memory_space<vmem>>, %arg3: memref<1x9x5x4xf32, #tpu.memory_space<vmem>>, %arg4: memref<1x9x5x4xf32, #tpu.memory_space<vmem>>, %arg5: memref<1x9x5x4xf32, #tpu.memory_space<vmem>>, %arg6: memref<1x9x5x4xf32, #tpu.memory_space<vmem>>, %arg7: memref<1x9x5x4xf32, #tpu.memory_space<vmem>>, %arg8: memref<1x9x5x4xf32, #tpu.memory_space<vmem>>, %arg9: memref<9x4x16xf32, #tpu.memory_space<vmem>>, %arg10: memref<2x16xf32, #tpu.memory_space<vmem>>, %arg11: memref<9x16x32xf32, #tpu.memory_space<vmem>>, %arg12: memref<1x2x32xf32, #tpu.memory_space<vmem>>, %arg13: memref<4x4x32xf32, #tpu.memory_space<vmem>>) attributes {dimension_semantics = [#tpu.dimension_semantics<parallel>], iteration_bounds = array<i64: 2>, scalar_prefetch = 0 : i64, scratch_operands = 1 : i64, tpu.core_type = #tpu.core_type<tc>, window_params = [{transform_indices = @transform_0, window_bounds = array<i64: 1, 9, 5, 4>}, {transform_indices = @transform_1, window_bounds = array<i64: 1, 9, 5, 4>}, {transform_indices = @transform_2, window_bounds = array<i64: 1, 9, 5, 4>}, {transform_indices = @transform_3, window_bounds = array<i64: 1, 9, 5, 4>}, {transform_indices = @transform_4, window_bounds = array<i64: 1, 9, 5, 4>}, {transform_indices = @transform_5, window_bounds = array<i64: 1, 9, 5, 4>}, {transform_indices = @transform_6, window_bounds = array<i64: 1, 9, 5, 4>}, {transform_indices = @transform_7, window_bounds = array<i64: 1, 9, 5, 4>}, {pipeline_mode = #tpu.pipeline_mode<synchronous>, transform_indices = @transform_8, window_bounds = array<i64: 9, 4, 16>}, {pipeline_mode = #tpu.pipeline_mode<synchronous>, transform_indices = @transform_9, window_bounds = array<i64: 2, 16>}, {pipeline_mode = #tpu.pipeline_mode<synchronous>, transform_indices = @transform_10, window_bounds = array<i64: 9, 16, 32>}, {transform_indices = @transform_11, window_bounds = array<i64: 1, 2, 32>}]} {
    %c0 = arith.constant 0 : index
    %c0_0 = arith.constant 0 : index
    %c0_1 = arith.constant 0 : index
    %c0_2 = arith.constant 0 : index
    %0 = vector.load %arg1[%c0, %c0_0, %c0_1, %c0_2] : memref<1x9x5x4xf32, #tpu.memory_space<vmem>>, vector<1x8x4x4xf32>
    %1 = vector.shape_cast %0 : vector<1x8x4x4xf32> to vector<8x4x4xf32>
    %2 = vector.shape_cast %1 : vector<8x4x4xf32> to vector<32x4xf32>
    %c0_3 = arith.constant 0 : index
    %c0_4 = arith.constant 0 : index
    %c0_5 = arith.constant 0 : index
    %3 = vector.load %arg9[%c0_3, %c0_4, %c0_5] : memref<9x4x16xf32, #tpu.memory_space<vmem>>, vector<1x4x16xf32>
    %4 = vector.shape_cast %3 : vector<1x4x16xf32> to vector<4x16xf32>
    %cst = arith.constant dense<0.000000e+00> : vector<32x16xf32>
    %5 = tpu.matmul %2, %4, %cst {dimension_numbers = #tpu.dot_dimension_numbers<[1], [0], [0], [1], [0, 0, 1, 1], [], []>} : vector<32x4xf32>, vector<4x16xf32>, vector<32x16xf32> -> vector<32x16xf32>
    %c0_6 = arith.constant 0 : index
    %c0_7 = arith.constant 0 : index
    %c0_8 = arith.constant 0 : index
    %c0_9 = arith.constant 0 : index
    %6 = vector.load %arg2[%c0_6, %c0_7, %c0_8, %c0_9] : memref<1x9x5x4xf32, #tpu.memory_space<vmem>>, vector<1x8x4x4xf32>
    %7 = vector.shape_cast %6 : vector<1x8x4x4xf32> to vector<8x4x4xf32>
    %8 = vector.shape_cast %7 : vector<8x4x4xf32> to vector<32x4xf32>
    %c1 = arith.constant 1 : index
    %c0_10 = arith.constant 0 : index
    %c0_11 = arith.constant 0 : index
    %9 = vector.load %arg9[%c1, %c0_10, %c0_11] : memref<9x4x16xf32, #tpu.memory_space<vmem>>, vector<1x4x16xf32>
    %10 = vector.shape_cast %9 : vector<1x4x16xf32> to vector<4x16xf32>
    %cst_12 = arith.constant dense<0.000000e+00> : vector<32x16xf32>
    %11 = tpu.matmul %8, %10, %cst_12 {dimension_numbers = #tpu.dot_dimension_numbers<[1], [0], [0], [1], [0, 0, 1, 1], [], []>} : vector<32x4xf32>, vector<4x16xf32>, vector<32x16xf32> -> vector<32x16xf32>
    %12 = arith.addf %5, %11 : vector<32x16xf32>
    %c0_13 = arith.constant 0 : index
    %c0_14 = arith.constant 0 : index
    %c0_15 = arith.constant 0 : index
    %c0_16 = arith.constant 0 : index
    %13 = vector.load %arg3[%c0_13, %c0_14, %c0_15, %c0_16] : memref<1x9x5x4xf32, #tpu.memory_space<vmem>>, vector<1x8x4x4xf32>
    %14 = vector.shape_cast %13 : vector<1x8x4x4xf32> to vector<8x4x4xf32>
    %15 = vector.shape_cast %14 : vector<8x4x4xf32> to vector<32x4xf32>
    %c2 = arith.constant 2 : index
    %c0_17 = arith.constant 0 : index
    %c0_18 = arith.constant 0 : index
    %16 = vector.load %arg9[%c2, %c0_17, %c0_18] : memref<9x4x16xf32, #tpu.memory_space<vmem>>, vector<1x4x16xf32>
    %17 = vector.shape_cast %16 : vector<1x4x16xf32> to vector<4x16xf32>
    %cst_19 = arith.constant dense<0.000000e+00> : vector<32x16xf32>
    %18 = tpu.matmul %15, %17, %cst_19 {dimension_numbers = #tpu.dot_dimension_numbers<[1], [0], [0], [1], [0, 0, 1, 1], [], []>} : vector<32x4xf32>, vector<4x16xf32>, vector<32x16xf32> -> vector<32x16xf32>
    %19 = arith.addf %12, %18 : vector<32x16xf32>
    %c0_20 = arith.constant 0 : index
    %c0_21 = arith.constant 0 : index
    %c0_22 = arith.constant 0 : index
    %c0_23 = arith.constant 0 : index
    %20 = vector.load %arg5[%c0_20, %c0_21, %c0_22, %c0_23] : memref<1x9x5x4xf32, #tpu.memory_space<vmem>>, vector<1x8x4x4xf32>
    %21 = vector.shape_cast %20 : vector<1x8x4x4xf32> to vector<8x4x4xf32>
    %22 = vector.shape_cast %21 : vector<8x4x4xf32> to vector<32x4xf32>
    %c3 = arith.constant 3 : index
    %c0_24 = arith.constant 0 : index
    %c0_25 = arith.constant 0 : index
    %23 = vector.load %arg9[%c3, %c0_24, %c0_25] : memref<9x4x16xf32, #tpu.memory_space<vmem>>, vector<1x4x16xf32>
    %24 = vector.shape_cast %23 : vector<1x4x16xf32> to vector<4x16xf32>
    %cst_26 = arith.constant dense<0.000000e+00> : vector<32x16xf32>
    %25 = tpu.matmul %22, %24, %cst_26 {dimension_numbers = #tpu.dot_dimension_numbers<[1], [0], [0], [1], [0, 0, 1, 1], [], []>} : vector<32x4xf32>, vector<4x16xf32>, vector<32x16xf32> -> vector<32x16xf32>
    %26 = arith.addf %19, %25 : vector<32x16xf32>
    %c0_27 = arith.constant 0 : index
    %c0_28 = arith.constant 0 : index
    %c0_29 = arith.constant 0 : index
    %c0_30 = arith.constant 0 : index
    %27 = vector.load %arg6[%c0_27, %c0_28, %c0_29, %c0_30] : memref<1x9x5x4xf32, #tpu.memory_space<vmem>>, vector<1x8x4x4xf32>
    %28 = vector.shape_cast %27 : vector<1x8x4x4xf32> to vector<8x4x4xf32>
    %29 = vector.shape_cast %28 : vector<8x4x4xf32> to vector<32x4xf32>
    %c4 = arith.constant 4 : index
    %c0_31 = arith.constant 0 : index
    %c0_32 = arith.constant 0 : index
    %30 = vector.load %arg9[%c4, %c0_31, %c0_32] : memref<9x4x16xf32, #tpu.memory_space<vmem>>, vector<1x4x16xf32>
    %31 = vector.shape_cast %30 : vector<1x4x16xf32> to vector<4x16xf32>
    %cst_33 = arith.constant dense<0.000000e+00> : vector<32x16xf32>
    %32 = tpu.matmul %29, %31, %cst_33 {dimension_numbers = #tpu.dot_dimension_numbers<[1], [0], [0], [1], [0, 0, 1, 1], [], []>} : vector<32x4xf32>, vector<4x16xf32>, vector<32x16xf32> -> vector<32x16xf32>
    %33 = arith.addf %26, %32 : vector<32x16xf32>
    %c0_34 = arith.constant 0 : index
    %c0_35 = arith.constant 0 : index
    %c0_36 = arith.constant 0 : index
    %c0_37 = arith.constant 0 : index
    %34 = vector.load %arg7[%c0_34, %c0_35, %c0_36, %c0_37] : memref<1x9x5x4xf32, #tpu.memory_space<vmem>>, vector<1x8x4x4xf32>
    %35 = vector.shape_cast %34 : vector<1x8x4x4xf32> to vector<8x4x4xf32>
    %36 = vector.shape_cast %35 : vector<8x4x4xf32> to vector<32x4xf32>
    %c5 = arith.constant 5 : index
    %c0_38 = arith.constant 0 : index
    %c0_39 = arith.constant 0 : index
    %37 = vector.load %arg9[%c5, %c0_38, %c0_39] : memref<9x4x16xf32, #tpu.memory_space<vmem>>, vector<1x4x16xf32>
    %38 = vector.shape_cast %37 : vector<1x4x16xf32> to vector<4x16xf32>
    %cst_40 = arith.constant dense<0.000000e+00> : vector<32x16xf32>
    %39 = tpu.matmul %36, %38, %cst_40 {dimension_numbers = #tpu.dot_dimension_numbers<[1], [0], [0], [1], [0, 0, 1, 1], [], []>} : vector<32x4xf32>, vector<4x16xf32>, vector<32x16xf32> -> vector<32x16xf32>
    %40 = arith.addf %33, %39 : vector<32x16xf32>
    %c0_41 = arith.constant 0 : index
    %c1_42 = arith.constant 1 : index
    %c0_43 = arith.constant 0 : index
    %c0_44 = arith.constant 0 : index
    %41 = vector.load %arg1[%c0_41, %c1_42, %c0_43, %c0_44] : memref<1x9x5x4xf32, #tpu.memory_space<vmem>>, vector<1x8x4x4xf32>
    %42 = vector.shape_cast %41 : vector<1x8x4x4xf32> to vector<8x4x4xf32>
    %43 = vector.shape_cast %42 : vector<8x4x4xf32> to vector<32x4xf32>
    %c6 = arith.constant 6 : index
    %c0_45 = arith.constant 0 : index
    %c0_46 = arith.constant 0 : index
    %44 = vector.load %arg9[%c6, %c0_45, %c0_46] : memref<9x4x16xf32, #tpu.memory_space<vmem>>, vector<1x4x16xf32>
    %45 = vector.shape_cast %44 : vector<1x4x16xf32> to vector<4x16xf32>
    %cst_47 = arith.constant dense<0.000000e+00> : vector<32x16xf32>
    %46 = tpu.matmul %43, %45, %cst_47 {dimension_numbers = #tpu.dot_dimension_numbers<[1], [0], [0], [1], [0, 0, 1, 1], [], []>} : vector<32x4xf32>, vector<4x16xf32>, vector<32x16xf32> -> vector<32x16xf32>
    %47 = arith.addf %40, %46 : vector<32x16xf32>
    %c0_48 = arith.constant 0 : index
    %c1_49 = arith.constant 1 : index
    %c0_50 = arith.constant 0 : index
    %c0_51 = arith.constant 0 : index
    %48 = vector.load %arg2[%c0_48, %c1_49, %c0_50, %c0_51] : memref<1x9x5x4xf32, #tpu.memory_space<vmem>>, vector<1x8x4x4xf32>
    %49 = vector.shape_cast %48 : vector<1x8x4x4xf32> to vector<8x4x4xf32>
    %50 = vector.shape_cast %49 : vector<8x4x4xf32> to vector<32x4xf32>
    %c7 = arith.constant 7 : index
    %c0_52 = arith.constant 0 : index
    %c0_53 = arith.constant 0 : index
    %51 = vector.load %arg9[%c7, %c0_52, %c0_53] : memref<9x4x16xf32, #tpu.memory_space<vmem>>, vector<1x4x16xf32>
    %52 = vector.shape_cast %51 : vector<1x4x16xf32> to vector<4x16xf32>
    %cst_54 = arith.constant dense<0.000000e+00> : vector<32x16xf32>
    %53 = tpu.matmul %50, %52, %cst_54 {dimension_numbers = #tpu.dot_dimension_numbers<[1], [0], [0], [1], [0, 0, 1, 1], [], []>} : vector<32x4xf32>, vector<4x16xf32>, vector<32x16xf32> -> vector<32x16xf32>
    %54 = arith.addf %47, %53 : vector<32x16xf32>
    %c0_55 = arith.constant 0 : index
    %c1_56 = arith.constant 1 : index
    %c0_57 = arith.constant 0 : index
    %c0_58 = arith.constant 0 : index
    %55 = vector.load %arg3[%c0_55, %c1_56, %c0_57, %c0_58] : memref<1x9x5x4xf32, #tpu.memory_space<vmem>>, vector<1x8x4x4xf32>
    %56 = vector.shape_cast %55 : vector<1x8x4x4xf32> to vector<8x4x4xf32>
    %57 = vector.shape_cast %56 : vector<8x4x4xf32> to vector<32x4xf32>
    %c8 = arith.constant 8 : index
    %c0_59 = arith.constant 0 : index
    %c0_60 = arith.constant 0 : index
    %58 = vector.load %arg9[%c8, %c0_59, %c0_60] : memref<9x4x16xf32, #tpu.memory_space<vmem>>, vector<1x4x16xf32>
    %59 = vector.shape_cast %58 : vector<1x4x16xf32> to vector<4x16xf32>
    %cst_61 = arith.constant dense<0.000000e+00> : vector<32x16xf32>
    %60 = tpu.matmul %57, %59, %cst_61 {dimension_numbers = #tpu.dot_dimension_numbers<[1], [0], [0], [1], [0, 0, 1, 1], [], []>} : vector<32x4xf32>, vector<4x16xf32>, vector<32x16xf32> -> vector<32x16xf32>
    %61 = arith.addf %54, %60 : vector<32x16xf32>
    %c0_62 = arith.constant 0 : index
    %c0_63 = arith.constant 0 : index
    %c0_64 = arith.constant 0 : index
    %c0_65 = arith.constant 0 : index
    %62 = vector.load %arg3[%c0_62, %c0_63, %c0_64, %c0_65] : memref<1x9x5x4xf32, #tpu.memory_space<vmem>>, vector<1x8x4x4xf32>
    %63 = vector.shape_cast %62 : vector<1x8x4x4xf32> to vector<8x4x4xf32>
    %64 = vector.shape_cast %63 : vector<8x4x4xf32> to vector<32x4xf32>
    %c0_66 = arith.constant 0 : index
    %c0_67 = arith.constant 0 : index
    %c0_68 = arith.constant 0 : index
    %65 = vector.load %arg9[%c0_66, %c0_67, %c0_68] : memref<9x4x16xf32, #tpu.memory_space<vmem>>, vector<1x4x16xf32>
    %66 = vector.shape_cast %65 : vector<1x4x16xf32> to vector<4x16xf32>
    %cst_69 = arith.constant dense<0.000000e+00> : vector<32x16xf32>
    %67 = tpu.matmul %64, %66, %cst_69 {dimension_numbers = #tpu.dot_dimension_numbers<[1], [0], [0], [1], [0, 0, 1, 1], [], []>} : vector<32x4xf32>, vector<4x16xf32>, vector<32x16xf32> -> vector<32x16xf32>
    %c0_70 = arith.constant 0 : index
    %c0_71 = arith.constant 0 : index
    %c0_72 = arith.constant 0 : index
    %c0_73 = arith.constant 0 : index
    %68 = vector.load %arg4[%c0_70, %c0_71, %c0_72, %c0_73] : memref<1x9x5x4xf32, #tpu.memory_space<vmem>>, vector<1x8x4x4xf32>
    %69 = vector.shape_cast %68 : vector<1x8x4x4xf32> to vector<8x4x4xf32>
    %70 = vector.shape_cast %69 : vector<8x4x4xf32> to vector<32x4xf32>
    %c1_74 = arith.constant 1 : index
    %c0_75 = arith.constant 0 : index
    %c0_76 = arith.constant 0 : index
    %71 = vector.load %arg9[%c1_74, %c0_75, %c0_76] : memref<9x4x16xf32, #tpu.memory_space<vmem>>, vector<1x4x16xf32>
    %72 = vector.shape_cast %71 : vector<1x4x16xf32> to vector<4x16xf32>
    %cst_77 = arith.constant dense<0.000000e+00> : vector<32x16xf32>
    %73 = tpu.matmul %70, %72, %cst_77 {dimension_numbers = #tpu.dot_dimension_numbers<[1], [0], [0], [1], [0, 0, 1, 1], [], []>} : vector<32x4xf32>, vector<4x16xf32>, vector<32x16xf32> -> vector<32x16xf32>
    %74 = arith.addf %67, %73 : vector<32x16xf32>
    %c0_78 = arith.constant 0 : index
    %c0_79 = arith.constant 0 : index
    %c1_80 = arith.constant 1 : index
    %c0_81 = arith.constant 0 : index
    %75 = vector.load %arg1[%c0_78, %c0_79, %c1_80, %c0_81] : memref<1x9x5x4xf32, #tpu.memory_space<vmem>>, vector<1x8x4x4xf32>
    %76 = vector.shape_cast %75 : vector<1x8x4x4xf32> to vector<8x4x4xf32>
    %77 = vector.shape_cast %76 : vector<8x4x4xf32> to vector<32x4xf32>
    %c2_82 = arith.constant 2 : index
    %c0_83 = arith.constant 0 : index
    %c0_84 = arith.constant 0 : index
    %78 = vector.load %arg9[%c2_82, %c0_83, %c0_84] : memref<9x4x16xf32, #tpu.memory_space<vmem>>, vector<1x4x16xf32>
    %79 = vector.shape_cast %78 : vector<1x4x16xf32> to vector<4x16xf32>
    %cst_85 = arith.constant dense<0.000000e+00> : vector<32x16xf32>
    %80 = tpu.matmul %77, %79, %cst_85 {dimension_numbers = #tpu.dot_dimension_numbers<[1], [0], [0], [1], [0, 0, 1, 1], [], []>} : vector<32x4xf32>, vector<4x16xf32>, vector<32x16xf32> -> vector<32x16xf32>
    %81 = arith.addf %74, %80 : vector<32x16xf32>
    %c0_86 = arith.constant 0 : index
    %c0_87 = arith.constant 0 : index
    %c0_88 = arith.constant 0 : index
    %c0_89 = arith.constant 0 : index
    %82 = vector.load %arg7[%c0_86, %c0_87, %c0_88, %c0_89] : memref<1x9x5x4xf32, #tpu.memory_space<vmem>>, vector<1x8x4x4xf32>
    %83 = vector.shape_cast %82 : vector<1x8x4x4xf32> to vector<8x4x4xf32>
    %84 = vector.shape_cast %83 : vector<8x4x4xf32> to vector<32x4xf32>
    %c3_90 = arith.constant 3 : index
    %c0_91 = arith.constant 0 : index
    %c0_92 = arith.constant 0 : index
    %85 = vector.load %arg9[%c3_90, %c0_91, %c0_92] : memref<9x4x16xf32, #tpu.memory_space<vmem>>, vector<1x4x16xf32>
    %86 = vector.shape_cast %85 : vector<1x4x16xf32> to vector<4x16xf32>
    %cst_93 = arith.constant dense<0.000000e+00> : vector<32x16xf32>
    %87 = tpu.matmul %84, %86, %cst_93 {dimension_numbers = #tpu.dot_dimension_numbers<[1], [0], [0], [1], [0, 0, 1, 1], [], []>} : vector<32x4xf32>, vector<4x16xf32>, vector<32x16xf32> -> vector<32x16xf32>
    %88 = arith.addf %81, %87 : vector<32x16xf32>
    %c0_94 = arith.constant 0 : index
    %c0_95 = arith.constant 0 : index
    %c0_96 = arith.constant 0 : index
    %c0_97 = arith.constant 0 : index
    %89 = vector.load %arg8[%c0_94, %c0_95, %c0_96, %c0_97] : memref<1x9x5x4xf32, #tpu.memory_space<vmem>>, vector<1x8x4x4xf32>
    %90 = vector.shape_cast %89 : vector<1x8x4x4xf32> to vector<8x4x4xf32>
    %91 = vector.shape_cast %90 : vector<8x4x4xf32> to vector<32x4xf32>
    %c4_98 = arith.constant 4 : index
    %c0_99 = arith.constant 0 : index
    %c0_100 = arith.constant 0 : index
    %92 = vector.load %arg9[%c4_98, %c0_99, %c0_100] : memref<9x4x16xf32, #tpu.memory_space<vmem>>, vector<1x4x16xf32>
    %93 = vector.shape_cast %92 : vector<1x4x16xf32> to vector<4x16xf32>
    %cst_101 = arith.constant dense<0.000000e+00> : vector<32x16xf32>
    %94 = tpu.matmul %91, %93, %cst_101 {dimension_numbers = #tpu.dot_dimension_numbers<[1], [0], [0], [1], [0, 0, 1, 1], [], []>} : vector<32x4xf32>, vector<4x16xf32>, vector<32x16xf32> -> vector<32x16xf32>
    %95 = arith.addf %88, %94 : vector<32x16xf32>
    %c0_102 = arith.constant 0 : index
    %c0_103 = arith.constant 0 : index
    %c1_104 = arith.constant 1 : index
    %c0_105 = arith.constant 0 : index
    %96 = vector.load %arg5[%c0_102, %c0_103, %c1_104, %c0_105] : memref<1x9x5x4xf32, #tpu.memory_space<vmem>>, vector<1x8x4x4xf32>
    %97 = vector.shape_cast %96 : vector<1x8x4x4xf32> to vector<8x4x4xf32>
    %98 = vector.shape_cast %97 : vector<8x4x4xf32> to vector<32x4xf32>
    %c5_106 = arith.constant 5 : index
    %c0_107 = arith.constant 0 : index
    %c0_108 = arith.constant 0 : index
    %99 = vector.load %arg9[%c5_106, %c0_107, %c0_108] : memref<9x4x16xf32, #tpu.memory_space<vmem>>, vector<1x4x16xf32>
    %100 = vector.shape_cast %99 : vector<1x4x16xf32> to vector<4x16xf32>
    %cst_109 = arith.constant dense<0.000000e+00> : vector<32x16xf32>
    %101 = tpu.matmul %98, %100, %cst_109 {dimension_numbers = #tpu.dot_dimension_numbers<[1], [0], [0], [1], [0, 0, 1, 1], [], []>} : vector<32x4xf32>, vector<4x16xf32>, vector<32x16xf32> -> vector<32x16xf32>
    %102 = arith.addf %95, %101 : vector<32x16xf32>
    %c0_110 = arith.constant 0 : index
    %c1_111 = arith.constant 1 : index
    %c0_112 = arith.constant 0 : index
    %c0_113 = arith.constant 0 : index
    %103 = vector.load %arg3[%c0_110, %c1_111, %c0_112, %c0_113] : memref<1x9x5x4xf32, #tpu.memory_space<vmem>>, vector<1x8x4x4xf32>
    %104 = vector.shape_cast %103 : vector<1x8x4x4xf32> to vector<8x4x4xf32>
    %105 = vector.shape_cast %104 : vector<8x4x4xf32> to vector<32x4xf32>
    %c6_114 = arith.constant 6 : index
    %c0_115 = arith.constant 0 : index
    %c0_116 = arith.constant 0 : index
    %106 = vector.load %arg9[%c6_114, %c0_115, %c0_116] : memref<9x4x16xf32, #tpu.memory_space<vmem>>, vector<1x4x16xf32>
    %107 = vector.shape_cast %106 : vector<1x4x16xf32> to vector<4x16xf32>
    %cst_117 = arith.constant dense<0.000000e+00> : vector<32x16xf32>
    %108 = tpu.matmul %105, %107, %cst_117 {dimension_numbers = #tpu.dot_dimension_numbers<[1], [0], [0], [1], [0, 0, 1, 1], [], []>} : vector<32x4xf32>, vector<4x16xf32>, vector<32x16xf32> -> vector<32x16xf32>
    %109 = arith.addf %102, %108 : vector<32x16xf32>
    %c0_118 = arith.constant 0 : index
    %c1_119 = arith.constant 1 : index
    %c0_120 = arith.constant 0 : index
    %c0_121 = arith.constant 0 : index
    %110 = vector.load %arg4[%c0_118, %c1_119, %c0_120, %c0_121] : memref<1x9x5x4xf32, #tpu.memory_space<vmem>>, vector<1x8x4x4xf32>
    %111 = vector.shape_cast %110 : vector<1x8x4x4xf32> to vector<8x4x4xf32>
    %112 = vector.shape_cast %111 : vector<8x4x4xf32> to vector<32x4xf32>
    %c7_122 = arith.constant 7 : index
    %c0_123 = arith.constant 0 : index
    %c0_124 = arith.constant 0 : index
    %113 = vector.load %arg9[%c7_122, %c0_123, %c0_124] : memref<9x4x16xf32, #tpu.memory_space<vmem>>, vector<1x4x16xf32>
    %114 = vector.shape_cast %113 : vector<1x4x16xf32> to vector<4x16xf32>
    %cst_125 = arith.constant dense<0.000000e+00> : vector<32x16xf32>
    %115 = tpu.matmul %112, %114, %cst_125 {dimension_numbers = #tpu.dot_dimension_numbers<[1], [0], [0], [1], [0, 0, 1, 1], [], []>} : vector<32x4xf32>, vector<4x16xf32>, vector<32x16xf32> -> vector<32x16xf32>
    %116 = arith.addf %109, %115 : vector<32x16xf32>
    %c0_126 = arith.constant 0 : index
    %c1_127 = arith.constant 1 : index
    %c1_128 = arith.constant 1 : index
    %c0_129 = arith.constant 0 : index
    %117 = vector.load %arg1[%c0_126, %c1_127, %c1_128, %c0_129] : memref<1x9x5x4xf32, #tpu.memory_space<vmem>>, vector<1x8x4x4xf32>
    %118 = vector.shape_cast %117 : vector<1x8x4x4xf32> to vector<8x4x4xf32>
    %119 = vector.shape_cast %118 : vector<8x4x4xf32> to vector<32x4xf32>
    %c8_130 = arith.constant 8 : index
    %c0_131 = arith.constant 0 : index
    %c0_132 = arith.constant 0 : index
    %120 = vector.load %arg9[%c8_130, %c0_131, %c0_132] : memref<9x4x16xf32, #tpu.memory_space<vmem>>, vector<1x4x16xf32>
    %121 = vector.shape_cast %120 : vector<1x4x16xf32> to vector<4x16xf32>
    %cst_133 = arith.constant dense<0.000000e+00> : vector<32x16xf32>
    %122 = tpu.matmul %119, %121, %cst_133 {dimension_numbers = #tpu.dot_dimension_numbers<[1], [0], [0], [1], [0, 0, 1, 1], [], []>} : vector<32x4xf32>, vector<4x16xf32>, vector<32x16xf32> -> vector<32x16xf32>
    %123 = arith.addf %116, %122 : vector<32x16xf32>
    %c0_134 = arith.constant 0 : index
    %c0_135 = arith.constant 0 : index
    %124 = vector.load %arg10[%c0_134, %c0_135] : memref<2x16xf32, #tpu.memory_space<vmem>>, vector<2x16xf32>
    %125 = vector.extract_strided_slice %124 {offsets = [0, 0], sizes = [1, 16], strides = [1, 1]} : vector<2x16xf32> to vector<1x16xf32>
    %126 = vector.broadcast %125 : vector<1x16xf32> to vector<32x16xf32>
    %127 = arith.mulf %61, %126 : vector<32x16xf32>
    %128 = vector.extract_strided_slice %124 {offsets = [1, 0], sizes = [1, 16], strides = [1, 1]} : vector<2x16xf32> to vector<1x16xf32>
    %129 = vector.broadcast %128 : vector<1x16xf32> to vector<32x16xf32>
    %130 = arith.addf %127, %129 : vector<32x16xf32>
    %cst_136 = arith.constant 5.000000e-01 : f32
    %131 = vector.broadcast %cst_136 : f32 to vector<32x16xf32>
    %132 = arith.mulf %131, %130 : vector<32x16xf32>
    %cst_137 = arith.constant 0.707106769 : f32
    %133 = vector.broadcast %cst_137 : f32 to vector<32x16xf32>
    %134 = arith.mulf %130, %133 : vector<32x16xf32>
    %135 = math.erf %134 : vector<32x16xf32>
    %cst_138 = arith.constant 1.000000e+00 : f32
    %136 = vector.broadcast %cst_138 : f32 to vector<32x16xf32>
    %137 = arith.addf %136, %135 : vector<32x16xf32>
    %138 = arith.mulf %132, %137 : vector<32x16xf32>
    %139 = vector.extract_strided_slice %124 {offsets = [0, 0], sizes = [1, 16], strides = [1, 1]} : vector<2x16xf32> to vector<1x16xf32>
    %140 = vector.broadcast %139 : vector<1x16xf32> to vector<32x16xf32>
    %141 = arith.mulf %123, %140 : vector<32x16xf32>
    %142 = vector.extract_strided_slice %124 {offsets = [1, 0], sizes = [1, 16], strides = [1, 1]} : vector<2x16xf32> to vector<1x16xf32>
    %143 = vector.broadcast %142 : vector<1x16xf32> to vector<32x16xf32>
    %144 = arith.addf %141, %143 : vector<32x16xf32>
    %cst_139 = arith.constant 5.000000e-01 : f32
    %145 = vector.broadcast %cst_139 : f32 to vector<32x16xf32>
    %146 = arith.mulf %145, %144 : vector<32x16xf32>
    %cst_140 = arith.constant 0.707106769 : f32
    %147 = vector.broadcast %cst_140 : f32 to vector<32x16xf32>
    %148 = arith.mulf %144, %147 : vector<32x16xf32>
    %149 = math.erf %148 : vector<32x16xf32>
    %cst_141 = arith.constant 1.000000e+00 : f32
    %150 = vector.broadcast %cst_141 : f32 to vector<32x16xf32>
    %151 = arith.addf %150, %149 : vector<32x16xf32>
    %152 = arith.mulf %146, %151 : vector<32x16xf32>
    %153 = vector.shape_cast %138 : vector<32x16xf32> to vector<4x2x4x16xf32>
    %154 = vector.extract_strided_slice %153 {offsets = [0, 0, 0, 0], sizes = [4, 1, 4, 16], strides = [1, 1, 1, 1]} : vector<4x2x4x16xf32> to vector<4x1x4x16xf32>
    %155 = vector.shape_cast %154 : vector<4x1x4x16xf32> to vector<4x4x16xf32>
    %156 = vector.extract_strided_slice %153 {offsets = [0, 1, 0, 0], sizes = [4, 1, 4, 16], strides = [1, 1, 1, 1]} : vector<4x2x4x16xf32> to vector<4x1x4x16xf32>
    %157 = vector.shape_cast %156 : vector<4x1x4x16xf32> to vector<4x4x16xf32>
    %158 = vector.shape_cast %152 : vector<32x16xf32> to vector<4x2x4x16xf32>
    %159 = vector.extract_strided_slice %158 {offsets = [0, 0, 0, 0], sizes = [4, 1, 4, 16], strides = [1, 1, 1, 1]} : vector<4x2x4x16xf32> to vector<4x1x4x16xf32>
    %160 = vector.shape_cast %159 : vector<4x1x4x16xf32> to vector<4x4x16xf32>
    %161 = vector.extract_strided_slice %158 {offsets = [0, 1, 0, 0], sizes = [4, 1, 4, 16], strides = [1, 1, 1, 1]} : vector<4x2x4x16xf32> to vector<4x1x4x16xf32>
    %162 = vector.shape_cast %161 : vector<4x1x4x16xf32> to vector<4x4x16xf32>
    %163 = vector.shape_cast %155 : vector<4x4x16xf32> to vector<16x16xf32>
    %164 = vector.shape_cast %160 : vector<4x4x16xf32> to vector<16x16xf32>
    %165 = vector.shape_cast %157 : vector<4x4x16xf32> to vector<16x16xf32>
    %166 = vector.shape_cast %162 : vector<4x4x16xf32> to vector<16x16xf32>
    %cst_142 = arith.constant 0.000000e+00 : f32
    %167 = vector.broadcast %cst_142 : f32 to vector<4x4x32xf32>
    %c0_143 = arith.constant 0 : index
    %c0_144 = arith.constant 0 : index
    %c0_145 = arith.constant 0 : index
    %168 = vector.load %arg13[%c0_143, %c0_144, %c0_145] : memref<4x4x32xf32, #tpu.memory_space<vmem>>, vector<4x4x32xf32>
    tpu.vector_store %arg13[%c0_143, %c0_144, %c0_145], %167 {strides = array<i32>} : memref<4x4x32xf32, #tpu.memory_space<vmem>>, vector<4x4x32xf32>,
    %c0_146 = arith.constant 0 : index
    %c0_147 = arith.constant 0 : index
    %c0_148 = arith.constant 0 : index
    %169 = vector.load %arg11[%c0_146, %c0_147, %c0_148] : memref<9x16x32xf32, #tpu.memory_space<vmem>>, vector<1x16x32xf32>
    %170 = vector.shape_cast %169 : vector<1x16x32xf32> to vector<16x32xf32>
    %cst_149 = arith.constant dense<0.000000e+00> : vector<16x32xf32>
    %171 = tpu.matmul %166, %170, %cst_149 {dimension_numbers = #tpu.dot_dimension_numbers<[1], [0], [0], [1], [0, 0, 1, 1], [], []>} : vector<16x16xf32>, vector<16x32xf32>, vector<16x32xf32> -> vector<16x32xf32>
    %172 = vector.shape_cast %171 : vector<16x32xf32> to vector<4x4x32xf32>
    %c1_150 = arith.constant 1 : index
    %c1_151 = arith.constant 1 : index
    %c0_152 = arith.constant 0 : index
    %173 = vector.load %arg13[%c1_150, %c1_151, %c0_152] : memref<4x4x32xf32, #tpu.memory_space<vmem>>, vector<3x3x32xf32>
    %174 = vector.extract_strided_slice %172 {offsets = [0, 0, 0], sizes = [3, 3, 32], strides = [1, 1, 1]} : vector<4x4x32xf32> to vector<3x3x32xf32>
    %175 = arith.addf %173, %174 : vector<3x3x32xf32>
    %c1_153 = arith.constant 1 : index
    %c1_154 = arith.constant 1 : index
    %c0_155 = arith.constant 0 : index
    %176 = vector.load %arg13[%c1_153, %c1_154, %c0_155] : memref<4x4x32xf32, #tpu.memory_space<vmem>>, vector<3x3x32xf32>
    tpu.vector_store %arg13[%c1_153, %c1_154, %c0_155], %175 {strides = array<i32>} : memref<4x4x32xf32, #tpu.memory_space<vmem>>, vector<3x3x32xf32>,
    %c1_156 = arith.constant 1 : index
    %c0_157 = arith.constant 0 : index
    %c0_158 = arith.constant 0 : index
    %177 = vector.load %arg11[%c1_156, %c0_157, %c0_158] : memref<9x16x32xf32, #tpu.memory_space<vmem>>, vector<1x16x32xf32>
    %178 = vector.shape_cast %177 : vector<1x16x32xf32> to vector<16x32xf32>
    %cst_159 = arith.constant dense<0.000000e+00> : vector<16x32xf32>
    %179 = tpu.matmul %165, %178, %cst_159 {dimension_numbers = #tpu.dot_dimension_numbers<[1], [0], [0], [1], [0, 0, 1, 1], [], []>} : vector<16x16xf32>, vector<16x32xf32>, vector<16x32xf32> -> vector<16x32xf32>
    %180 = vector.shape_cast %179 : vector<16x32xf32> to vector<4x4x32xf32>
    %c1_160 = arith.constant 1 : index
    %c0_161 = arith.constant 0 : index
    %c0_162 = arith.constant 0 : index
    %181 = vector.load %arg13[%c1_160, %c0_161, %c0_162] : memref<4x4x32xf32, #tpu.memory_space<vmem>>, vector<3x4x32xf32>
    %182 = vector.extract_strided_slice %180 {offsets = [0, 0, 0], sizes = [3, 4, 32], strides = [1, 1, 1]} : vector<4x4x32xf32> to vector<3x4x32xf32>
    %183 = arith.addf %181, %182 : vector<3x4x32xf32>
    %c1_163 = arith.constant 1 : index
    %c0_164 = arith.constant 0 : index
    %c0_165 = arith.constant 0 : index
    %184 = vector.load %arg13[%c1_163, %c0_164, %c0_165] : memref<4x4x32xf32, #tpu.memory_space<vmem>>, vector<3x4x32xf32>
    tpu.vector_store %arg13[%c1_163, %c0_164, %c0_165], %183 {strides = array<i32>} : memref<4x4x32xf32, #tpu.memory_space<vmem>>, vector<3x4x32xf32>,
    %c2_166 = arith.constant 2 : index
    %c0_167 = arith.constant 0 : index
    %c0_168 = arith.constant 0 : index
    %185 = vector.load %arg11[%c2_166, %c0_167, %c0_168] : memref<9x16x32xf32, #tpu.memory_space<vmem>>, vector<1x16x32xf32>
    %186 = vector.shape_cast %185 : vector<1x16x32xf32> to vector<16x32xf32>
    %cst_169 = arith.constant dense<0.000000e+00> : vector<16x32xf32>
    %187 = tpu.matmul %166, %186, %cst_169 {dimension_numbers = #tpu.dot_dimension_numbers<[1], [0], [0], [1], [0, 0, 1, 1], [], []>} : vector<16x16xf32>, vector<16x32xf32>, vector<16x32xf32> -> vector<16x32xf32>
    %188 = vector.shape_cast %187 : vector<16x32xf32> to vector<4x4x32xf32>
    %c1_170 = arith.constant 1 : index
    %c0_171 = arith.constant 0 : index
    %c0_172 = arith.constant 0 : index
    %189 = vector.load %arg13[%c1_170, %c0_171, %c0_172] : memref<4x4x32xf32, #tpu.memory_space<vmem>>, vector<3x4x32xf32>
    %190 = vector.extract_strided_slice %188 {offsets = [0, 0, 0], sizes = [3, 4, 32], strides = [1, 1, 1]} : vector<4x4x32xf32> to vector<3x4x32xf32>
    %191 = arith.addf %189, %190 : vector<3x4x32xf32>
    %c1_173 = arith.constant 1 : index
    %c0_174 = arith.constant 0 : index
    %c0_175 = arith.constant 0 : index
    %192 = vector.load %arg13[%c1_173, %c0_174, %c0_175] : memref<4x4x32xf32, #tpu.memory_space<vmem>>, vector<3x4x32xf32>
    tpu.vector_store %arg13[%c1_173, %c0_174, %c0_175], %191 {strides = array<i32>} : memref<4x4x32xf32, #tpu.memory_space<vmem>>, vector<3x4x32xf32>,
    %c3_176 = arith.constant 3 : index
    %c0_177 = arith.constant 0 : index
    %c0_178 = arith.constant 0 : index
    %193 = vector.load %arg11[%c3_176, %c0_177, %c0_178] : memref<9x16x32xf32, #tpu.memory_space<vmem>>, vector<1x16x32xf32>
    %194 = vector.shape_cast %193 : vector<1x16x32xf32> to vector<16x32xf32>
    %cst_179 = arith.constant dense<0.000000e+00> : vector<16x32xf32>
    %195 = tpu.matmul %164, %194, %cst_179 {dimension_numbers = #tpu.dot_dimension_numbers<[1], [0], [0], [1], [0, 0, 1, 1], [], []>} : vector<16x16xf32>, vector<16x32xf32>, vector<16x32xf32> -> vector<16x32xf32>
    %196 = vector.shape_cast %195 : vector<16x32xf32> to vector<4x4x32xf32>
    %c0_180 = arith.constant 0 : index
    %c1_181 = arith.constant 1 : index
    %c0_182 = arith.constant 0 : index
    %197 = vector.load %arg13[%c0_180, %c1_181, %c0_182] : memref<4x4x32xf32, #tpu.memory_space<vmem>>, vector<4x3x32xf32>
    %198 = vector.extract_strided_slice %196 {offsets = [0, 0, 0], sizes = [4, 3, 32], strides = [1, 1, 1]} : vector<4x4x32xf32> to vector<4x3x32xf32>
    %199 = arith.addf %197, %198 : vector<4x3x32xf32>
    %c0_183 = arith.constant 0 : index
    %c1_184 = arith.constant 1 : index
    %c0_185 = arith.constant 0 : index
    %200 = vector.load %arg13[%c0_183, %c1_184, %c0_185] : memref<4x4x32xf32, #tpu.memory_space<vmem>>, vector<4x3x32xf32>
    tpu.vector_store %arg13[%c0_183, %c1_184, %c0_185], %199 {strides = array<i32>} : memref<4x4x32xf32, #tpu.memory_space<vmem>>, vector<4x3x32xf32>,
    %c4_186 = arith.constant 4 : index
    %c0_187 = arith.constant 0 : index
    %c0_188 = arith.constant 0 : index
    %201 = vector.load %arg11[%c4_186, %c0_187, %c0_188] : memref<9x16x32xf32, #tpu.memory_space<vmem>>, vector<1x16x32xf32>
    %202 = vector.shape_cast %201 : vector<1x16x32xf32> to vector<16x32xf32>
    %cst_189 = arith.constant dense<0.000000e+00> : vector<16x32xf32>
    %203 = tpu.matmul %163, %202, %cst_189 {dimension_numbers = #tpu.dot_dimension_numbers<[1], [0], [0], [1], [0, 0, 1, 1], [], []>} : vector<16x16xf32>, vector<16x32xf32>, vector<16x32xf32> -> vector<16x32xf32>
    %204 = vector.shape_cast %203 : vector<16x32xf32> to vector<4x4x32xf32>
    %c0_190 = arith.constant 0 : index
    %c0_191 = arith.constant 0 : index
    %c0_192 = arith.constant 0 : index
    %205 = vector.load %arg13[%c0_190, %c0_191, %c0_192] : memref<4x4x32xf32, #tpu.memory_space<vmem>>, vector<4x4x32xf32>
    %206 = arith.addf %205, %204 : vector<4x4x32xf32>
    %c0_193 = arith.constant 0 : index
    %c0_194 = arith.constant 0 : index
    %c0_195 = arith.constant 0 : index
    %207 = vector.load %arg13[%c0_193, %c0_194, %c0_195] : memref<4x4x32xf32, #tpu.memory_space<vmem>>, vector<4x4x32xf32>
    tpu.vector_store %arg13[%c0_193, %c0_194, %c0_195], %206 {strides = array<i32>} : memref<4x4x32xf32, #tpu.memory_space<vmem>>, vector<4x4x32xf32>,
    %c5_196 = arith.constant 5 : index
    %c0_197 = arith.constant 0 : index
    %c0_198 = arith.constant 0 : index
    %208 = vector.load %arg11[%c5_196, %c0_197, %c0_198] : memref<9x16x32xf32, #tpu.memory_space<vmem>>, vector<1x16x32xf32>
    %209 = vector.shape_cast %208 : vector<1x16x32xf32> to vector<16x32xf32>
    %cst_199 = arith.constant dense<0.000000e+00> : vector<16x32xf32>
    %210 = tpu.matmul %164, %209, %cst_199 {dimension_numbers = #tpu.dot_dimension_numbers<[1], [0], [0], [1], [0, 0, 1, 1], [], []>} : vector<16x16xf32>, vector<16x32xf32>, vector<16x32xf32> -> vector<16x32xf32>
    %211 = vector.shape_cast %210 : vector<16x32xf32> to vector<4x4x32xf32>
    %c0_200 = arith.constant 0 : index
    %c0_201 = arith.constant 0 : index
    %c0_202 = arith.constant 0 : index
    %212 = vector.load %arg13[%c0_200, %c0_201, %c0_202] : memref<4x4x32xf32, #tpu.memory_space<vmem>>, vector<4x4x32xf32>
    %213 = arith.addf %212, %211 : vector<4x4x32xf32>
    %c0_203 = arith.constant 0 : index
    %c0_204 = arith.constant 0 : index
    %c0_205 = arith.constant 0 : index
    %214 = vector.load %arg13[%c0_203, %c0_204, %c0_205] : memref<4x4x32xf32, #tpu.memory_space<vmem>>, vector<4x4x32xf32>
    tpu.vector_store %arg13[%c0_203, %c0_204, %c0_205], %213 {strides = array<i32>} : memref<4x4x32xf32, #tpu.memory_space<vmem>>, vector<4x4x32xf32>,
    %c6_206 = arith.constant 6 : index
    %c0_207 = arith.constant 0 : index
    %c0_208 = arith.constant 0 : index
    %215 = vector.load %arg11[%c6_206, %c0_207, %c0_208] : memref<9x16x32xf32, #tpu.memory_space<vmem>>, vector<1x16x32xf32>
    %216 = vector.shape_cast %215 : vector<1x16x32xf32> to vector<16x32xf32>
    %cst_209 = arith.constant dense<0.000000e+00> : vector<16x32xf32>
    %217 = tpu.matmul %166, %216, %cst_209 {dimension_numbers = #tpu.dot_dimension_numbers<[1], [0], [0], [1], [0, 0, 1, 1], [], []>} : vector<16x16xf32>, vector<16x32xf32>, vector<16x32xf32> -> vector<16x32xf32>
    %218 = vector.shape_cast %217 : vector<16x32xf32> to vector<4x4x32xf32>
    %c0_210 = arith.constant 0 : index
    %c1_211 = arith.constant 1 : index
    %c0_212 = arith.constant 0 : index
    %219 = vector.load %arg13[%c0_210, %c1_211, %c0_212] : memref<4x4x32xf32, #tpu.memory_space<vmem>>, vector<4x3x32xf32>
    %220 = vector.extract_strided_slice %218 {offsets = [0, 0, 0], sizes = [4, 3, 32], strides = [1, 1, 1]} : vector<4x4x32xf32> to vector<4x3x32xf32>
    %221 = arith.addf %219, %220 : vector<4x3x32xf32>
    %c0_213 = arith.constant 0 : index
    %c1_214 = arith.constant 1 : index
    %c0_215 = arith.constant 0 : index
    %222 = vector.load %arg13[%c0_213, %c1_214, %c0_215] : memref<4x4x32xf32, #tpu.memory_space<vmem>>, vector<4x3x32xf32>
    tpu.vector_store %arg13[%c0_213, %c1_214, %c0_215], %221 {strides = array<i32>} : memref<4x4x32xf32, #tpu.memory_space<vmem>>, vector<4x3x32xf32>,
    %c7_216 = arith.constant 7 : index
    %c0_217 = arith.constant 0 : index
    %c0_218 = arith.constant 0 : index
    %223 = vector.load %arg11[%c7_216, %c0_217, %c0_218] : memref<9x16x32xf32, #tpu.memory_space<vmem>>, vector<1x16x32xf32>
    %224 = vector.shape_cast %223 : vector<1x16x32xf32> to vector<16x32xf32>
    %cst_219 = arith.constant dense<0.000000e+00> : vector<16x32xf32>
    %225 = tpu.matmul %165, %224, %cst_219 {dimension_numbers = #tpu.dot_dimension_numbers<[1], [0], [0], [1], [0, 0, 1, 1], [], []>} : vector<16x16xf32>, vector<16x32xf32>, vector<16x32xf32> -> vector<16x32xf32>
    %226 = vector.shape_cast %225 : vector<16x32xf32> to vector<4x4x32xf32>
    %c0_220 = arith.constant 0 : index
    %c0_221 = arith.constant 0 : index
    %c0_222 = arith.constant 0 : index
    %227 = vector.load %arg13[%c0_220, %c0_221, %c0_222] : memref<4x4x32xf32, #tpu.memory_space<vmem>>, vector<4x4x32xf32>
    %228 = arith.addf %227, %226 : vector<4x4x32xf32>
    %c0_223 = arith.constant 0 : index
    %c0_224 = arith.constant 0 : index
    %c0_225 = arith.constant 0 : index
    %229 = vector.load %arg13[%c0_223, %c0_224, %c0_225] : memref<4x4x32xf32, #tpu.memory_space<vmem>>, vector<4x4x32xf32>
    tpu.vector_store %arg13[%c0_223, %c0_224, %c0_225], %228 {strides = array<i32>} : memref<4x4x32xf32, #tpu.memory_space<vmem>>, vector<4x4x32xf32>,
    %c8_226 = arith.constant 8 : index
    %c0_227 = arith.constant 0 : index
    %c0_228 = arith.constant 0 : index
    %230 = vector.load %arg11[%c8_226, %c0_227, %c0_228] : memref<9x16x32xf32, #tpu.memory_space<vmem>>, vector<1x16x32xf32>
    %231 = vector.shape_cast %230 : vector<1x16x32xf32> to vector<16x32xf32>
    %cst_229 = arith.constant dense<0.000000e+00> : vector<16x32xf32>
    %232 = tpu.matmul %166, %231, %cst_229 {dimension_numbers = #tpu.dot_dimension_numbers<[1], [0], [0], [1], [0, 0, 1, 1], [], []>} : vector<16x16xf32>, vector<16x32xf32>, vector<16x32xf32> -> vector<16x32xf32>
    %233 = vector.shape_cast %232 : vector<16x32xf32> to vector<4x4x32xf32>
    %c0_230 = arith.constant 0 : index
    %c0_231 = arith.constant 0 : index
    %c0_232 = arith.constant 0 : index
    %234 = vector.load %arg13[%c0_230, %c0_231, %c0_232] : memref<4x4x32xf32, #tpu.memory_space<vmem>>, vector<4x4x32xf32>
    %235 = arith.addf %234, %233 : vector<4x4x32xf32>
    %c0_233 = arith.constant 0 : index
    %c0_234 = arith.constant 0 : index
    %c0_235 = arith.constant 0 : index
    %236 = vector.load %arg13[%c0_233, %c0_234, %c0_235] : memref<4x4x32xf32, #tpu.memory_space<vmem>>, vector<4x4x32xf32>
    tpu.vector_store %arg13[%c0_233, %c0_234, %c0_235], %235 {strides = array<i32>} : memref<4x4x32xf32, #tpu.memory_space<vmem>>, vector<4x4x32xf32>,
    %c0_236 = arith.constant 0 : index
    %c0_237 = arith.constant 0 : index
    %c0_238 = arith.constant 0 : index
    %237 = vector.load %arg13[%c0_236, %c0_237, %c0_238] : memref<4x4x32xf32, #tpu.memory_space<vmem>>, vector<4x4x32xf32>
    %238 = vector.shape_cast %237 : vector<4x4x32xf32> to vector<16x32xf32>
    %cst_239 = arith.constant dense<0.000000e+00> : vector<32xf32>
    %239 = vector.multi_reduction <add>, %238, %cst_239 [0] : vector<16x32xf32> to vector<32xf32>
    %240 = vector.shape_cast %239 : vector<32xf32> to vector<1x32xf32>
    %241 = arith.mulf %238, %238 : vector<16x32xf32>
    %cst_240 = arith.constant dense<0.000000e+00> : vector<32xf32>
    %242 = vector.multi_reduction <add>, %241, %cst_240 [0] : vector<16x32xf32> to vector<32xf32>
    %243 = vector.shape_cast %242 : vector<32xf32> to vector<1x32xf32>
    %244 = tpu.concatenate %240, %243 in 0 : vector<1x32xf32>, vector<1x32xf32> -> vector<2x32xf32>
    %c0_241 = arith.constant 0 : index
    %c0_242 = arith.constant 0 : index
    %c0_243 = arith.constant 0 : index
    %245 = vector.load %arg12[%c0_241, %c0_242, %c0_243] : memref<1x2x32xf32, #tpu.memory_space<vmem>>, vector<1x2x32xf32>
    %246 = vector.shape_cast %245 : vector<1x2x32xf32> to vector<2x32xf32>
    %247 = vector.shape_cast %244 : vector<2x32xf32> to vector<1x2x32xf32>
    tpu.vector_store %arg12[%c0_241, %c0_242, %c0_243], %247 {strides = array<i32>} : memref<1x2x32xf32, #tpu.memory_space<vmem>>, vector<1x2x32xf32>,
    return
  }
  func.func @transform_0(%arg0: i32) -> (i32, i32, i32, i32) {
    %c0_i32 = arith.constant 0 : i32
    %c0_i32_0 = arith.constant 0 : i32
    %c0_i32_1 = arith.constant 0 : i32
    %c0_i32_2 = arith.constant 0 : i32
    return %arg0, %c0_i32, %c0_i32_0, %c0_i32_1 : i32, i32, i32, i32
  }
  func.func @transform_1(%arg0: i32) -> (i32, i32, i32, i32) {
    %c0_i32 = arith.constant 0 : i32
    %c0_i32_0 = arith.constant 0 : i32
    %c0_i32_1 = arith.constant 0 : i32
    %c0_i32_2 = arith.constant 0 : i32
    return %arg0, %c0_i32, %c0_i32_0, %c0_i32_1 : i32, i32, i32, i32
  }
  func.func @transform_2(%arg0: i32) -> (i32, i32, i32, i32) {
    %c0_i32 = arith.constant 0 : i32
    %c0_i32_0 = arith.constant 0 : i32
    %c0_i32_1 = arith.constant 0 : i32
    %c0_i32_2 = arith.constant 0 : i32
    return %arg0, %c0_i32, %c0_i32_0, %c0_i32_1 : i32, i32, i32, i32
  }
  func.func @transform_3(%arg0: i32) -> (i32, i32, i32, i32) {
    %c0_i32 = arith.constant 0 : i32
    %c0_i32_0 = arith.constant 0 : i32
    %c0_i32_1 = arith.constant 0 : i32
    %c0_i32_2 = arith.constant 0 : i32
    return %arg0, %c0_i32, %c0_i32_0, %c0_i32_1 : i32, i32, i32, i32
  }
  func.func @transform_4(%arg0: i32) -> (i32, i32, i32, i32) {
    %c0_i32 = arith.constant 0 : i32
    %c0_i32_0 = arith.constant 0 : i32
    %c0_i32_1 = arith.constant 0 : i32
    %c0_i32_2 = arith.constant 0 : i32
    return %arg0, %c0_i32, %c0_i32_0, %c0_i32_1 : i32, i32, i32, i32
  }
  func.func @transform_5(%arg0: i32) -> (i32, i32, i32, i32) {
    %c0_i32 = arith.constant 0 : i32
    %c0_i32_0 = arith.constant 0 : i32
    %c0_i32_1 = arith.constant 0 : i32
    %c0_i32_2 = arith.constant 0 : i32
    return %arg0, %c0_i32, %c0_i32_0, %c0_i32_1 : i32, i32, i32, i32
  }
  func.func @transform_6(%arg0: i32) -> (i32, i32, i32, i32) {
    %c0_i32 = arith.constant 0 : i32
    %c0_i32_0 = arith.constant 0 : i32
    %c0_i32_1 = arith.constant 0 : i32
    %c0_i32_2 = arith.constant 0 : i32
    return %arg0, %c0_i32, %c0_i32_0, %c0_i32_1 : i32, i32, i32, i32
  }
  func.func @transform_7(%arg0: i32) -> (i32, i32, i32, i32) {
    %c0_i32 = arith.constant 0 : i32
    %c0_i32_0 = arith.constant 0 : i32
    %c0_i32_1 = arith.constant 0 : i32
    %c0_i32_2 = arith.constant 0 : i32
    return %arg0, %c0_i32, %c0_i32_0, %c0_i32_1 : i32, i32, i32, i32
  }
  func.func @transform_8(%arg0: i32) -> (i32, i32, i32) {
    %c0_i32 = arith.constant 0 : i32
    %c0_i32_0 = arith.constant 0 : i32
    %c0_i32_1 = arith.constant 0 : i32
    %c0_i32_2 = arith.constant 0 : i32
    return %c0_i32, %c0_i32_0, %c0_i32_1 : i32, i32, i32
  }
  func.func @transform_9(%arg0: i32) -> (i32, i32) {
    %c0_i32 = arith.constant 0 : i32
    %c0_i32_0 = arith.constant 0 : i32
    %c0_i32_1 = arith.constant 0 : i32
    return %c0_i32, %c0_i32_0 : i32, i32
  }
  func.func @transform_10(%arg0: i32) -> (i32, i32, i32) {
    %c0_i32 = arith.constant 0 : i32
    %c0_i32_0 = arith.constant 0 : i32
    %c0_i32_1 = arith.constant 0 : i32
    %c0_i32_2 = arith.constant 0 : i32
    return %c0_i32, %c0_i32_0, %c0_i32_1 : i32, i32, i32
  }
  func.func @transform_11(%arg0: i32) -> (i32, i32, i32) {
    %c0_i32 = arith.constant 0 : i32
    %c0_i32_0 = arith.constant 0 : i32
    %c0_i32_1 = arith.constant 0 : i32
    return %arg0, %c0_i32, %c0_i32_0 : i32, i32, i32
  }
}

module attributes {stable_mosaic.version = 11 : i64} {
  func.func @kernel(%arg0: i32, %arg1: memref<1x9x5x4xf32, #tpu.memory_space<vmem>>, %arg2: memref<1x9x5x4xf32, #tpu.memory_space<vmem>>, %arg3: memref<1x9x5x4xf32, #tpu.memory_space<vmem>>, %arg4: memref<1x9x5x4xf32, #tpu.memory_space<vmem>>, %arg5: memref<1x9x5x4xf32, #tpu.memory_space<vmem>>, %arg6: memref<1x9x5x4xf32, #tpu.memory_space<vmem>>, %arg7: memref<1x9x5x4xf32, #tpu.memory_space<vmem>>, %arg8: memref<1x9x5x4xf32, #tpu.memory_space<vmem>>, %arg9: memref<9x4x16xf32, #tpu.memory_space<vmem>>, %arg10: memref<2x16xf32, #tpu.memory_space<vmem>>, %arg11: memref<9x16x32xf32, #tpu.memory_space<vmem>>, %arg12: memref<2x32xf32, #tpu.memory_space<vmem>>, %arg13: memref<1x16x32xf32, #tpu.memory_space<vmem>>, %arg14: memref<4x4x32xf32, #tpu.memory_space<vmem>>) attributes {dimension_semantics = [#tpu.dimension_semantics<parallel>], iteration_bounds = array<i64: 2>, scalar_prefetch = 0 : i64, scratch_operands = 1 : i64, tpu.core_type = #tpu.core_type<tc>, window_params = [{transform_indices = @transform_0, window_bounds = array<i64: 1, 9, 5, 4>}, {transform_indices = @transform_1, window_bounds = array<i64: 1, 9, 5, 4>}, {transform_indices = @transform_2, window_bounds = array<i64: 1, 9, 5, 4>}, {transform_indices = @transform_3, window_bounds = array<i64: 1, 9, 5, 4>}, {transform_indices = @transform_4, window_bounds = array<i64: 1, 9, 5, 4>}, {transform_indices = @transform_5, window_bounds = array<i64: 1, 9, 5, 4>}, {transform_indices = @transform_6, window_bounds = array<i64: 1, 9, 5, 4>}, {transform_indices = @transform_7, window_bounds = array<i64: 1, 9, 5, 4>}, {pipeline_mode = #tpu.pipeline_mode<synchronous>, transform_indices = @transform_8, window_bounds = array<i64: 9, 4, 16>}, {pipeline_mode = #tpu.pipeline_mode<synchronous>, transform_indices = @transform_9, window_bounds = array<i64: 2, 16>}, {pipeline_mode = #tpu.pipeline_mode<synchronous>, transform_indices = @transform_10, window_bounds = array<i64: 9, 16, 32>}, {pipeline_mode = #tpu.pipeline_mode<synchronous>, transform_indices = @transform_11, window_bounds = array<i64: 2, 32>}, {transform_indices = @transform_12, window_bounds = array<i64: 1, 16, 32>}]} {
    %c0 = arith.constant 0 : index
    %c0_0 = arith.constant 0 : index
    %c0_1 = arith.constant 0 : index
    %c0_2 = arith.constant 0 : index
    %0 = vector.load %arg1[%c0, %c0_0, %c0_1, %c0_2] : memref<1x9x5x4xf32, #tpu.memory_space<vmem>>, vector<1x8x4x4xf32>
    %1 = vector.shape_cast %0 : vector<1x8x4x4xf32> to vector<8x4x4xf32>
    %2 = vector.shape_cast %1 : vector<8x4x4xf32> to vector<32x4xf32>
    %c0_3 = arith.constant 0 : index
    %c0_4 = arith.constant 0 : index
    %c0_5 = arith.constant 0 : index
    %3 = vector.load %arg9[%c0_3, %c0_4, %c0_5] : memref<9x4x16xf32, #tpu.memory_space<vmem>>, vector<1x4x16xf32>
    %4 = vector.shape_cast %3 : vector<1x4x16xf32> to vector<4x16xf32>
    %cst = arith.constant dense<0.000000e+00> : vector<32x16xf32>
    %5 = tpu.matmul %2, %4, %cst {dimension_numbers = #tpu.dot_dimension_numbers<[1], [0], [0], [1], [0, 0, 1, 1], [], []>} : vector<32x4xf32>, vector<4x16xf32>, vector<32x16xf32> -> vector<32x16xf32>
    %c0_6 = arith.constant 0 : index
    %c0_7 = arith.constant 0 : index
    %c0_8 = arith.constant 0 : index
    %c0_9 = arith.constant 0 : index
    %6 = vector.load %arg2[%c0_6, %c0_7, %c0_8, %c0_9] : memref<1x9x5x4xf32, #tpu.memory_space<vmem>>, vector<1x8x4x4xf32>
    %7 = vector.shape_cast %6 : vector<1x8x4x4xf32> to vector<8x4x4xf32>
    %8 = vector.shape_cast %7 : vector<8x4x4xf32> to vector<32x4xf32>
    %c1 = arith.constant 1 : index
    %c0_10 = arith.constant 0 : index
    %c0_11 = arith.constant 0 : index
    %9 = vector.load %arg9[%c1, %c0_10, %c0_11] : memref<9x4x16xf32, #tpu.memory_space<vmem>>, vector<1x4x16xf32>
    %10 = vector.shape_cast %9 : vector<1x4x16xf32> to vector<4x16xf32>
    %cst_12 = arith.constant dense<0.000000e+00> : vector<32x16xf32>
    %11 = tpu.matmul %8, %10, %cst_12 {dimension_numbers = #tpu.dot_dimension_numbers<[1], [0], [0], [1], [0, 0, 1, 1], [], []>} : vector<32x4xf32>, vector<4x16xf32>, vector<32x16xf32> -> vector<32x16xf32>
    %12 = arith.addf %5, %11 : vector<32x16xf32>
    %c0_13 = arith.constant 0 : index
    %c0_14 = arith.constant 0 : index
    %c0_15 = arith.constant 0 : index
    %c0_16 = arith.constant 0 : index
    %13 = vector.load %arg3[%c0_13, %c0_14, %c0_15, %c0_16] : memref<1x9x5x4xf32, #tpu.memory_space<vmem>>, vector<1x8x4x4xf32>
    %14 = vector.shape_cast %13 : vector<1x8x4x4xf32> to vector<8x4x4xf32>
    %15 = vector.shape_cast %14 : vector<8x4x4xf32> to vector<32x4xf32>
    %c2 = arith.constant 2 : index
    %c0_17 = arith.constant 0 : index
    %c0_18 = arith.constant 0 : index
    %16 = vector.load %arg9[%c2, %c0_17, %c0_18] : memref<9x4x16xf32, #tpu.memory_space<vmem>>, vector<1x4x16xf32>
    %17 = vector.shape_cast %16 : vector<1x4x16xf32> to vector<4x16xf32>
    %cst_19 = arith.constant dense<0.000000e+00> : vector<32x16xf32>
    %18 = tpu.matmul %15, %17, %cst_19 {dimension_numbers = #tpu.dot_dimension_numbers<[1], [0], [0], [1], [0, 0, 1, 1], [], []>} : vector<32x4xf32>, vector<4x16xf32>, vector<32x16xf32> -> vector<32x16xf32>
    %19 = arith.addf %12, %18 : vector<32x16xf32>
    %c0_20 = arith.constant 0 : index
    %c0_21 = arith.constant 0 : index
    %c0_22 = arith.constant 0 : index
    %c0_23 = arith.constant 0 : index
    %20 = vector.load %arg5[%c0_20, %c0_21, %c0_22, %c0_23] : memref<1x9x5x4xf32, #tpu.memory_space<vmem>>, vector<1x8x4x4xf32>
    %21 = vector.shape_cast %20 : vector<1x8x4x4xf32> to vector<8x4x4xf32>
    %22 = vector.shape_cast %21 : vector<8x4x4xf32> to vector<32x4xf32>
    %c3 = arith.constant 3 : index
    %c0_24 = arith.constant 0 : index
    %c0_25 = arith.constant 0 : index
    %23 = vector.load %arg9[%c3, %c0_24, %c0_25] : memref<9x4x16xf32, #tpu.memory_space<vmem>>, vector<1x4x16xf32>
    %24 = vector.shape_cast %23 : vector<1x4x16xf32> to vector<4x16xf32>
    %cst_26 = arith.constant dense<0.000000e+00> : vector<32x16xf32>
    %25 = tpu.matmul %22, %24, %cst_26 {dimension_numbers = #tpu.dot_dimension_numbers<[1], [0], [0], [1], [0, 0, 1, 1], [], []>} : vector<32x4xf32>, vector<4x16xf32>, vector<32x16xf32> -> vector<32x16xf32>
    %26 = arith.addf %19, %25 : vector<32x16xf32>
    %c0_27 = arith.constant 0 : index
    %c0_28 = arith.constant 0 : index
    %c0_29 = arith.constant 0 : index
    %c0_30 = arith.constant 0 : index
    %27 = vector.load %arg6[%c0_27, %c0_28, %c0_29, %c0_30] : memref<1x9x5x4xf32, #tpu.memory_space<vmem>>, vector<1x8x4x4xf32>
    %28 = vector.shape_cast %27 : vector<1x8x4x4xf32> to vector<8x4x4xf32>
    %29 = vector.shape_cast %28 : vector<8x4x4xf32> to vector<32x4xf32>
    %c4 = arith.constant 4 : index
    %c0_31 = arith.constant 0 : index
    %c0_32 = arith.constant 0 : index
    %30 = vector.load %arg9[%c4, %c0_31, %c0_32] : memref<9x4x16xf32, #tpu.memory_space<vmem>>, vector<1x4x16xf32>
    %31 = vector.shape_cast %30 : vector<1x4x16xf32> to vector<4x16xf32>
    %cst_33 = arith.constant dense<0.000000e+00> : vector<32x16xf32>
    %32 = tpu.matmul %29, %31, %cst_33 {dimension_numbers = #tpu.dot_dimension_numbers<[1], [0], [0], [1], [0, 0, 1, 1], [], []>} : vector<32x4xf32>, vector<4x16xf32>, vector<32x16xf32> -> vector<32x16xf32>
    %33 = arith.addf %26, %32 : vector<32x16xf32>
    %c0_34 = arith.constant 0 : index
    %c0_35 = arith.constant 0 : index
    %c0_36 = arith.constant 0 : index
    %c0_37 = arith.constant 0 : index
    %34 = vector.load %arg7[%c0_34, %c0_35, %c0_36, %c0_37] : memref<1x9x5x4xf32, #tpu.memory_space<vmem>>, vector<1x8x4x4xf32>
    %35 = vector.shape_cast %34 : vector<1x8x4x4xf32> to vector<8x4x4xf32>
    %36 = vector.shape_cast %35 : vector<8x4x4xf32> to vector<32x4xf32>
    %c5 = arith.constant 5 : index
    %c0_38 = arith.constant 0 : index
    %c0_39 = arith.constant 0 : index
    %37 = vector.load %arg9[%c5, %c0_38, %c0_39] : memref<9x4x16xf32, #tpu.memory_space<vmem>>, vector<1x4x16xf32>
    %38 = vector.shape_cast %37 : vector<1x4x16xf32> to vector<4x16xf32>
    %cst_40 = arith.constant dense<0.000000e+00> : vector<32x16xf32>
    %39 = tpu.matmul %36, %38, %cst_40 {dimension_numbers = #tpu.dot_dimension_numbers<[1], [0], [0], [1], [0, 0, 1, 1], [], []>} : vector<32x4xf32>, vector<4x16xf32>, vector<32x16xf32> -> vector<32x16xf32>
    %40 = arith.addf %33, %39 : vector<32x16xf32>
    %c0_41 = arith.constant 0 : index
    %c1_42 = arith.constant 1 : index
    %c0_43 = arith.constant 0 : index
    %c0_44 = arith.constant 0 : index
    %41 = vector.load %arg1[%c0_41, %c1_42, %c0_43, %c0_44] : memref<1x9x5x4xf32, #tpu.memory_space<vmem>>, vector<1x8x4x4xf32>
    %42 = vector.shape_cast %41 : vector<1x8x4x4xf32> to vector<8x4x4xf32>
    %43 = vector.shape_cast %42 : vector<8x4x4xf32> to vector<32x4xf32>
    %c6 = arith.constant 6 : index
    %c0_45 = arith.constant 0 : index
    %c0_46 = arith.constant 0 : index
    %44 = vector.load %arg9[%c6, %c0_45, %c0_46] : memref<9x4x16xf32, #tpu.memory_space<vmem>>, vector<1x4x16xf32>
    %45 = vector.shape_cast %44 : vector<1x4x16xf32> to vector<4x16xf32>
    %cst_47 = arith.constant dense<0.000000e+00> : vector<32x16xf32>
    %46 = tpu.matmul %43, %45, %cst_47 {dimension_numbers = #tpu.dot_dimension_numbers<[1], [0], [0], [1], [0, 0, 1, 1], [], []>} : vector<32x4xf32>, vector<4x16xf32>, vector<32x16xf32> -> vector<32x16xf32>
    %47 = arith.addf %40, %46 : vector<32x16xf32>
    %c0_48 = arith.constant 0 : index
    %c1_49 = arith.constant 1 : index
    %c0_50 = arith.constant 0 : index
    %c0_51 = arith.constant 0 : index
    %48 = vector.load %arg2[%c0_48, %c1_49, %c0_50, %c0_51] : memref<1x9x5x4xf32, #tpu.memory_space<vmem>>, vector<1x8x4x4xf32>
    %49 = vector.shape_cast %48 : vector<1x8x4x4xf32> to vector<8x4x4xf32>
    %50 = vector.shape_cast %49 : vector<8x4x4xf32> to vector<32x4xf32>
    %c7 = arith.constant 7 : index
    %c0_52 = arith.constant 0 : index
    %c0_53 = arith.constant 0 : index
    %51 = vector.load %arg9[%c7, %c0_52, %c0_53] : memref<9x4x16xf32, #tpu.memory_space<vmem>>, vector<1x4x16xf32>
    %52 = vector.shape_cast %51 : vector<1x4x16xf32> to vector<4x16xf32>
    %cst_54 = arith.constant dense<0.000000e+00> : vector<32x16xf32>
    %53 = tpu.matmul %50, %52, %cst_54 {dimension_numbers = #tpu.dot_dimension_numbers<[1], [0], [0], [1], [0, 0, 1, 1], [], []>} : vector<32x4xf32>, vector<4x16xf32>, vector<32x16xf32> -> vector<32x16xf32>
    %54 = arith.addf %47, %53 : vector<32x16xf32>
    %c0_55 = arith.constant 0 : index
    %c1_56 = arith.constant 1 : index
    %c0_57 = arith.constant 0 : index
    %c0_58 = arith.constant 0 : index
    %55 = vector.load %arg3[%c0_55, %c1_56, %c0_57, %c0_58] : memref<1x9x5x4xf32, #tpu.memory_space<vmem>>, vector<1x8x4x4xf32>
    %56 = vector.shape_cast %55 : vector<1x8x4x4xf32> to vector<8x4x4xf32>
    %57 = vector.shape_cast %56 : vector<8x4x4xf32> to vector<32x4xf32>
    %c8 = arith.constant 8 : index
    %c0_59 = arith.constant 0 : index
    %c0_60 = arith.constant 0 : index
    %58 = vector.load %arg9[%c8, %c0_59, %c0_60] : memref<9x4x16xf32, #tpu.memory_space<vmem>>, vector<1x4x16xf32>
    %59 = vector.shape_cast %58 : vector<1x4x16xf32> to vector<4x16xf32>
    %cst_61 = arith.constant dense<0.000000e+00> : vector<32x16xf32>
    %60 = tpu.matmul %57, %59, %cst_61 {dimension_numbers = #tpu.dot_dimension_numbers<[1], [0], [0], [1], [0, 0, 1, 1], [], []>} : vector<32x4xf32>, vector<4x16xf32>, vector<32x16xf32> -> vector<32x16xf32>
    %61 = arith.addf %54, %60 : vector<32x16xf32>
    %c0_62 = arith.constant 0 : index
    %c0_63 = arith.constant 0 : index
    %c0_64 = arith.constant 0 : index
    %c0_65 = arith.constant 0 : index
    %62 = vector.load %arg3[%c0_62, %c0_63, %c0_64, %c0_65] : memref<1x9x5x4xf32, #tpu.memory_space<vmem>>, vector<1x8x4x4xf32>
    %63 = vector.shape_cast %62 : vector<1x8x4x4xf32> to vector<8x4x4xf32>
    %64 = vector.shape_cast %63 : vector<8x4x4xf32> to vector<32x4xf32>
    %c0_66 = arith.constant 0 : index
    %c0_67 = arith.constant 0 : index
    %c0_68 = arith.constant 0 : index
    %65 = vector.load %arg9[%c0_66, %c0_67, %c0_68] : memref<9x4x16xf32, #tpu.memory_space<vmem>>, vector<1x4x16xf32>
    %66 = vector.shape_cast %65 : vector<1x4x16xf32> to vector<4x16xf32>
    %cst_69 = arith.constant dense<0.000000e+00> : vector<32x16xf32>
    %67 = tpu.matmul %64, %66, %cst_69 {dimension_numbers = #tpu.dot_dimension_numbers<[1], [0], [0], [1], [0, 0, 1, 1], [], []>} : vector<32x4xf32>, vector<4x16xf32>, vector<32x16xf32> -> vector<32x16xf32>
    %c0_70 = arith.constant 0 : index
    %c0_71 = arith.constant 0 : index
    %c0_72 = arith.constant 0 : index
    %c0_73 = arith.constant 0 : index
    %68 = vector.load %arg4[%c0_70, %c0_71, %c0_72, %c0_73] : memref<1x9x5x4xf32, #tpu.memory_space<vmem>>, vector<1x8x4x4xf32>
    %69 = vector.shape_cast %68 : vector<1x8x4x4xf32> to vector<8x4x4xf32>
    %70 = vector.shape_cast %69 : vector<8x4x4xf32> to vector<32x4xf32>
    %c1_74 = arith.constant 1 : index
    %c0_75 = arith.constant 0 : index
    %c0_76 = arith.constant 0 : index
    %71 = vector.load %arg9[%c1_74, %c0_75, %c0_76] : memref<9x4x16xf32, #tpu.memory_space<vmem>>, vector<1x4x16xf32>
    %72 = vector.shape_cast %71 : vector<1x4x16xf32> to vector<4x16xf32>
    %cst_77 = arith.constant dense<0.000000e+00> : vector<32x16xf32>
    %73 = tpu.matmul %70, %72, %cst_77 {dimension_numbers = #tpu.dot_dimension_numbers<[1], [0], [0], [1], [0, 0, 1, 1], [], []>} : vector<32x4xf32>, vector<4x16xf32>, vector<32x16xf32> -> vector<32x16xf32>
    %74 = arith.addf %67, %73 : vector<32x16xf32>
    %c0_78 = arith.constant 0 : index
    %c0_79 = arith.constant 0 : index
    %c1_80 = arith.constant 1 : index
    %c0_81 = arith.constant 0 : index
    %75 = vector.load %arg1[%c0_78, %c0_79, %c1_80, %c0_81] : memref<1x9x5x4xf32, #tpu.memory_space<vmem>>, vector<1x8x4x4xf32>
    %76 = vector.shape_cast %75 : vector<1x8x4x4xf32> to vector<8x4x4xf32>
    %77 = vector.shape_cast %76 : vector<8x4x4xf32> to vector<32x4xf32>
    %c2_82 = arith.constant 2 : index
    %c0_83 = arith.constant 0 : index
    %c0_84 = arith.constant 0 : index
    %78 = vector.load %arg9[%c2_82, %c0_83, %c0_84] : memref<9x4x16xf32, #tpu.memory_space<vmem>>, vector<1x4x16xf32>
    %79 = vector.shape_cast %78 : vector<1x4x16xf32> to vector<4x16xf32>
    %cst_85 = arith.constant dense<0.000000e+00> : vector<32x16xf32>
    %80 = tpu.matmul %77, %79, %cst_85 {dimension_numbers = #tpu.dot_dimension_numbers<[1], [0], [0], [1], [0, 0, 1, 1], [], []>} : vector<32x4xf32>, vector<4x16xf32>, vector<32x16xf32> -> vector<32x16xf32>
    %81 = arith.addf %74, %80 : vector<32x16xf32>
    %c0_86 = arith.constant 0 : index
    %c0_87 = arith.constant 0 : index
    %c0_88 = arith.constant 0 : index
    %c0_89 = arith.constant 0 : index
    %82 = vector.load %arg7[%c0_86, %c0_87, %c0_88, %c0_89] : memref<1x9x5x4xf32, #tpu.memory_space<vmem>>, vector<1x8x4x4xf32>
    %83 = vector.shape_cast %82 : vector<1x8x4x4xf32> to vector<8x4x4xf32>
    %84 = vector.shape_cast %83 : vector<8x4x4xf32> to vector<32x4xf32>
    %c3_90 = arith.constant 3 : index
    %c0_91 = arith.constant 0 : index
    %c0_92 = arith.constant 0 : index
    %85 = vector.load %arg9[%c3_90, %c0_91, %c0_92] : memref<9x4x16xf32, #tpu.memory_space<vmem>>, vector<1x4x16xf32>
    %86 = vector.shape_cast %85 : vector<1x4x16xf32> to vector<4x16xf32>
    %cst_93 = arith.constant dense<0.000000e+00> : vector<32x16xf32>
    %87 = tpu.matmul %84, %86, %cst_93 {dimension_numbers = #tpu.dot_dimension_numbers<[1], [0], [0], [1], [0, 0, 1, 1], [], []>} : vector<32x4xf32>, vector<4x16xf32>, vector<32x16xf32> -> vector<32x16xf32>
    %88 = arith.addf %81, %87 : vector<32x16xf32>
    %c0_94 = arith.constant 0 : index
    %c0_95 = arith.constant 0 : index
    %c0_96 = arith.constant 0 : index
    %c0_97 = arith.constant 0 : index
    %89 = vector.load %arg8[%c0_94, %c0_95, %c0_96, %c0_97] : memref<1x9x5x4xf32, #tpu.memory_space<vmem>>, vector<1x8x4x4xf32>
    %90 = vector.shape_cast %89 : vector<1x8x4x4xf32> to vector<8x4x4xf32>
    %91 = vector.shape_cast %90 : vector<8x4x4xf32> to vector<32x4xf32>
    %c4_98 = arith.constant 4 : index
    %c0_99 = arith.constant 0 : index
    %c0_100 = arith.constant 0 : index
    %92 = vector.load %arg9[%c4_98, %c0_99, %c0_100] : memref<9x4x16xf32, #tpu.memory_space<vmem>>, vector<1x4x16xf32>
    %93 = vector.shape_cast %92 : vector<1x4x16xf32> to vector<4x16xf32>
    %cst_101 = arith.constant dense<0.000000e+00> : vector<32x16xf32>
    %94 = tpu.matmul %91, %93, %cst_101 {dimension_numbers = #tpu.dot_dimension_numbers<[1], [0], [0], [1], [0, 0, 1, 1], [], []>} : vector<32x4xf32>, vector<4x16xf32>, vector<32x16xf32> -> vector<32x16xf32>
    %95 = arith.addf %88, %94 : vector<32x16xf32>
    %c0_102 = arith.constant 0 : index
    %c0_103 = arith.constant 0 : index
    %c1_104 = arith.constant 1 : index
    %c0_105 = arith.constant 0 : index
    %96 = vector.load %arg5[%c0_102, %c0_103, %c1_104, %c0_105] : memref<1x9x5x4xf32, #tpu.memory_space<vmem>>, vector<1x8x4x4xf32>
    %97 = vector.shape_cast %96 : vector<1x8x4x4xf32> to vector<8x4x4xf32>
    %98 = vector.shape_cast %97 : vector<8x4x4xf32> to vector<32x4xf32>
    %c5_106 = arith.constant 5 : index
    %c0_107 = arith.constant 0 : index
    %c0_108 = arith.constant 0 : index
    %99 = vector.load %arg9[%c5_106, %c0_107, %c0_108] : memref<9x4x16xf32, #tpu.memory_space<vmem>>, vector<1x4x16xf32>
    %100 = vector.shape_cast %99 : vector<1x4x16xf32> to vector<4x16xf32>
    %cst_109 = arith.constant dense<0.000000e+00> : vector<32x16xf32>
    %101 = tpu.matmul %98, %100, %cst_109 {dimension_numbers = #tpu.dot_dimension_numbers<[1], [0], [0], [1], [0, 0, 1, 1], [], []>} : vector<32x4xf32>, vector<4x16xf32>, vector<32x16xf32> -> vector<32x16xf32>
    %102 = arith.addf %95, %101 : vector<32x16xf32>
    %c0_110 = arith.constant 0 : index
    %c1_111 = arith.constant 1 : index
    %c0_112 = arith.constant 0 : index
    %c0_113 = arith.constant 0 : index
    %103 = vector.load %arg3[%c0_110, %c1_111, %c0_112, %c0_113] : memref<1x9x5x4xf32, #tpu.memory_space<vmem>>, vector<1x8x4x4xf32>
    %104 = vector.shape_cast %103 : vector<1x8x4x4xf32> to vector<8x4x4xf32>
    %105 = vector.shape_cast %104 : vector<8x4x4xf32> to vector<32x4xf32>
    %c6_114 = arith.constant 6 : index
    %c0_115 = arith.constant 0 : index
    %c0_116 = arith.constant 0 : index
    %106 = vector.load %arg9[%c6_114, %c0_115, %c0_116] : memref<9x4x16xf32, #tpu.memory_space<vmem>>, vector<1x4x16xf32>
    %107 = vector.shape_cast %106 : vector<1x4x16xf32> to vector<4x16xf32>
    %cst_117 = arith.constant dense<0.000000e+00> : vector<32x16xf32>
    %108 = tpu.matmul %105, %107, %cst_117 {dimension_numbers = #tpu.dot_dimension_numbers<[1], [0], [0], [1], [0, 0, 1, 1], [], []>} : vector<32x4xf32>, vector<4x16xf32>, vector<32x16xf32> -> vector<32x16xf32>
    %109 = arith.addf %102, %108 : vector<32x16xf32>
    %c0_118 = arith.constant 0 : index
    %c1_119 = arith.constant 1 : index
    %c0_120 = arith.constant 0 : index
    %c0_121 = arith.constant 0 : index
    %110 = vector.load %arg4[%c0_118, %c1_119, %c0_120, %c0_121] : memref<1x9x5x4xf32, #tpu.memory_space<vmem>>, vector<1x8x4x4xf32>
    %111 = vector.shape_cast %110 : vector<1x8x4x4xf32> to vector<8x4x4xf32>
    %112 = vector.shape_cast %111 : vector<8x4x4xf32> to vector<32x4xf32>
    %c7_122 = arith.constant 7 : index
    %c0_123 = arith.constant 0 : index
    %c0_124 = arith.constant 0 : index
    %113 = vector.load %arg9[%c7_122, %c0_123, %c0_124] : memref<9x4x16xf32, #tpu.memory_space<vmem>>, vector<1x4x16xf32>
    %114 = vector.shape_cast %113 : vector<1x4x16xf32> to vector<4x16xf32>
    %cst_125 = arith.constant dense<0.000000e+00> : vector<32x16xf32>
    %115 = tpu.matmul %112, %114, %cst_125 {dimension_numbers = #tpu.dot_dimension_numbers<[1], [0], [0], [1], [0, 0, 1, 1], [], []>} : vector<32x4xf32>, vector<4x16xf32>, vector<32x16xf32> -> vector<32x16xf32>
    %116 = arith.addf %109, %115 : vector<32x16xf32>
    %c0_126 = arith.constant 0 : index
    %c1_127 = arith.constant 1 : index
    %c1_128 = arith.constant 1 : index
    %c0_129 = arith.constant 0 : index
    %117 = vector.load %arg1[%c0_126, %c1_127, %c1_128, %c0_129] : memref<1x9x5x4xf32, #tpu.memory_space<vmem>>, vector<1x8x4x4xf32>
    %118 = vector.shape_cast %117 : vector<1x8x4x4xf32> to vector<8x4x4xf32>
    %119 = vector.shape_cast %118 : vector<8x4x4xf32> to vector<32x4xf32>
    %c8_130 = arith.constant 8 : index
    %c0_131 = arith.constant 0 : index
    %c0_132 = arith.constant 0 : index
    %120 = vector.load %arg9[%c8_130, %c0_131, %c0_132] : memref<9x4x16xf32, #tpu.memory_space<vmem>>, vector<1x4x16xf32>
    %121 = vector.shape_cast %120 : vector<1x4x16xf32> to vector<4x16xf32>
    %cst_133 = arith.constant dense<0.000000e+00> : vector<32x16xf32>
    %122 = tpu.matmul %119, %121, %cst_133 {dimension_numbers = #tpu.dot_dimension_numbers<[1], [0], [0], [1], [0, 0, 1, 1], [], []>} : vector<32x4xf32>, vector<4x16xf32>, vector<32x16xf32> -> vector<32x16xf32>
    %123 = arith.addf %116, %122 : vector<32x16xf32>
    %c0_134 = arith.constant 0 : index
    %c0_135 = arith.constant 0 : index
    %124 = vector.load %arg10[%c0_134, %c0_135] : memref<2x16xf32, #tpu.memory_space<vmem>>, vector<2x16xf32>
    %125 = vector.extract_strided_slice %124 {offsets = [0, 0], sizes = [1, 16], strides = [1, 1]} : vector<2x16xf32> to vector<1x16xf32>
    %126 = vector.broadcast %125 : vector<1x16xf32> to vector<32x16xf32>
    %127 = arith.mulf %61, %126 : vector<32x16xf32>
    %128 = vector.extract_strided_slice %124 {offsets = [1, 0], sizes = [1, 16], strides = [1, 1]} : vector<2x16xf32> to vector<1x16xf32>
    %129 = vector.broadcast %128 : vector<1x16xf32> to vector<32x16xf32>
    %130 = arith.addf %127, %129 : vector<32x16xf32>
    %cst_136 = arith.constant 5.000000e-01 : f32
    %131 = vector.broadcast %cst_136 : f32 to vector<32x16xf32>
    %132 = arith.mulf %131, %130 : vector<32x16xf32>
    %cst_137 = arith.constant 0.707106769 : f32
    %133 = vector.broadcast %cst_137 : f32 to vector<32x16xf32>
    %134 = arith.mulf %130, %133 : vector<32x16xf32>
    %135 = math.erf %134 : vector<32x16xf32>
    %cst_138 = arith.constant 1.000000e+00 : f32
    %136 = vector.broadcast %cst_138 : f32 to vector<32x16xf32>
    %137 = arith.addf %136, %135 : vector<32x16xf32>
    %138 = arith.mulf %132, %137 : vector<32x16xf32>
    %139 = vector.extract_strided_slice %124 {offsets = [0, 0], sizes = [1, 16], strides = [1, 1]} : vector<2x16xf32> to vector<1x16xf32>
    %140 = vector.broadcast %139 : vector<1x16xf32> to vector<32x16xf32>
    %141 = arith.mulf %123, %140 : vector<32x16xf32>
    %142 = vector.extract_strided_slice %124 {offsets = [1, 0], sizes = [1, 16], strides = [1, 1]} : vector<2x16xf32> to vector<1x16xf32>
    %143 = vector.broadcast %142 : vector<1x16xf32> to vector<32x16xf32>
    %144 = arith.addf %141, %143 : vector<32x16xf32>
    %cst_139 = arith.constant 5.000000e-01 : f32
    %145 = vector.broadcast %cst_139 : f32 to vector<32x16xf32>
    %146 = arith.mulf %145, %144 : vector<32x16xf32>
    %cst_140 = arith.constant 0.707106769 : f32
    %147 = vector.broadcast %cst_140 : f32 to vector<32x16xf32>
    %148 = arith.mulf %144, %147 : vector<32x16xf32>
    %149 = math.erf %148 : vector<32x16xf32>
    %cst_141 = arith.constant 1.000000e+00 : f32
    %150 = vector.broadcast %cst_141 : f32 to vector<32x16xf32>
    %151 = arith.addf %150, %149 : vector<32x16xf32>
    %152 = arith.mulf %146, %151 : vector<32x16xf32>
    %153 = vector.shape_cast %138 : vector<32x16xf32> to vector<4x2x4x16xf32>
    %154 = vector.extract_strided_slice %153 {offsets = [0, 0, 0, 0], sizes = [4, 1, 4, 16], strides = [1, 1, 1, 1]} : vector<4x2x4x16xf32> to vector<4x1x4x16xf32>
    %155 = vector.shape_cast %154 : vector<4x1x4x16xf32> to vector<4x4x16xf32>
    %156 = vector.extract_strided_slice %153 {offsets = [0, 1, 0, 0], sizes = [4, 1, 4, 16], strides = [1, 1, 1, 1]} : vector<4x2x4x16xf32> to vector<4x1x4x16xf32>
    %157 = vector.shape_cast %156 : vector<4x1x4x16xf32> to vector<4x4x16xf32>
    %158 = vector.shape_cast %152 : vector<32x16xf32> to vector<4x2x4x16xf32>
    %159 = vector.extract_strided_slice %158 {offsets = [0, 0, 0, 0], sizes = [4, 1, 4, 16], strides = [1, 1, 1, 1]} : vector<4x2x4x16xf32> to vector<4x1x4x16xf32>
    %160 = vector.shape_cast %159 : vector<4x1x4x16xf32> to vector<4x4x16xf32>
    %161 = vector.extract_strided_slice %158 {offsets = [0, 1, 0, 0], sizes = [4, 1, 4, 16], strides = [1, 1, 1, 1]} : vector<4x2x4x16xf32> to vector<4x1x4x16xf32>
    %162 = vector.shape_cast %161 : vector<4x1x4x16xf32> to vector<4x4x16xf32>
    %163 = vector.shape_cast %155 : vector<4x4x16xf32> to vector<16x16xf32>
    %164 = vector.shape_cast %160 : vector<4x4x16xf32> to vector<16x16xf32>
    %165 = vector.shape_cast %157 : vector<4x4x16xf32> to vector<16x16xf32>
    %166 = vector.shape_cast %162 : vector<4x4x16xf32> to vector<16x16xf32>
    %cst_142 = arith.constant 0.000000e+00 : f32
    %167 = vector.broadcast %cst_142 : f32 to vector<4x4x32xf32>
    %c0_143 = arith.constant 0 : index
    %c0_144 = arith.constant 0 : index
    %c0_145 = arith.constant 0 : index
    %168 = vector.load %arg14[%c0_143, %c0_144, %c0_145] : memref<4x4x32xf32, #tpu.memory_space<vmem>>, vector<4x4x32xf32>
    tpu.vector_store %arg14[%c0_143, %c0_144, %c0_145], %167 {strides = array<i32>} : memref<4x4x32xf32, #tpu.memory_space<vmem>>, vector<4x4x32xf32>,
    %c0_146 = arith.constant 0 : index
    %c0_147 = arith.constant 0 : index
    %c0_148 = arith.constant 0 : index
    %169 = vector.load %arg11[%c0_146, %c0_147, %c0_148] : memref<9x16x32xf32, #tpu.memory_space<vmem>>, vector<1x16x32xf32>
    %170 = vector.shape_cast %169 : vector<1x16x32xf32> to vector<16x32xf32>
    %cst_149 = arith.constant dense<0.000000e+00> : vector<16x32xf32>
    %171 = tpu.matmul %166, %170, %cst_149 {dimension_numbers = #tpu.dot_dimension_numbers<[1], [0], [0], [1], [0, 0, 1, 1], [], []>} : vector<16x16xf32>, vector<16x32xf32>, vector<16x32xf32> -> vector<16x32xf32>
    %172 = vector.shape_cast %171 : vector<16x32xf32> to vector<4x4x32xf32>
    %c1_150 = arith.constant 1 : index
    %c1_151 = arith.constant 1 : index
    %c0_152 = arith.constant 0 : index
    %173 = vector.load %arg14[%c1_150, %c1_151, %c0_152] : memref<4x4x32xf32, #tpu.memory_space<vmem>>, vector<3x3x32xf32>
    %174 = vector.extract_strided_slice %172 {offsets = [0, 0, 0], sizes = [3, 3, 32], strides = [1, 1, 1]} : vector<4x4x32xf32> to vector<3x3x32xf32>
    %175 = arith.addf %173, %174 : vector<3x3x32xf32>
    %c1_153 = arith.constant 1 : index
    %c1_154 = arith.constant 1 : index
    %c0_155 = arith.constant 0 : index
    %176 = vector.load %arg14[%c1_153, %c1_154, %c0_155] : memref<4x4x32xf32, #tpu.memory_space<vmem>>, vector<3x3x32xf32>
    tpu.vector_store %arg14[%c1_153, %c1_154, %c0_155], %175 {strides = array<i32>} : memref<4x4x32xf32, #tpu.memory_space<vmem>>, vector<3x3x32xf32>,
    %c1_156 = arith.constant 1 : index
    %c0_157 = arith.constant 0 : index
    %c0_158 = arith.constant 0 : index
    %177 = vector.load %arg11[%c1_156, %c0_157, %c0_158] : memref<9x16x32xf32, #tpu.memory_space<vmem>>, vector<1x16x32xf32>
    %178 = vector.shape_cast %177 : vector<1x16x32xf32> to vector<16x32xf32>
    %cst_159 = arith.constant dense<0.000000e+00> : vector<16x32xf32>
    %179 = tpu.matmul %165, %178, %cst_159 {dimension_numbers = #tpu.dot_dimension_numbers<[1], [0], [0], [1], [0, 0, 1, 1], [], []>} : vector<16x16xf32>, vector<16x32xf32>, vector<16x32xf32> -> vector<16x32xf32>
    %180 = vector.shape_cast %179 : vector<16x32xf32> to vector<4x4x32xf32>
    %c1_160 = arith.constant 1 : index
    %c0_161 = arith.constant 0 : index
    %c0_162 = arith.constant 0 : index
    %181 = vector.load %arg14[%c1_160, %c0_161, %c0_162] : memref<4x4x32xf32, #tpu.memory_space<vmem>>, vector<3x4x32xf32>
    %182 = vector.extract_strided_slice %180 {offsets = [0, 0, 0], sizes = [3, 4, 32], strides = [1, 1, 1]} : vector<4x4x32xf32> to vector<3x4x32xf32>
    %183 = arith.addf %181, %182 : vector<3x4x32xf32>
    %c1_163 = arith.constant 1 : index
    %c0_164 = arith.constant 0 : index
    %c0_165 = arith.constant 0 : index
    %184 = vector.load %arg14[%c1_163, %c0_164, %c0_165] : memref<4x4x32xf32, #tpu.memory_space<vmem>>, vector<3x4x32xf32>
    tpu.vector_store %arg14[%c1_163, %c0_164, %c0_165], %183 {strides = array<i32>} : memref<4x4x32xf32, #tpu.memory_space<vmem>>, vector<3x4x32xf32>,
    %c2_166 = arith.constant 2 : index
    %c0_167 = arith.constant 0 : index
    %c0_168 = arith.constant 0 : index
    %185 = vector.load %arg11[%c2_166, %c0_167, %c0_168] : memref<9x16x32xf32, #tpu.memory_space<vmem>>, vector<1x16x32xf32>
    %186 = vector.shape_cast %185 : vector<1x16x32xf32> to vector<16x32xf32>
    %cst_169 = arith.constant dense<0.000000e+00> : vector<16x32xf32>
    %187 = tpu.matmul %166, %186, %cst_169 {dimension_numbers = #tpu.dot_dimension_numbers<[1], [0], [0], [1], [0, 0, 1, 1], [], []>} : vector<16x16xf32>, vector<16x32xf32>, vector<16x32xf32> -> vector<16x32xf32>
    %188 = vector.shape_cast %187 : vector<16x32xf32> to vector<4x4x32xf32>
    %c1_170 = arith.constant 1 : index
    %c0_171 = arith.constant 0 : index
    %c0_172 = arith.constant 0 : index
    %189 = vector.load %arg14[%c1_170, %c0_171, %c0_172] : memref<4x4x32xf32, #tpu.memory_space<vmem>>, vector<3x4x32xf32>
    %190 = vector.extract_strided_slice %188 {offsets = [0, 0, 0], sizes = [3, 4, 32], strides = [1, 1, 1]} : vector<4x4x32xf32> to vector<3x4x32xf32>
    %191 = arith.addf %189, %190 : vector<3x4x32xf32>
    %c1_173 = arith.constant 1 : index
    %c0_174 = arith.constant 0 : index
    %c0_175 = arith.constant 0 : index
    %192 = vector.load %arg14[%c1_173, %c0_174, %c0_175] : memref<4x4x32xf32, #tpu.memory_space<vmem>>, vector<3x4x32xf32>
    tpu.vector_store %arg14[%c1_173, %c0_174, %c0_175], %191 {strides = array<i32>} : memref<4x4x32xf32, #tpu.memory_space<vmem>>, vector<3x4x32xf32>,
    %c3_176 = arith.constant 3 : index
    %c0_177 = arith.constant 0 : index
    %c0_178 = arith.constant 0 : index
    %193 = vector.load %arg11[%c3_176, %c0_177, %c0_178] : memref<9x16x32xf32, #tpu.memory_space<vmem>>, vector<1x16x32xf32>
    %194 = vector.shape_cast %193 : vector<1x16x32xf32> to vector<16x32xf32>
    %cst_179 = arith.constant dense<0.000000e+00> : vector<16x32xf32>
    %195 = tpu.matmul %164, %194, %cst_179 {dimension_numbers = #tpu.dot_dimension_numbers<[1], [0], [0], [1], [0, 0, 1, 1], [], []>} : vector<16x16xf32>, vector<16x32xf32>, vector<16x32xf32> -> vector<16x32xf32>
    %196 = vector.shape_cast %195 : vector<16x32xf32> to vector<4x4x32xf32>
    %c0_180 = arith.constant 0 : index
    %c1_181 = arith.constant 1 : index
    %c0_182 = arith.constant 0 : index
    %197 = vector.load %arg14[%c0_180, %c1_181, %c0_182] : memref<4x4x32xf32, #tpu.memory_space<vmem>>, vector<4x3x32xf32>
    %198 = vector.extract_strided_slice %196 {offsets = [0, 0, 0], sizes = [4, 3, 32], strides = [1, 1, 1]} : vector<4x4x32xf32> to vector<4x3x32xf32>
    %199 = arith.addf %197, %198 : vector<4x3x32xf32>
    %c0_183 = arith.constant 0 : index
    %c1_184 = arith.constant 1 : index
    %c0_185 = arith.constant 0 : index
    %200 = vector.load %arg14[%c0_183, %c1_184, %c0_185] : memref<4x4x32xf32, #tpu.memory_space<vmem>>, vector<4x3x32xf32>
    tpu.vector_store %arg14[%c0_183, %c1_184, %c0_185], %199 {strides = array<i32>} : memref<4x4x32xf32, #tpu.memory_space<vmem>>, vector<4x3x32xf32>,
    %c4_186 = arith.constant 4 : index
    %c0_187 = arith.constant 0 : index
    %c0_188 = arith.constant 0 : index
    %201 = vector.load %arg11[%c4_186, %c0_187, %c0_188] : memref<9x16x32xf32, #tpu.memory_space<vmem>>, vector<1x16x32xf32>
    %202 = vector.shape_cast %201 : vector<1x16x32xf32> to vector<16x32xf32>
    %cst_189 = arith.constant dense<0.000000e+00> : vector<16x32xf32>
    %203 = tpu.matmul %163, %202, %cst_189 {dimension_numbers = #tpu.dot_dimension_numbers<[1], [0], [0], [1], [0, 0, 1, 1], [], []>} : vector<16x16xf32>, vector<16x32xf32>, vector<16x32xf32> -> vector<16x32xf32>
    %204 = vector.shape_cast %203 : vector<16x32xf32> to vector<4x4x32xf32>
    %c0_190 = arith.constant 0 : index
    %c0_191 = arith.constant 0 : index
    %c0_192 = arith.constant 0 : index
    %205 = vector.load %arg14[%c0_190, %c0_191, %c0_192] : memref<4x4x32xf32, #tpu.memory_space<vmem>>, vector<4x4x32xf32>
    %206 = arith.addf %205, %204 : vector<4x4x32xf32>
    %c0_193 = arith.constant 0 : index
    %c0_194 = arith.constant 0 : index
    %c0_195 = arith.constant 0 : index
    %207 = vector.load %arg14[%c0_193, %c0_194, %c0_195] : memref<4x4x32xf32, #tpu.memory_space<vmem>>, vector<4x4x32xf32>
    tpu.vector_store %arg14[%c0_193, %c0_194, %c0_195], %206 {strides = array<i32>} : memref<4x4x32xf32, #tpu.memory_space<vmem>>, vector<4x4x32xf32>,
    %c5_196 = arith.constant 5 : index
    %c0_197 = arith.constant 0 : index
    %c0_198 = arith.constant 0 : index
    %208 = vector.load %arg11[%c5_196, %c0_197, %c0_198] : memref<9x16x32xf32, #tpu.memory_space<vmem>>, vector<1x16x32xf32>
    %209 = vector.shape_cast %208 : vector<1x16x32xf32> to vector<16x32xf32>
    %cst_199 = arith.constant dense<0.000000e+00> : vector<16x32xf32>
    %210 = tpu.matmul %164, %209, %cst_199 {dimension_numbers = #tpu.dot_dimension_numbers<[1], [0], [0], [1], [0, 0, 1, 1], [], []>} : vector<16x16xf32>, vector<16x32xf32>, vector<16x32xf32> -> vector<16x32xf32>
    %211 = vector.shape_cast %210 : vector<16x32xf32> to vector<4x4x32xf32>
    %c0_200 = arith.constant 0 : index
    %c0_201 = arith.constant 0 : index
    %c0_202 = arith.constant 0 : index
    %212 = vector.load %arg14[%c0_200, %c0_201, %c0_202] : memref<4x4x32xf32, #tpu.memory_space<vmem>>, vector<4x4x32xf32>
    %213 = arith.addf %212, %211 : vector<4x4x32xf32>
    %c0_203 = arith.constant 0 : index
    %c0_204 = arith.constant 0 : index
    %c0_205 = arith.constant 0 : index
    %214 = vector.load %arg14[%c0_203, %c0_204, %c0_205] : memref<4x4x32xf32, #tpu.memory_space<vmem>>, vector<4x4x32xf32>
    tpu.vector_store %arg14[%c0_203, %c0_204, %c0_205], %213 {strides = array<i32>} : memref<4x4x32xf32, #tpu.memory_space<vmem>>, vector<4x4x32xf32>,
    %c6_206 = arith.constant 6 : index
    %c0_207 = arith.constant 0 : index
    %c0_208 = arith.constant 0 : index
    %215 = vector.load %arg11[%c6_206, %c0_207, %c0_208] : memref<9x16x32xf32, #tpu.memory_space<vmem>>, vector<1x16x32xf32>
    %216 = vector.shape_cast %215 : vector<1x16x32xf32> to vector<16x32xf32>
    %cst_209 = arith.constant dense<0.000000e+00> : vector<16x32xf32>
    %217 = tpu.matmul %166, %216, %cst_209 {dimension_numbers = #tpu.dot_dimension_numbers<[1], [0], [0], [1], [0, 0, 1, 1], [], []>} : vector<16x16xf32>, vector<16x32xf32>, vector<16x32xf32> -> vector<16x32xf32>
    %218 = vector.shape_cast %217 : vector<16x32xf32> to vector<4x4x32xf32>
    %c0_210 = arith.constant 0 : index
    %c1_211 = arith.constant 1 : index
    %c0_212 = arith.constant 0 : index
    %219 = vector.load %arg14[%c0_210, %c1_211, %c0_212] : memref<4x4x32xf32, #tpu.memory_space<vmem>>, vector<4x3x32xf32>
    %220 = vector.extract_strided_slice %218 {offsets = [0, 0, 0], sizes = [4, 3, 32], strides = [1, 1, 1]} : vector<4x4x32xf32> to vector<4x3x32xf32>
    %221 = arith.addf %219, %220 : vector<4x3x32xf32>
    %c0_213 = arith.constant 0 : index
    %c1_214 = arith.constant 1 : index
    %c0_215 = arith.constant 0 : index
    %222 = vector.load %arg14[%c0_213, %c1_214, %c0_215] : memref<4x4x32xf32, #tpu.memory_space<vmem>>, vector<4x3x32xf32>
    tpu.vector_store %arg14[%c0_213, %c1_214, %c0_215], %221 {strides = array<i32>} : memref<4x4x32xf32, #tpu.memory_space<vmem>>, vector<4x3x32xf32>,
    %c7_216 = arith.constant 7 : index
    %c0_217 = arith.constant 0 : index
    %c0_218 = arith.constant 0 : index
    %223 = vector.load %arg11[%c7_216, %c0_217, %c0_218] : memref<9x16x32xf32, #tpu.memory_space<vmem>>, vector<1x16x32xf32>
    %224 = vector.shape_cast %223 : vector<1x16x32xf32> to vector<16x32xf32>
    %cst_219 = arith.constant dense<0.000000e+00> : vector<16x32xf32>
    %225 = tpu.matmul %165, %224, %cst_219 {dimension_numbers = #tpu.dot_dimension_numbers<[1], [0], [0], [1], [0, 0, 1, 1], [], []>} : vector<16x16xf32>, vector<16x32xf32>, vector<16x32xf32> -> vector<16x32xf32>
    %226 = vector.shape_cast %225 : vector<16x32xf32> to vector<4x4x32xf32>
    %c0_220 = arith.constant 0 : index
    %c0_221 = arith.constant 0 : index
    %c0_222 = arith.constant 0 : index
    %227 = vector.load %arg14[%c0_220, %c0_221, %c0_222] : memref<4x4x32xf32, #tpu.memory_space<vmem>>, vector<4x4x32xf32>
    %228 = arith.addf %227, %226 : vector<4x4x32xf32>
    %c0_223 = arith.constant 0 : index
    %c0_224 = arith.constant 0 : index
    %c0_225 = arith.constant 0 : index
    %229 = vector.load %arg14[%c0_223, %c0_224, %c0_225] : memref<4x4x32xf32, #tpu.memory_space<vmem>>, vector<4x4x32xf32>
    tpu.vector_store %arg14[%c0_223, %c0_224, %c0_225], %228 {strides = array<i32>} : memref<4x4x32xf32, #tpu.memory_space<vmem>>, vector<4x4x32xf32>,
    %c8_226 = arith.constant 8 : index
    %c0_227 = arith.constant 0 : index
    %c0_228 = arith.constant 0 : index
    %230 = vector.load %arg11[%c8_226, %c0_227, %c0_228] : memref<9x16x32xf32, #tpu.memory_space<vmem>>, vector<1x16x32xf32>
    %231 = vector.shape_cast %230 : vector<1x16x32xf32> to vector<16x32xf32>
    %cst_229 = arith.constant dense<0.000000e+00> : vector<16x32xf32>
    %232 = tpu.matmul %166, %231, %cst_229 {dimension_numbers = #tpu.dot_dimension_numbers<[1], [0], [0], [1], [0, 0, 1, 1], [], []>} : vector<16x16xf32>, vector<16x32xf32>, vector<16x32xf32> -> vector<16x32xf32>
    %233 = vector.shape_cast %232 : vector<16x32xf32> to vector<4x4x32xf32>
    %c0_230 = arith.constant 0 : index
    %c0_231 = arith.constant 0 : index
    %c0_232 = arith.constant 0 : index
    %234 = vector.load %arg14[%c0_230, %c0_231, %c0_232] : memref<4x4x32xf32, #tpu.memory_space<vmem>>, vector<4x4x32xf32>
    %235 = arith.addf %234, %233 : vector<4x4x32xf32>
    %c0_233 = arith.constant 0 : index
    %c0_234 = arith.constant 0 : index
    %c0_235 = arith.constant 0 : index
    %236 = vector.load %arg14[%c0_233, %c0_234, %c0_235] : memref<4x4x32xf32, #tpu.memory_space<vmem>>, vector<4x4x32xf32>
    tpu.vector_store %arg14[%c0_233, %c0_234, %c0_235], %235 {strides = array<i32>} : memref<4x4x32xf32, #tpu.memory_space<vmem>>, vector<4x4x32xf32>,
    %c0_236 = arith.constant 0 : index
    %c0_237 = arith.constant 0 : index
    %c0_238 = arith.constant 0 : index
    %237 = vector.load %arg14[%c0_236, %c0_237, %c0_238] : memref<4x4x32xf32, #tpu.memory_space<vmem>>, vector<4x4x32xf32>
    %238 = vector.shape_cast %237 : vector<4x4x32xf32> to vector<16x32xf32>
    %c0_239 = arith.constant 0 : index
    %c0_240 = arith.constant 0 : index
    %239 = vector.load %arg12[%c0_239, %c0_240] : memref<2x32xf32, #tpu.memory_space<vmem>>, vector<2x32xf32>
    %240 = vector.extract_strided_slice %239 {offsets = [0, 0], sizes = [1, 32], strides = [1, 1]} : vector<2x32xf32> to vector<1x32xf32>
    %241 = vector.broadcast %240 : vector<1x32xf32> to vector<16x32xf32>
    %242 = arith.mulf %238, %241 : vector<16x32xf32>
    %243 = vector.extract_strided_slice %239 {offsets = [1, 0], sizes = [1, 32], strides = [1, 1]} : vector<2x32xf32> to vector<1x32xf32>
    %244 = vector.broadcast %243 : vector<1x32xf32> to vector<16x32xf32>
    %245 = arith.addf %242, %244 : vector<16x32xf32>
    %cst_241 = arith.constant 5.000000e-01 : f32
    %246 = vector.broadcast %cst_241 : f32 to vector<16x32xf32>
    %247 = arith.mulf %246, %245 : vector<16x32xf32>
    %cst_242 = arith.constant 0.707106769 : f32
    %248 = vector.broadcast %cst_242 : f32 to vector<16x32xf32>
    %249 = arith.mulf %245, %248 : vector<16x32xf32>
    %250 = math.erf %249 : vector<16x32xf32>
    %cst_243 = arith.constant 1.000000e+00 : f32
    %251 = vector.broadcast %cst_243 : f32 to vector<16x32xf32>
    %252 = arith.addf %251, %250 : vector<16x32xf32>
    %253 = arith.mulf %247, %252 : vector<16x32xf32>
    %c0_244 = arith.constant 0 : index
    %c0_245 = arith.constant 0 : index
    %c0_246 = arith.constant 0 : index
    %254 = vector.load %arg13[%c0_244, %c0_245, %c0_246] : memref<1x16x32xf32, #tpu.memory_space<vmem>>, vector<1x16x32xf32>
    %255 = vector.shape_cast %254 : vector<1x16x32xf32> to vector<16x32xf32>
    %256 = vector.shape_cast %253 : vector<16x32xf32> to vector<1x16x32xf32>
    tpu.vector_store %arg13[%c0_244, %c0_245, %c0_246], %256 {strides = array<i32>} : memref<1x16x32xf32, #tpu.memory_space<vmem>>, vector<1x16x32xf32>,
    return
  }
  func.func @transform_0(%arg0: i32) -> (i32, i32, i32, i32) {
    %c0_i32 = arith.constant 0 : i32
    %c0_i32_0 = arith.constant 0 : i32
    %c0_i32_1 = arith.constant 0 : i32
    %c0_i32_2 = arith.constant 0 : i32
    return %arg0, %c0_i32, %c0_i32_0, %c0_i32_1 : i32, i32, i32, i32
  }
  func.func @transform_1(%arg0: i32) -> (i32, i32, i32, i32) {
    %c0_i32 = arith.constant 0 : i32
    %c0_i32_0 = arith.constant 0 : i32
    %c0_i32_1 = arith.constant 0 : i32
    %c0_i32_2 = arith.constant 0 : i32
    return %arg0, %c0_i32, %c0_i32_0, %c0_i32_1 : i32, i32, i32, i32
  }
  func.func @transform_2(%arg0: i32) -> (i32, i32, i32, i32) {
    %c0_i32 = arith.constant 0 : i32
    %c0_i32_0 = arith.constant 0 : i32
    %c0_i32_1 = arith.constant 0 : i32
    %c0_i32_2 = arith.constant 0 : i32
    return %arg0, %c0_i32, %c0_i32_0, %c0_i32_1 : i32, i32, i32, i32
  }
  func.func @transform_3(%arg0: i32) -> (i32, i32, i32, i32) {
    %c0_i32 = arith.constant 0 : i32
    %c0_i32_0 = arith.constant 0 : i32
    %c0_i32_1 = arith.constant 0 : i32
    %c0_i32_2 = arith.constant 0 : i32
    return %arg0, %c0_i32, %c0_i32_0, %c0_i32_1 : i32, i32, i32, i32
  }
  func.func @transform_4(%arg0: i32) -> (i32, i32, i32, i32) {
    %c0_i32 = arith.constant 0 : i32
    %c0_i32_0 = arith.constant 0 : i32
    %c0_i32_1 = arith.constant 0 : i32
    %c0_i32_2 = arith.constant 0 : i32
    return %arg0, %c0_i32, %c0_i32_0, %c0_i32_1 : i32, i32, i32, i32
  }
  func.func @transform_5(%arg0: i32) -> (i32, i32, i32, i32) {
    %c0_i32 = arith.constant 0 : i32
    %c0_i32_0 = arith.constant 0 : i32
    %c0_i32_1 = arith.constant 0 : i32
    %c0_i32_2 = arith.constant 0 : i32
    return %arg0, %c0_i32, %c0_i32_0, %c0_i32_1 : i32, i32, i32, i32
  }
  func.func @transform_6(%arg0: i32) -> (i32, i32, i32, i32) {
    %c0_i32 = arith.constant 0 : i32
    %c0_i32_0 = arith.constant 0 : i32
    %c0_i32_1 = arith.constant 0 : i32
    %c0_i32_2 = arith.constant 0 : i32
    return %arg0, %c0_i32, %c0_i32_0, %c0_i32_1 : i32, i32, i32, i32
  }
  func.func @transform_7(%arg0: i32) -> (i32, i32, i32, i32) {
    %c0_i32 = arith.constant 0 : i32
    %c0_i32_0 = arith.constant 0 : i32
    %c0_i32_1 = arith.constant 0 : i32
    %c0_i32_2 = arith.constant 0 : i32
    return %arg0, %c0_i32, %c0_i32_0, %c0_i32_1 : i32, i32, i32, i32
  }
  func.func @transform_8(%arg0: i32) -> (i32, i32, i32) {
    %c0_i32 = arith.constant 0 : i32
    %c0_i32_0 = arith.constant 0 : i32
    %c0_i32_1 = arith.constant 0 : i32
    %c0_i32_2 = arith.constant 0 : i32
    return %c0_i32, %c0_i32_0, %c0_i32_1 : i32, i32, i32
  }
  func.func @transform_9(%arg0: i32) -> (i32, i32) {
    %c0_i32 = arith.constant 0 : i32
    %c0_i32_0 = arith.constant 0 : i32
    %c0_i32_1 = arith.constant 0 : i32
    return %c0_i32, %c0_i32_0 : i32, i32
  }
  func.func @transform_10(%arg0: i32) -> (i32, i32, i32) {
    %c0_i32 = arith.constant 0 : i32
    %c0_i32_0 = arith.constant 0 : i32
    %c0_i32_1 = arith.constant 0 : i32
    %c0_i32_2 = arith.constant 0 : i32
    return %c0_i32, %c0_i32_0, %c0_i32_1 : i32, i32, i32
  }
  func.func @transform_11(%arg0: i32) -> (i32, i32) {
    %c0_i32 = arith.constant 0 : i32
    %c0_i32_0 = arith.constant 0 : i32
    %c0_i32_1 = arith.constant 0 : i32
    return %c0_i32, %c0_i32_0 : i32, i32
  }
  func.func @transform_12(%arg0: i32) -> (i32, i32, i32) {
    %c0_i32 = arith.constant 0 : i32
    %c0_i32_0 = arith.constant 0 : i32
    %c0_i32_1 = arith.constant 0 : i32
    return %arg0, %c0_i32, %c0_i32_0 : i32, i32, i32
  }
}

</mosaic_0001>

<bundles_post_ra>
// kernel: svtr_patch_embed.3
= control target key start
LH: loop header
LB: loop body
LE: loop exit
PB: predicated region body
PF: predicated region fallthrough
CT: control target
= control target key end

     0   :  { %s3310_s30 = smov 0   ;;  %s3571_s0 = inlined_call_operand.vmem [shape: f32[2,9,5,4], index: 0, kind: input, shape index: {}]   ;;  %s3572_s1 = inlined_call_operand.vmem [shape: f32[2,9,5,4], index: 1, kind: input, shape index: {}]   ;;  %s3573_s2 = inlined_call_operand.vmem [shape: f32[2,9,5,4], index: 2, kind: input, shape index: {}]   ;;  %s3574_s3 = inlined_call_operand.vmem [shape: f32[2,9,5,4], index: 3, kind: input, shape index: {}]   ;;  %s3575_s4 = inlined_call_operand.vmem [shape: f32[2,9,5,4], index: 4, kind: input, shape index: {}]   ;;  %s3576_s5 = inlined_call_operand.vmem [shape: f32[2,9,5,4], index: 5, kind: input, shape index: {}]   ;;  %s3577_s6 = inlined_call_operand.vmem [shape: f32[2,9,5,4], index: 6, kind: input, shape index: {}]   ;;  %s3578_s7 = inlined_call_operand.vmem [shape: f32[2,9,5,4], index: 7, kind: input, shape index: {}]   ;;  %s3579_s8 = inlined_call_operand.vmem [shape: f32[9,4,16], index: 8, kind: input, shape index: {}]   ;;  %s3580_s9 = inlined_call_operand.vmem [shape: f32[2,2,16], index: 9, kind: output, shape index: {}]  }
   0x1 LB: > { %s2731_s10 = sadd.s32 4294967295, %s3258_s30   ;;  %p2735_p0 = scmp.ge.s32.totalorder %s3258_s30, 1  ;;  %s3258_s30 = sphi %s3310_s30, %s19_s30  }
   0x2   : > { %p357_p1 = scmp.lt.s32.totalorder %s3258_s30, 3 }
   0x4   : > { %p358_p2 = pnand %p2735_p0, %p357_p1 }
   0x5   : > { %v2745_v0 = vld [vmem:[%s3579_s8 + $0x4] sm:$0xf] (!%p358_p2)  ;;  %vm511_vm0 = vcmask (!%p358_p2), 1043456   ;;  %p427_p3 = scmp.lt.s32.totalorder (!%p358_p2), %s2731_s10, 1  ;;  %v479_v1 = vld [vmem:[%s3579_s8] sm:$0xf] (!%p358_p2) }
   0x6   : > { %361 = sbr.rel (%p358_p2) target bundleno = 324 (0x144), region = 56  ;;  %2975 = vmatprep.subr.msk.mxu0 (!%p358_p2), %vm511_vm0, %v2745_v0  ;;  %3047 = vmatprep.subr.msk.mxu1 (!%p358_p2), %vm511_vm0, %v2745_v0  ;;  %vm502_vm1 = vcmask (!%p358_p2), 31744   ;;  %v2756_v5 = vld [vmem:[%s3579_s8 + $0x8] sm:$0xf] (!%p358_p2)  ;;  %v2762_v14 = vld [vmem:[%s3579_s8 + $0xc] sm:$0xf] (!%p358_p2) }
   0x7   : > { %2976 = vmatpush3.msk.msra.mxu0 (!%p358_p2), %vm511_vm0, %v2745_v0  ;;  %3048 = vmatpush3.msk.msra.mxu1 (!%p358_p2), %vm511_vm0, %v2745_v0  ;;  %v2768_v22 = vld [vmem:[%s3579_s8 + $0x10] sm:$0xf] (!%p358_p2)  ;;  %v2774_v31 = vld [vmem:[%s3579_s8 + $0x14] sm:$0xf] (!%p358_p2)  ;;  %v2788_v39 = vld [vmem:[%s3579_s8 + $0x18] sm:$0xf] (!%p358_p2) }
   0x8   : > { %2983 = vmatprep.subr.msk.mxu0 (!%p358_p2), %vm511_vm0, %v479_v1  ;;  %3055 = vmatprep.subr.msk.mxu1 (!%p358_p2), %vm511_vm0, %v479_v1  ;;  %v2802_v45 = vld [vmem:[%s3579_s8 + $0x1c] sm:$0xf] (!%p358_p2)  ;;  %v2816_v54 = vld [vmem:[%s3579_s8 + $0x20] sm:$0xf] (!%p358_p2)  ;;  %vm2527_vm2 = vcmask (!%p358_p2), 130048   ;;  %vm2558_vm3 = vcmask (!%p358_p2), 1040384  }
   0x9   : > { %vm2592_vm4 = vcmask (!%p358_p2), 123904  }
   0xd   : > { %s3582_s10 = smov (!%p427_p3, %s2731_s10), 1 }
   0xe   : > { %s3333_s15 = smul.u32 72, %s3582_s10 }
  0x10   : > { %s3339_s18 = scalar_lea.vmem %s3572_s1, %s3333_s15  ;;  %s3346_s21 = scalar_lea.vmem %s3574_s3, %s3333_s15 }
  0x11   : > { %v3192_v2 = vld [vmem:[%s3339_s18] ss:$8 sps:$4 sm:$0xff]   ;;  %v3194_v4 = vld [vmem:[%s3339_s18 + $0x10] ss:$8 sps:$4 sm:$0xff]   ;;  %s3362_s26 = scalar_lea.vmem %s3571_s0, %s3333_s15  ;;  %s3374_s29 = scalar_lea.vmem %s3573_s2, %s3333_s15 }
  0x12   : > { %v3193_v3 = vld [vmem:[%s3346_s21] ss:$8 sps:$4 sm:$0xff]   ;;  %2977 = vmatprep.mubr.msk.f32.mxu0 %vm502_vm1, %v3192_v2  ;;  %v3195_v6 = vld [vmem:[%s3346_s21 + $0x10] ss:$8 sps:$4 sm:$0xff]   ;;  %s3413_s16 = scalar_lea.vmem %s3575_s4, %s3333_s15  ;;  %s461_s23 = scalar_lea.vmem %s3577_s6, %s3333_s15 }
  0x13   : > { %3049 = vmatprep.mubr.msk.f32.mxu1 %vm502_vm1, %v3193_v3  ;;  %2978 = vmatmul.mubr.msk.f32.vlgmr.msra.gmra.mrb[0].mxu0 %vm502_vm1, %v3194_v4  ;;  %v3196_v7 = vld [vmem:[%s3339_s18 + $0x20] ss:$8 sps:$4 sm:$0xff]   ;;  %v3198_v9 = vld [vmem:[%s3339_s18 + $0x30] ss:$8 sps:$4 sm:$0xff]   ;;  %s456_s27 = scalar_lea.vmem %s3576_s5, %s3333_s15  ;;  %s466_s14 = scalar_lea.vmem %s3578_s7, %s3333_s15 }
  0x14   : > { %2984 = vmatpush3.msk.msra.mxu0 %vm511_vm0, %v479_v1  ;;  %3050 = vmatmul.mubr.msk.f32.vlgmr.msra.gmra.mrb[0].mxu1 %vm502_vm1, %v3195_v6  ;;  %v3197_v8 = vld [vmem:[%s3346_s21 + $0x20] ss:$8 sps:$4 sm:$0xff]   ;;  %v3199_v10 = vld [vmem:[%s3346_s21 + $0x30] ss:$8 sps:$4 sm:$0xff]  }
  0x15   : > { %3056 = vmatpush3.msk.msra.mxu1 %vm511_vm0, %v479_v1  ;;  %2980 = vmatprep.mubr.msk.f32.mxu0 %vm502_vm1, %v3196_v7  ;;  %v3200_v11 = vld [vmem:[%s3362_s26] ss:$8 sps:$4 sm:$0xff]   ;;  %v3202_v13 = vld [vmem:[%s3362_s26 + $0x10] ss:$8 sps:$4 sm:$0xff]  }
  0x16   : > { %3052 = vmatprep.mubr.msk.f32.mxu1 %vm502_vm1, %v3197_v8  ;;  %2991 = vmatprep.subr.msk.mxu0 %vm511_vm0, %v2756_v5  ;;  %v3201_v12 = vld [vmem:[%s3374_s29] ss:$8 sps:$4 sm:$0xff]   ;;  %v3203_v15 = vld [vmem:[%s3374_s29 + $0x10] ss:$8 sps:$4 sm:$0xff]  }
  0x17   : > { %2981 = vmatmul.mubr.msk.f32.gmra.mrb[2].mxu0 %vm502_vm1, %v3198_v9  ;;  %3063 = vmatprep.subr.msk.mxu1 %vm511_vm0, %v2756_v5  ;;  %v3204_v16 = vld [vmem:[%s3362_s26 + $0x20] ss:$8 sps:$4 sm:$0xff]   ;;  %v3206_v18 = vld [vmem:[%s3362_s26 + $0x30] ss:$8 sps:$4 sm:$0xff]  }
  0x18   : > { %3053 = vmatmul.mubr.msk.f32.gmra.mrb[2].mxu1 %vm502_vm1, %v3199_v10  ;;  %2985 = vmatprep.mubr.msk.f32.mxu0 %vm502_vm1, %v3200_v11  ;;  %v3205_v17 = vld [vmem:[%s3374_s29 + $0x20] ss:$8 sps:$4 sm:$0xff]   ;;  %v3207_v19 = vld [vmem:[%s3374_s29 + $0x30] ss:$8 sps:$4 sm:$0xff]  }
  0x19   : > { %3057 = vmatprep.mubr.msk.f32.mxu1 %vm502_vm1, %v3201_v12  ;;  %v3208_v20 = vld [vmem:[%s3362_s26 + $0x1] ss:$8 sps:$4 sm:$0xff]   ;;  %v3209_v21 = vld [vmem:[%s3362_s26 + $0x11] ss:$8 sps:$4 sm:$0xff]  }
  0x1a   : > { %v3210_v23 = vld [vmem:[%s3362_s26 + $0x21] ss:$8 sps:$4 sm:$0xff]   ;;  %v3211_v24 = vld [vmem:[%s3362_s26 + $0x31] ss:$8 sps:$4 sm:$0xff]  }
  0x1b   : > { %2986 = vmatmul.mubr.msk.f32.vlgmr.msra.gmra.mrb[0].mxu0 %vm502_vm1, %v3202_v13  ;;  %v3212_v25 = vld [vmem:[%s3413_s16] ss:$8 sps:$4 sm:$0xff]   ;;  %v3214_v27 = vld [vmem:[%s3413_s16 + $0x10] ss:$8 sps:$4 sm:$0xff]  }
  0x1c   : > { %2992 = vmatpush3.msk.msra.mxu0 %vm511_vm0, %v2756_v5  ;;  %3058 = vmatmul.mubr.msk.f32.vlgmr.msra.gmra.mrb[0].mxu1 %vm502_vm1, %v3203_v15  ;;  %v3213_v26 = vld [vmem:[%s461_s23] ss:$8 sps:$4 sm:$0xff]   ;;  %v3215_v28 = vld [vmem:[%s461_s23 + $0x10] ss:$8 sps:$4 sm:$0xff]  }
  0x1d   : > { %3064 = vmatpush3.msk.msra.mxu1 %vm511_vm0, %v2756_v5  ;;  %2988 = vmatprep.mubr.msk.f32.mxu0 %vm502_vm1, %v3204_v16  ;;  %v3216_v29 = vld [vmem:[%s3413_s16 + $0x20] ss:$8 sps:$4 sm:$0xff]   ;;  %v3218_v32 = vld [vmem:[%s3413_s16 + $0x30] ss:$8 sps:$4 sm:$0xff]  }
  0x1e   : > { %3060 = vmatprep.mubr.msk.f32.mxu1 %vm502_vm1, %v3205_v17  ;;  %2999 = vmatprep.subr.msk.mxu0 %vm511_vm0, %v2762_v14  ;;  %v3217_v30 = vld [vmem:[%s461_s23 + $0x20] ss:$8 sps:$4 sm:$0xff]   ;;  %v3219_v33 = vld [vmem:[%s461_s23 + $0x30] ss:$8 sps:$4 sm:$0xff]  }
  0x1f   : > { %2989 = vmatmul.mubr.msk.f32.gmra.mrb[2].mxu0 %vm502_vm1, %v3206_v18  ;;  %3071 = vmatprep.subr.msk.mxu1 %vm511_vm0, %v2762_v14  ;;  %v3220_v34 = vld [vmem:[%s456_s27] ss:$8 sps:$4 sm:$0xff]   ;;  %v3222_v36 = vld [vmem:[%s456_s27 + $0x10] ss:$8 sps:$4 sm:$0xff]  }
  0x20   : > { %3061 = vmatmul.mubr.msk.f32.gmra.mrb[2].mxu1 %vm502_vm1, %v3207_v19  ;;  %2993 = vmatprep.mubr.msk.f32.mxu0 %vm502_vm1, %v3201_v12  ;;  %v3221_v35 = vld [vmem:[%s466_s14] ss:$8 sps:$4 sm:$0xff]   ;;  %v3223_v37 = vld [vmem:[%s466_s14 + $0x10] ss:$8 sps:$4 sm:$0xff]  }
  0x21   : > { %3065 = vmatprep.mubr.msk.f32.mxu1 %vm502_vm1, %v3208_v20  ;;  %v3224_v38 = vld [vmem:[%s456_s27 + $0x20] ss:$8 sps:$4 sm:$0xff]   ;;  %v3226_v41 = vld [vmem:[%s456_s27 + $0x30] ss:$8 sps:$4 sm:$0xff]  }
  0x22   : > { %v3225_v40 = vld [vmem:[%s466_s14 + $0x20] ss:$8 sps:$4 sm:$0xff]   ;;  %v3227_v42 = vld [vmem:[%s466_s14 + $0x30] ss:$8 sps:$4 sm:$0xff]  }
  0x23   : > { %2994 = vmatmul.mubr.msk.f32.vlgmr.msra.gmra.mrb[0].mxu0 %vm502_vm1, %v3203_v15  ;;  %v3228_v43 = vld [vmem:[%s3413_s16 + $0x1] ss:$8 sps:$4 sm:$0xff]   ;;  %v3229_v44 = vld [vmem:[%s3413_s16 + $0x11] ss:$8 sps:$4 sm:$0xff]  }
  0x24   : > { %3000 = vmatpush3.msk.msra.mxu0 %vm511_vm0, %v2762_v14  ;;  %3066 = vmatmul.mubr.msk.f32.vlgmr.msra.gmra.mrb[0].mxu1 %vm502_vm1, %v3209_v21  ;;  %v3230_v46 = vld [vmem:[%s3413_s16 + $0x21] ss:$8 sps:$4 sm:$0xff]   ;;  %v3231_v47 = vld [vmem:[%s3413_s16 + $0x31] ss:$8 sps:$4 sm:$0xff]  }
  0x25   : > { %3072 = vmatpush3.msk.msra.mxu1 %vm511_vm0, %v2762_v14  ;;  %2996 = vmatprep.mubr.msk.f32.mxu0 %vm502_vm1, %v3205_v17  ;;  %v3232_v48 = vld [vmem:[%s3362_s26 + $0x8] ss:$8 sps:$4 sm:$0xff]   ;;  %v3234_v50 = vld [vmem:[%s3362_s26 + $0x18] ss:$8 sps:$4 sm:$0xff]  }
  0x26   : > { %3068 = vmatprep.mubr.msk.f32.mxu1 %vm502_vm1, %v3210_v23  ;;  %3007 = vmatprep.subr.msk.mxu0 %vm511_vm0, %v2768_v22  ;;  %v3233_v49 = vld [vmem:[%s3374_s29 + $0x8] ss:$8 sps:$4 sm:$0xff]   ;;  %v3235_v51 = vld [vmem:[%s3374_s29 + $0x18] ss:$8 sps:$4 sm:$0xff]  }
  0x27   : > { %2997 = vmatmul.mubr.msk.f32.gmra.mrb[2].mxu0 %vm502_vm1, %v3207_v19  ;;  %3079 = vmatprep.subr.msk.mxu1 %vm511_vm0, %v2768_v22  ;;  %v3236_v52 = vld [vmem:[%s3362_s26 + $0x28] ss:$8 sps:$4 sm:$0xff]   ;;  %v3238_v55 = vld [vmem:[%s3362_s26 + $0x38] ss:$8 sps:$4 sm:$0xff]  }
  0x28   : > { %3069 = vmatmul.mubr.msk.f32.gmra.mrb[2].mxu1 %vm502_vm1, %v3211_v24  ;;  %3001 = vmatprep.mubr.msk.f32.mxu0 %vm502_vm1, %v3212_v25  ;;  %v3237_v53 = vld [vmem:[%s3374_s29 + $0x28] ss:$8 sps:$4 sm:$0xff]   ;;  %v3239_v56 = vld [vmem:[%s3374_s29 + $0x38] ss:$8 sps:$4 sm:$0xff]  }
  0x29   : > { %3073 = vmatprep.mubr.msk.f32.mxu1 %vm502_vm1, %v3213_v26  ;;  %v3240_v57 = vld [vmem:[%s3339_s18 + $0x8] ss:$8 sps:$4 sm:$0xff]   ;;  %v3242_v59 = vld [vmem:[%s3339_s18 + $0x18] ss:$8 sps:$4 sm:$0xff]  }
  0x2a   : > { %v3241_v58 = vld [vmem:[%s3346_s21 + $0x8] ss:$8 sps:$4 sm:$0xff]   ;;  %v3243_v60 = vld [vmem:[%s3346_s21 + $0x18] ss:$8 sps:$4 sm:$0xff]  }
  0x2b   : > { %3002 = vmatmul.mubr.msk.f32.vlgmr.msra.gmra.mrb[0].mxu0 %vm502_vm1, %v3214_v27  ;;  %v3244_v61 = vld [vmem:[%s3339_s18 + $0x28] ss:$8 sps:$4 sm:$0xff]   ;;  %v3246_v63 = vld [vmem:[%s3339_s18 + $0x38] ss:$8 sps:$4 sm:$0xff]   ;;  %s2744_s18 = sshll.u32 %s3582_s10, 1 }
  0x2c   : > { %3008 = vmatpush3.msk.msra.mxu0 %vm511_vm0, %v2768_v22  ;;  %3074 = vmatmul.mubr.msk.f32.vlgmr.msra.gmra.mrb[0].mxu1 %vm502_vm1, %v3215_v28  ;;  %v3245_v62 = vld [vmem:[%s3346_s21 + $0x28] ss:$8 sps:$4 sm:$0xff]   ;;  %v3247_v0 = vld [vmem:[%s3346_s21 + $0x38] ss:$8 sps:$4 sm:$0xff]   ;;  %s470_s29 = scalar_lea.vmem %s3580_s9, %s2744_s18 }
  0x2d   : > { %3080 = vmatpush3.msk.msra.mxu1 %vm511_vm0, %v2768_v22  ;;  %3004 = vmatprep.mubr.msk.f32.mxu0 %vm502_vm1, %v3216_v29  ;;  %v3248_v1 = vld [vmem:[%s3362_s26 + $0x9] ss:$8 sps:$4 sm:$0xff]   ;;  %v3249_v2 = vld [vmem:[%s3362_s26 + $0x19] ss:$8 sps:$4 sm:$0xff]  }
  0x2e   : > { %3076 = vmatprep.mubr.msk.f32.mxu1 %vm502_vm1, %v3217_v30  ;;  %3015 = vmatprep.subr.msk.mxu0 %vm511_vm0, %v2774_v31  ;;  %v3250_v3 = vld [vmem:[%s3362_s26 + $0x29] ss:$8 sps:$4 sm:$0xff]   ;;  %v3251_v4 = vld [vmem:[%s3362_s26 + $0x39] ss:$8 sps:$4 sm:$0xff]  }
  0x2f   : > { %3005 = vmatmul.mubr.msk.f32.gmra.mrb[2].mxu0 %vm502_vm1, %v3218_v32  ;;  %3087 = vmatprep.subr.msk.mxu1 %vm511_vm0, %v2774_v31 }
  0x30   : > { %3077 = vmatmul.mubr.msk.f32.gmra.mrb[2].mxu1 %vm502_vm1, %v3219_v33  ;;  %3009 = vmatprep.mubr.msk.f32.mxu0 %vm502_vm1, %v3220_v34 }
  0x31   : > { %3081 = vmatprep.mubr.msk.f32.mxu1 %vm502_vm1, %v3221_v35 }
  0x33   : > { %3010 = vmatmul.mubr.msk.f32.vlgmr.msra.gmra.mrb[0].mxu0 %vm502_vm1, %v3222_v36 }
  0x34   : > { %3016 = vmatpush3.msk.msra.mxu0 %vm511_vm0, %v2774_v31  ;;  %3082 = vmatmul.mubr.msk.f32.vlgmr.msra.gmra.mrb[0].mxu1 %vm502_vm1, %v3223_v37 }
  0x35   : > { %3088 = vmatpush3.msk.msra.mxu1 %vm511_vm0, %v2774_v31  ;;  %3012 = vmatprep.mubr.msk.f32.mxu0 %vm502_vm1, %v3224_v38 }
  0x36   : > { %3084 = vmatprep.mubr.msk.f32.mxu1 %vm502_vm1, %v3225_v40  ;;  %3023 = vmatprep.subr.msk.mxu0 %vm511_vm0, %v2788_v39 }
  0x37   : > { %3013 = vmatmul.mubr.msk.f32.gmra.mrb[2].mxu0 %vm502_vm1, %v3226_v41  ;;  %3095 = vmatprep.subr.msk.mxu1 %vm511_vm0, %v2788_v39 }
  0x38   : > { %3085 = vmatmul.mubr.msk.f32.gmra.mrb[2].mxu1 %vm502_vm1, %v3227_v42  ;;  %3017 = vmatprep.mubr.msk.f32.mxu0 %vm502_vm1, %v3213_v26 }
  0x39   : > { %3089 = vmatprep.mubr.msk.f32.mxu1 %vm502_vm1, %v3228_v43 }
  0x3b   : > { %3018 = vmatmul.mubr.msk.f32.vlgmr.msra.gmra.mrb[0].mxu0 %vm502_vm1, %v3215_v28 }
  0x3c   : > { %3024 = vmatpush3.msk.msra.mxu0 %vm511_vm0, %v2788_v39  ;;  %3090 = vmatmul.mubr.msk.f32.vlgmr.msra.gmra.mrb[0].mxu1 %vm502_vm1, %v3229_v44 }
  0x3d   : > { %3096 = vmatpush3.msk.msra.mxu1 %vm511_vm0, %v2788_v39  ;;  %3020 = vmatprep.mubr.msk.f32.mxu0 %vm502_vm1, %v3217_v30 }
  0x3e   : > { %3092 = vmatprep.mubr.msk.f32.mxu1 %vm502_vm1, %v3230_v46  ;;  %3031 = vmatprep.subr.msk.mxu0 %vm511_vm0, %v2802_v45 }
  0x3f   : > { %3021 = vmatmul.mubr.msk.f32.gmra.mrb[2].mxu0 %vm502_vm1, %v3219_v33  ;;  %3103 = vmatprep.subr.msk.mxu1 %vm511_vm0, %v2802_v45 }
  0x40   : > { %3093 = vmatmul.mubr.msk.f32.gmra.mrb[2].mxu1 %vm502_vm1, %v3231_v47  ;;  %3025 = vmatprep.mubr.msk.f32.mxu0 %vm502_vm1, %v3232_v48 }
  0x41   : > { %3097 = vmatprep.mubr.msk.f32.mxu1 %vm502_vm1, %v3233_v49 }
  0x43   : > { %3026 = vmatmul.mubr.msk.f32.vlgmr.msra.gmra.mrb[0].mxu0 %vm502_vm1, %v3234_v50 }
  0x44   : > { %3032 = vmatpush3.msk.msra.mxu0 %vm511_vm0, %v2802_v45  ;;  %3098 = vmatmul.mubr.msk.f32.vlgmr.msra.gmra.mrb[0].mxu1 %vm502_vm1, %v3235_v51 }
  0x45   : > { %3104 = vmatpush3.msk.msra.mxu1 %vm511_vm0, %v2802_v45  ;;  %3028 = vmatprep.mubr.msk.f32.mxu0 %vm502_vm1, %v3236_v52 }
  0x46   : > { %3100 = vmatprep.mubr.msk.f32.mxu1 %vm502_vm1, %v3237_v53  ;;  %3039 = vmatprep.subr.msk.mxu0 %vm511_vm0, %v2816_v54 }
  0x47   : > { %3029 = vmatmul.mubr.msk.f32.gmra.mrb[2].mxu0 %vm502_vm1, %v3238_v55  ;;  %3111 = vmatprep.subr.msk.mxu1 %vm511_vm0, %v2816_v54 }
  0x48   : > { %3101 = vmatmul.mubr.msk.f32.gmra.mrb[2].mxu1 %vm502_vm1, %v3239_v56  ;;  %3033 = vmatprep.mubr.msk.f32.mxu0 %vm502_vm1, %v3240_v57 }
  0x49   : > { %3105 = vmatprep.mubr.msk.f32.mxu1 %vm502_vm1, %v3241_v58 }
  0x4b   : > { %3034 = vmatmul.mubr.msk.f32.vlgmr.msra.gmra.mrb[0].mxu0 %vm502_vm1, %v3242_v59 }
  0x4c   : > { %3040 = vmatpush3.msk.msra.mxu0 %vm511_vm0, %v2816_v54  ;;  %3106 = vmatmul.mubr.msk.f32.vlgmr.msra.gmra.mrb[0].mxu1 %vm502_vm1, %v3243_v60 }
  0x4d   : > { %3112 = vmatpush3.msk.msra.mxu1 %vm511_vm0, %v2816_v54  ;;  %3036 = vmatprep.mubr.msk.f32.mxu0 %vm502_vm1, %v3244_v61 }
  0x4e   : > { %3108 = vmatprep.mubr.msk.f32.mxu1 %vm502_vm1, %v3245_v62 }
  0x4f   : > { %3037 = vmatmul.mubr.msk.f32.gmra.mrb[2].mxu0 %vm502_vm1, %v3246_v63 }
  0x50   : > { %3109 = vmatmul.mubr.msk.f32.gmra.mrb[2].mxu1 %vm502_vm1, %v3247_v0  ;;  %3041 = vmatprep.mubr.msk.f32.mxu0 %vm502_vm1, %v3233_v49 }
  0x51   : > { %3113 = vmatprep.mubr.msk.f32.mxu1 %vm502_vm1, %v3248_v1 }
  0x53   : > { %3042 = vmatmul.mubr.msk.f32.vlgmr.msra.gmra.mrb[0].mxu0 %vm502_vm1, %v3235_v51 }
  0x54   : > { %3114 = vmatmul.mubr.msk.f32.vlgmr.msra.gmra.mrb[0].mxu1 %vm502_vm1, %v3249_v2  ;;  %3044 = vmatprep.mubr.msk.f32.mxu0 %vm502_vm1, %v3237_v53 }
  0x55   : > { %3116 = vmatprep.mubr.msk.f32.mxu1 %vm502_vm1, %v3250_v3 }
  0x57   : > { %3045 = vmatmul.mubr.msk.f32.gmra.mrb[2].mxu0 %vm502_vm1, %v3239_v56 }
  0x58   : > { %3117 = vmatmul.mubr.msk.f32.gmra.mrb[2].mxu1 %vm502_vm1, %v3251_v4 }
 0x126   : > { %v3043_v5 = vpop.f32.mrb[0].mxu0 }
 0x127   : > { %v2529_v6 = vsel %vm2527_vm2, %v3043_v5, 0.0  ;;  %v2542_v7 = vmul.f32 %v3043_v5, %v3043_v5  ;;  %v3115_v8 = vpop.f32.mrb[0].mxu1  ;;  %v1542_v9 = vpop.f32.mrb[1].mxu0 }
 0x128   : > { %v2561_v10 = vsel %vm2527_vm2, %v3115_v8, 0.0  ;;  %v2574_v11 = vmul.f32 %v3115_v8, %v3115_v8  ;;  %v2528_v12 = vsel %vm2527_vm2, %v1542_v9, 0.0  ;;  %v2541_v13 = vmul.f32 %v1542_v9, %v1542_v9  ;;  %v2504_v14 = vpop.f32.mrb[1].mxu1 }
 0x129   : > { %v2546_v15 = vsel %vm2527_vm2, %v2542_v7, 0.0  ;;  %v2530_v16 = vadd.f32 %v2529_v6, %v2528_v12  ;;  %v2560_v17 = vsel %vm2527_vm2, %v2504_v14, 0.0  ;;  %v2573_v18 = vmul.f32 %v2504_v14, %v2504_v14 }
 0x12a   : > { %v2578_v19 = vsel %vm2527_vm2, %v2574_v11, 0.0  ;;  %v2545_v20 = vsel %vm2527_vm2, %v2541_v13, 0.0  ;;  %v2562_v21 = vadd.f32 %v2561_v10, %v2560_v17  ;;  %v3046_v22 = vpop.f32.mrb[2].mxu0 }
 0x12b   : > { %v2547_v23 = vadd.f32 %v2546_v15, %v2545_v20  ;;  %v2577_v24 = vsel %vm2527_vm2, %v2573_v18, 0.0  ;;  %v3118_v25 = vpop.f32.mrb[2].mxu1  ;;  %v1552_v26 = vpop.f32.mrb[3].mxu0  ;;  %v2544_v30 = vmul.f32 %v3046_v22, %v3046_v22  ;;  %v2533_v34 = vsel %vm2527_vm2, %v3046_v22, 0.0 }
 0x12c   : > { %v2579_v27 = vadd.f32 %v2578_v19, %v2577_v24  ;;  %v2531_v28 = vsel %vm2527_vm2, %v1552_v26, 0.0  ;;  %v2514_v29 = vpop.f32.mrb[3].mxu1  ;;  %v2543_v32 = vmul.f32 %v1552_v26, %v1552_v26  ;;  %v2576_v35 = vmul.f32 %v3118_v25, %v3118_v25 }
 0x12d   : > { %v2532_v31 = vadd.f32 %v2531_v28, %v2530_v16  ;;  %v2563_v33 = vsel %vm2527_vm2, %v2514_v29, 0.0  ;;  %v2575_v37 = vmul.f32 %v2514_v29, %v2514_v29  ;;  %v2565_v38 = vsel %vm2527_vm2, %v3118_v25, 0.0 }
 0x12e   : > { %v2564_v36 = vadd.f32 %v2563_v33, %v2562_v21  ;;  %v2548_v40 = vsel %vm2527_vm2, %v2543_v32, 0.0  ;;  %v2550_v44 = vsel %vm2527_vm2, %v2544_v30, 0.0  ;;  %v2582_v47 = vsel %vm2527_vm2, %v2576_v35, 0.0 }
 0x12f   : > { %v2534_v39 = vadd.f32 %v2533_v34, %v2532_v31  ;;  %v2549_v41 = vadd.f32 %v2548_v40, %v2547_v23  ;;  %v2580_v43 = vsel %vm2527_vm2, %v2575_v37, 0.0 }
 0x130   : > { %v2566_v42 = vadd.f32 %v2565_v38, %v2564_v36  ;;  %v2581_v46 = vadd.f32 %v2580_v43, %v2579_v27 }
 0x131   : > { %v2535_v45 = vrot.slane %v2534_v39, 4  ;;  %v2551_v48 = vadd.f32 %v2550_v44, %v2549_v41 }
 0x132   : > { %v2567_v49 = vrot.slane %v2566_v42, 4  ;;  %v2583_v51 = vadd.f32 %v2582_v47, %v2581_v46 }
 0x133   : > { %v2536_v50 = vadd.f32 %v2535_v45, %v2534_v39  ;;  %v2552_v52 = vrot.slane %v2551_v48, 4 }
 0x134   : > { %v2568_v53 = vadd.f32 %v2567_v49, %v2566_v42  ;;  %v2584_v55 = vrot.slane %v2583_v51, 4 }
 0x135   : > { %v2537_v54 = vrot.slane %v2536_v50, 2  ;;  %v2553_v56 = vadd.f32 %v2552_v52, %v2551_v48 }
 0x136   : > { %v2569_v57 = vrot.slane %v2568_v53, 2  ;;  %v2585_v59 = vadd.f32 %v2584_v55, %v2583_v51 }
 0x137   : > { %v2538_v58 = vadd.f32 %v2537_v54, %v2536_v50  ;;  %v2554_v60 = vrot.slane %v2553_v56, 2 }
 0x138   : > { %v2570_v61 = vadd.f32 %v2569_v57, %v2568_v53  ;;  %v2586_v62 = vrot.slane %v2585_v59, 2 }
 0x139   : > { %v2539_v63 = vrot.slane %v2538_v58, 1  ;;  %v2555_v0 = vadd.f32 %v2554_v60, %v2553_v56 }
 0x13a   : > { %v2571_v1 = vrot.slane %v2570_v61, 1  ;;  %v2587_v2 = vadd.f32 %v2586_v62, %v2585_v59 }
 0x13b   : > { %v2556_v3 = vrot.slane %v2555_v0, 1  ;;  %v2540_v5 = vadd.f32 %v2539_v63, %v2538_v58 }
 0x13c   : > { %v2588_v4 = vrot.slane %v2587_v2, 1  ;;  %v2572_v7 = vadd.f32 %v2571_v1, %v2570_v61 }
 0x13d   : > { %v2557_v6 = vadd.f32 %v2556_v3, %v2555_v0 }
 0x13e   : > { %v2589_v8 = vadd.f32 %v2588_v4, %v2587_v2 }
 0x13f   : > { %v2559_v9 = vsel %vm2558_vm3, %v2540_v5, %v2557_v6 }
 0x140   : > { %v2590_v10 = vsel %vm2558_vm3, %v2572_v7, %v2589_v8 }
 0x141   : > { %v2591_v11 = vadd.f32 %v2590_v10, %v2559_v9 }
 0x143   : > { %2593 = vst.msk [vmem:[%s470_s29] sm:$0x3] %vm2592_vm4, %v2591_v11 }
 0x144 PF: > { %s19_s30 = sadd.s32 1, %s3258_s30  }
 0x145   : > { %p16_p4 = scmp.ge.s32.totalorder %s19_s30, 4  }
 0x147   :  { %18 = sbr.rel (!%p16_p4) target bundleno = 1 (0x1), region = 119 }

// kernel: svtr_patch_embed.4
= control target key start
LH: loop header
LB: loop body
LE: loop exit
PB: predicated region body
PF: predicated region fallthrough
CT: control target
= control target key end

     0   :  { %s4505_s17 = smov 0   ;;  %s4910_s0 = inlined_call_operand.vmem [shape: f32[2,9,5,4], index: 0, kind: input, shape index: {}]   ;;  %s4911_s1 = inlined_call_operand.vmem [shape: f32[2,9,5,4], index: 1, kind: input, shape index: {}]   ;;  %s4912_s2 = inlined_call_operand.vmem [shape: f32[2,9,5,4], index: 2, kind: input, shape index: {}]   ;;  %s4913_s3 = inlined_call_operand.vmem [shape: f32[2,9,5,4], index: 3, kind: input, shape index: {}]   ;;  %s4914_s4 = inlined_call_operand.vmem [shape: f32[2,9,5,4], index: 4, kind: input, shape index: {}]   ;;  %s4915_s5 = inlined_call_operand.vmem [shape: f32[2,9,5,4], index: 5, kind: input, shape index: {}]   ;;  %s4916_s6 = inlined_call_operand.vmem [shape: f32[2,9,5,4], index: 6, kind: input, shape index: {}]   ;;  %s4917_s7 = inlined_call_operand.vmem [shape: f32[2,9,5,4], index: 7, kind: input, shape index: {}]   ;;  %s4918_s8 = inlined_call_operand.vmem [shape: f32[9,4,16], index: 8, kind: input, shape index: {}]   ;;  %s4919_s9 = inlined_call_operand.vmem [shape: f32[2,16], index: 9, kind: input, shape index: {}]   ;;  %s4920_s10 = inlined_call_operand.vmem [shape: f32[9,16,32], index: 10, kind: input, shape index: {}]   ;;  %s4921_s11 = inlined_call_operand.vmem [shape: f32[2,2,32], index: 11, kind: output, shape index: {}]  }
   0x1 LB: > { %s3723_s18 = sadd.s32 4294967295, %s4442_s17   ;;  %p3727_p0 = scmp.ge.s32.totalorder %s4442_s17, 1  ;;  %s4442_s17 = sphi %s4505_s17, %s21_s17  }
   0x2   : > { %p407_p1 = scmp.lt.s32.totalorder %s4442_s17, 3 }
   0x4   : > { %p408_p2 = pnand %p3727_p0, %p407_p1 }
   0x5   : > { %v3737_v0 = vld [vmem:[%s4918_s8 + $0x4] sm:$0xf] (!%p408_p2)  ;;  %vm565_vm0 = vcmask (!%p408_p2), 1043456   ;;  %p481_p3 = scmp.lt.s32.totalorder (!%p408_p2), %s3723_s18, 1  ;;  %v533_v1 = vld [vmem:[%s4918_s8] sm:$0xf] (!%p408_p2) }
   0x6   : > { %411 = sbr.rel (%p408_p2) target bundleno = 651 (0x28b), region = 64  ;;  %4113 = vmatprep.subr.msk.mxu1 (!%p408_p2), %vm565_vm0, %v3737_v0  ;;  %4041 = vmatprep.subr.msk.mxu0 (!%p408_p2), %vm565_vm0, %v3737_v0  ;;  %vm556_vm1 = vcmask (!%p408_p2), 31744   ;;  %v3748_v5 = vld [vmem:[%s4918_s8 + $0x8] sm:$0xf] (!%p408_p2)  ;;  %v3754_v14 = vld [vmem:[%s4918_s8 + $0xc] sm:$0xf] (!%p408_p2) }
   0x7   : > { %4114 = vmatpush3.msk.msra.mxu1 (!%p408_p2), %vm565_vm0, %v3737_v0  ;;  %4042 = vmatpush3.msk.msra.mxu0 (!%p408_p2), %vm565_vm0, %v3737_v0  ;;  %v3760_v23 = vld [vmem:[%s4918_s8 + $0x10] sm:$0xf] (!%p408_p2)  ;;  %v3766_v31 = vld [vmem:[%s4918_s8 + $0x14] sm:$0xf] (!%p408_p2)  ;;  %v3780_v40 = vld [vmem:[%s4918_s8 + $0x18] sm:$0xf] (!%p408_p2) }
   0x8   : > { %4121 = vmatprep.subr.msk.mxu1 (!%p408_p2), %vm565_vm0, %v533_v1  ;;  %4049 = vmatprep.subr.msk.mxu0 (!%p408_p2), %vm565_vm0, %v533_v1  ;;  %v3794_v46 = vld [vmem:[%s4918_s8 + $0x1c] sm:$0xf] (!%p408_p2)  ;;  %v3808_v54 = vld [vmem:[%s4918_s8 + $0x20] sm:$0xf] (!%p408_p2)  ;;  %vm2662_vm2 = vcmask (!%p408_p2), 257024   ;;  %vm2671_vm3 = vcmask (!%p408_p2), 130048  }
   0x9   : > { %vm2761_vm4 = vcmask (!%p408_p2), 256000   ;;  %vm3551_vm5 = vcmask (!%p408_p2), 261120   ;;  %vm3582_vm6 = vcmask (!%p408_p2), 1040384   ;;  %vm3584_vm7 = vcmask (!%p408_p2), 254976  }
   0xd   : > { %s4923_s18 = smov (!%p481_p3, %s3723_s18), 1 }
   0xe   : > { %s4528_s23 = smul.u32 72, %s4923_s18 }
  0x10   : > { %s4534_s26 = scalar_lea.vmem %s4911_s1, %s4528_s23  ;;  %s4541_s29 = scalar_lea.vmem %s4913_s3, %s4528_s23 }
  0x11   : > { %v4358_v2 = vld [vmem:[%s4534_s26] ss:$8 sps:$4 sm:$0xff]   ;;  %v4360_v4 = vld [vmem:[%s4534_s26 + $0x10] ss:$8 sps:$4 sm:$0xff]   ;;  %s4557_s15 = scalar_lea.vmem %s4910_s0, %s4528_s23  ;;  %s4569_s20 = scalar_lea.vmem %s4912_s2, %s4528_s23 }
  0x12   : > { %v4359_v3 = vld [vmem:[%s4541_s29] ss:$8 sps:$4 sm:$0xff]   ;;  %4043 = vmatprep.mubr.msk.f32.mxu0 %vm556_vm1, %v4358_v2  ;;  %v4361_v6 = vld [vmem:[%s4541_s29 + $0x10] ss:$8 sps:$4 sm:$0xff]   ;;  %s4609_s27 = scalar_lea.vmem %s4914_s4, %s4528_s23  ;;  %s515_s12 = scalar_lea.vmem %s4916_s6, %s4528_s23 }
  0x13   : > { %4115 = vmatprep.mubr.msk.f32.mxu1 %vm556_vm1, %v4359_v3  ;;  %4044 = vmatmul.mubr.msk.f32.vlgmr.msra.gmra.mrb[0].mxu0 %vm556_vm1, %v4360_v4  ;;  %v4362_v7 = vld [vmem:[%s4534_s26 + $0x20] ss:$8 sps:$4 sm:$0xff]   ;;  %v4364_v9 = vld [vmem:[%s4534_s26 + $0x30] ss:$8 sps:$4 sm:$0xff]   ;;  %s510_s21 = scalar_lea.vmem %s4915_s5, %s4528_s23  ;;  %s520_s30 = scalar_lea.vmem %s4917_s7, %s4528_s23 }
  0x14   : > { %4116 = vmatmul.mubr.msk.f32.vlgmr.msra.gmra.mrb[0].mxu1 %vm556_vm1, %v4361_v6  ;;  %v4363_v8 = vld [vmem:[%s4541_s29 + $0x20] ss:$8 sps:$4 sm:$0xff]   ;;  %4050 = vmatpush3.msk.msra.mxu0 %vm565_vm0, %v533_v1  ;;  %v4365_v10 = vld [vmem:[%s4541_s29 + $0x30] ss:$8 sps:$4 sm:$0xff]  }
  0x15   : > { %4122 = vmatpush3.msk.msra.mxu1 %vm565_vm0, %v533_v1  ;;  %4046 = vmatprep.mubr.msk.f32.mxu0 %vm556_vm1, %v4362_v7  ;;  %v4366_v11 = vld [vmem:[%s4557_s15] ss:$8 sps:$4 sm:$0xff]   ;;  %v4368_v13 = vld [vmem:[%s4557_s15 + $0x10] ss:$8 sps:$4 sm:$0xff]  }
  0x16   : > { %4118 = vmatprep.mubr.msk.f32.mxu1 %vm556_vm1, %v4363_v8  ;;  %4129 = vmatprep.subr.msk.mxu1 %vm565_vm0, %v3748_v5  ;;  %v4367_v12 = vld [vmem:[%s4569_s20] ss:$8 sps:$4 sm:$0xff]   ;;  %v4369_v15 = vld [vmem:[%s4569_s20 + $0x10] ss:$8 sps:$4 sm:$0xff]  }
  0x17   : > { %4047 = vmatmul.mubr.msk.f32.gmra.mrb[2].mxu0 %vm556_vm1, %v4364_v9  ;;  %4057 = vmatprep.subr.msk.mxu0 %vm565_vm0, %v3748_v5  ;;  %v4370_v16 = vld [vmem:[%s4557_s15 + $0x20] ss:$8 sps:$4 sm:$0xff]   ;;  %v4372_v18 = vld [vmem:[%s4557_s15 + $0x30] ss:$8 sps:$4 sm:$0xff]  }
  0x18   : > { %4119 = vmatmul.mubr.msk.f32.gmra.mrb[2].mxu1 %vm556_vm1, %v4365_v10  ;;  %4051 = vmatprep.mubr.msk.f32.mxu0 %vm556_vm1, %v4366_v11  ;;  %v4371_v17 = vld [vmem:[%s4569_s20 + $0x20] ss:$8 sps:$4 sm:$0xff]   ;;  %v4373_v19 = vld [vmem:[%s4569_s20 + $0x30] ss:$8 sps:$4 sm:$0xff]  }
  0x19   : > { %4123 = vmatprep.mubr.msk.f32.mxu1 %vm556_vm1, %v4367_v12  ;;  %v4374_v20 = vld [vmem:[%s4557_s15 + $0x1] ss:$8 sps:$4 sm:$0xff]   ;;  %v4375_v21 = vld [vmem:[%s4557_s15 + $0x11] ss:$8 sps:$4 sm:$0xff]  }
  0x1a   : > { %v4376_v22 = vld [vmem:[%s4557_s15 + $0x21] ss:$8 sps:$4 sm:$0xff]   ;;  %v4377_v24 = vld [vmem:[%s4557_s15 + $0x31] ss:$8 sps:$4 sm:$0xff]  }
  0x1b   : > { %4052 = vmatmul.mubr.msk.f32.vlgmr.msra.gmra.mrb[0].mxu0 %vm556_vm1, %v4368_v13  ;;  %v4378_v25 = vld [vmem:[%s4609_s27] ss:$8 sps:$4 sm:$0xff]   ;;  %v4380_v27 = vld [vmem:[%s4609_s27 + $0x10] ss:$8 sps:$4 sm:$0xff]  }
  0x1c   : > { %4124 = vmatmul.mubr.msk.f32.vlgmr.msra.gmra.mrb[0].mxu1 %vm556_vm1, %v4369_v15  ;;  %4058 = vmatpush3.msk.msra.mxu0 %vm565_vm0, %v3748_v5  ;;  %v4379_v26 = vld [vmem:[%s515_s12] ss:$8 sps:$4 sm:$0xff]   ;;  %v4381_v28 = vld [vmem:[%s515_s12 + $0x10] ss:$8 sps:$4 sm:$0xff]  }
  0x1d   : > { %4130 = vmatpush3.msk.msra.mxu1 %vm565_vm0, %v3748_v5  ;;  %4054 = vmatprep.mubr.msk.f32.mxu0 %vm556_vm1, %v4370_v16  ;;  %v4382_v29 = vld [vmem:[%s4609_s27 + $0x20] ss:$8 sps:$4 sm:$0xff]   ;;  %v4384_v32 = vld [vmem:[%s4609_s27 + $0x30] ss:$8 sps:$4 sm:$0xff]  }
  0x1e   : > { %4126 = vmatprep.mubr.msk.f32.mxu1 %vm556_vm1, %v4371_v17  ;;  %4137 = vmatprep.subr.msk.mxu1 %vm565_vm0, %v3754_v14  ;;  %v4383_v30 = vld [vmem:[%s515_s12 + $0x20] ss:$8 sps:$4 sm:$0xff]   ;;  %v4385_v33 = vld [vmem:[%s515_s12 + $0x30] ss:$8 sps:$4 sm:$0xff]  }
  0x1f   : > { %4055 = vmatmul.mubr.msk.f32.gmra.mrb[2].mxu0 %vm556_vm1, %v4372_v18  ;;  %4065 = vmatprep.subr.msk.mxu0 %vm565_vm0, %v3754_v14  ;;  %v4386_v34 = vld [vmem:[%s510_s21] ss:$8 sps:$4 sm:$0xff]   ;;  %v4388_v36 = vld [vmem:[%s510_s21 + $0x10] ss:$8 sps:$4 sm:$0xff]   ;;  %v2582_v18 = vlaneseq }
  0x20   : > { %4127 = vmatmul.mubr.msk.f32.gmra.mrb[2].mxu1 %vm556_vm1, %v4373_v19  ;;  %4059 = vmatprep.mubr.msk.f32.mxu0 %vm556_vm1, %v4367_v12  ;;  %v4387_v35 = vld [vmem:[%s520_s30] ss:$8 sps:$4 sm:$0xff]   ;;  %v4389_v37 = vld [vmem:[%s520_s30 + $0x10] ss:$8 sps:$4 sm:$0xff]  }
  0x21   : > { %4131 = vmatprep.mubr.msk.f32.mxu1 %vm556_vm1, %v4374_v20  ;;  %v4390_v38 = vld [vmem:[%s510_s21 + $0x20] ss:$8 sps:$4 sm:$0xff]   ;;  %v4392_v41 = vld [vmem:[%s510_s21 + $0x30] ss:$8 sps:$4 sm:$0xff]   ;;  %s3736_s21 = sshll.u32 %s4923_s18, 1 }
  0x22   : > { %v4391_v39 = vld [vmem:[%s520_s30 + $0x20] ss:$8 sps:$4 sm:$0xff]   ;;  %v4393_v42 = vld [vmem:[%s520_s30 + $0x30] ss:$8 sps:$4 sm:$0xff]   ;;  %s524_s24 = scalar_lea.vmem %s4921_s11, %s3736_s21 }
  0x23   : > { %4060 = vmatmul.mubr.msk.f32.vlgmr.msra.gmra.mrb[0].mxu0 %vm556_vm1, %v4369_v15  ;;  %v4394_v43 = vld [vmem:[%s4609_s27 + $0x1] ss:$8 sps:$4 sm:$0xff]   ;;  %v4395_v44 = vld [vmem:[%s4609_s27 + $0x11] ss:$8 sps:$4 sm:$0xff]  }
  0x24   : > { %4132 = vmatmul.mubr.msk.f32.vlgmr.msra.gmra.mrb[0].mxu1 %vm556_vm1, %v4375_v21  ;;  %4062 = vmatprep.mubr.msk.f32.mxu0 %vm556_vm1, %v4371_v17  ;;  %v4396_v45 = vld [vmem:[%s4609_s27 + $0x21] ss:$8 sps:$4 sm:$0xff]   ;;  %v4397_v47 = vld [vmem:[%s4609_s27 + $0x31] ss:$8 sps:$4 sm:$0xff]   ;;  %v4444_v17 = vmov 0.0  }
  0x25   : > { %4138 = vmatpush3.msk.msra.mxu1 %vm565_vm0, %v3754_v14  ;;  %4134 = vmatprep.mubr.msk.f32.mxu1 %vm556_vm1, %v4376_v22  ;;  %v4398_v48 = vld [vmem:[%s4557_s15 + $0x8] ss:$8 sps:$4 sm:$0xff]   ;;  %v4400_v50 = vld [vmem:[%s4557_s15 + $0x18] ss:$8 sps:$4 sm:$0xff]   ;;  %2666 = vst.msk [vmem:[#allocation2 + $0xc] sm:$0xf] %vm2662_vm2, %v4444_v17 }
  0x26   : > { %4066 = vmatpush3.msk.msra.mxu0 %vm565_vm0, %v3754_v14  ;;  %4145 = vmatprep.subr.msk.mxu1 %vm565_vm0, %v3760_v23  ;;  %v4399_v49 = vld [vmem:[%s4569_s20 + $0x8] ss:$8 sps:$4 sm:$0xff]   ;;  %v4401_v51 = vld [vmem:[%s4569_s20 + $0x18] ss:$8 sps:$4 sm:$0xff]   ;;  %2663 = vst.msk [vmem:[#allocation2] sm:$0xf] %vm2662_vm2, %v4444_v17 }
  0x27   : > { %4063 = vmatmul.mubr.msk.f32.gmra.mrb[2].mxu0 %vm556_vm1, %v4373_v19  ;;  %4073 = vmatprep.subr.msk.mxu0 %vm565_vm0, %v3760_v23  ;;  %v4402_v52 = vld [vmem:[%s4557_s15 + $0x28] ss:$8 sps:$4 sm:$0xff]   ;;  %v4404_v55 = vld [vmem:[%s4557_s15 + $0x38] ss:$8 sps:$4 sm:$0xff]   ;;  %2664 = vst.msk [vmem:[#allocation2 + $0x4] sm:$0xf] %vm2662_vm2, %v4444_v17 }
  0x28   : > { %4135 = vmatmul.mubr.msk.f32.gmra.mrb[2].mxu1 %vm556_vm1, %v4377_v24  ;;  %4067 = vmatprep.mubr.msk.f32.mxu0 %vm556_vm1, %v4378_v25  ;;  %v4403_v53 = vld [vmem:[%s4569_s20 + $0x28] ss:$8 sps:$4 sm:$0xff]   ;;  %v4405_v56 = vld [vmem:[%s4569_s20 + $0x38] ss:$8 sps:$4 sm:$0xff]   ;;  %2665 = vst.msk [vmem:[#allocation2 + $0x8] sm:$0xf] %vm2662_vm2, %v4444_v17 }
  0x29   : > { %4139 = vmatprep.mubr.msk.f32.mxu1 %vm556_vm1, %v4379_v26  ;;  %v4406_v57 = vld [vmem:[%s4534_s26 + $0x8] ss:$8 sps:$4 sm:$0xff]   ;;  %v4408_v59 = vld [vmem:[%s4534_s26 + $0x18] ss:$8 sps:$4 sm:$0xff]   ;;  %v2583_v19 = vshrl.u32 %v2582_v18, 7 }
  0x2a   : > { %v4407_v58 = vld [vmem:[%s4541_s29 + $0x8] ss:$8 sps:$4 sm:$0xff]   ;;  %v4409_v60 = vld [vmem:[%s4541_s29 + $0x18] ss:$8 sps:$4 sm:$0xff]  }
  0x2b   : > { %4068 = vmatmul.mubr.msk.f32.vlgmr.msra.gmra.mrb[0].mxu0 %vm556_vm1, %v4380_v27  ;;  %v4410_v61 = vld [vmem:[%s4534_s26 + $0x28] ss:$8 sps:$4 sm:$0xff]   ;;  %v4412_v63 = vld [vmem:[%s4534_s26 + $0x38] ss:$8 sps:$4 sm:$0xff]   ;;  %v2584_v20 = vsub.s32 0, %v2583_v19  ;;  %v2592_v22 = vsub.s32 1, %v2583_v19 }
  0x2c   : > { %4140 = vmatmul.mubr.msk.f32.vlgmr.msra.gmra.mrb[0].mxu1 %vm556_vm1, %v4381_v28  ;;  %4070 = vmatprep.mubr.msk.f32.mxu0 %vm556_vm1, %v4382_v29  ;;  %v4411_v62 = vld [vmem:[%s4541_s29 + $0x28] ss:$8 sps:$4 sm:$0xff]   ;;  %v4413_v0 = vld [vmem:[%s4541_s29 + $0x38] ss:$8 sps:$4 sm:$0xff]  }
  0x2d   : > { %4146 = vmatpush3.msk.msra.mxu1 %vm565_vm0, %v3760_v23  ;;  %4142 = vmatprep.mubr.msk.f32.mxu1 %vm556_vm1, %v4383_v30  ;;  %v4414_v1 = vld [vmem:[%s4557_s15 + $0x9] ss:$8 sps:$4 sm:$0xff]   ;;  %v4415_v2 = vld [vmem:[%s4557_s15 + $0x19] ss:$8 sps:$4 sm:$0xff]  }
  0x2e   : > { %4074 = vmatpush3.msk.msra.mxu0 %vm565_vm0, %v3760_v23  ;;  %4153 = vmatprep.subr.msk.mxu1 %vm565_vm0, %v3766_v31  ;;  %v4416_v3 = vld [vmem:[%s4557_s15 + $0x29] ss:$8 sps:$4 sm:$0xff]   ;;  %v4417_v4 = vld [vmem:[%s4557_s15 + $0x39] ss:$8 sps:$4 sm:$0xff]  }
  0x2f   : > { %4071 = vmatmul.mubr.msk.f32.gmra.mrb[2].mxu0 %vm556_vm1, %v4384_v32  ;;  %4081 = vmatprep.subr.msk.mxu0 %vm565_vm0, %v3766_v31  ;;  %v2667_v5 = vld [vmem:[%s4920_s10] sm:$0xff]  ;;  %v2668_v6 = vld [vmem:[%s4920_s10 + $0x8] sm:$0xff]  ;;  %v3879_v7 = vld [vmem:[%s4920_s10 + $0x10] sm:$0xff] }
  0x30   : > { %4143 = vmatmul.mubr.msk.f32.gmra.mrb[2].mxu1 %vm556_vm1, %v4385_v33  ;;  %4075 = vmatprep.mubr.msk.f32.mxu0 %vm556_vm1, %v4386_v34  ;;  %v4248_v8 = vpack.c.bf16 %v2668_v6, %v2667_v5  ;;  %v3880_v9 = vld [vmem:[%s4920_s10 + $0x18] sm:$0xff]  ;;  %v3885_v11 = vld [vmem:[%s4920_s10 + $0x20] sm:$0xff]  ;;  %v3886_v12 = vld [vmem:[%s4920_s10 + $0x28] sm:$0xff] }
  0x31   : > { %4147 = vmatprep.mubr.msk.f32.mxu1 %vm556_vm1, %v4387_v35  ;;  %v4252_v10 = vpack.c.bf16 %v3880_v9, %v3879_v7  ;;  %v3889_v13 = vld [vmem:[%s4920_s10 + $0x30] sm:$0xff]  ;;  %v4764_v14 = vpack.c.bf16 %v3886_v12, %v3885_v11  ;;  %v3890_v15 = vld [vmem:[%s4920_s10 + $0x38] sm:$0xff]  ;;  %v2581_v21 = vld [vmem:[%s4919_s9] sm:$0x3] }
  0x32   : > { %v4769_v16 = vpack.c.bf16 %v3890_v15, %v3889_v13  ;;  %v2585_v23 = vrot.slane %v2581_v21, %v2584_v20  ;;  %v2593_v24 = vrot.slane %v2581_v21, %v2592_v22 }
  0x33   : > { %4076 = vmatmul.mubr.msk.f32.vlgmr.msra.gmra.mrb[0].mxu0 %vm556_vm1, %v4388_v36 }
  0x34   : > { %4148 = vmatmul.mubr.msk.f32.vlgmr.msra.gmra.mrb[0].mxu1 %vm556_vm1, %v4389_v37  ;;  %4078 = vmatprep.mubr.msk.f32.mxu0 %vm556_vm1, %v4390_v38 }
  0x35   : > { %4154 = vmatpush3.msk.msra.mxu1 %vm565_vm0, %v3766_v31  ;;  %4150 = vmatprep.mubr.msk.f32.mxu1 %vm556_vm1, %v4391_v39 }
  0x36   : > { %4082 = vmatpush3.msk.msra.mxu0 %vm565_vm0, %v3766_v31  ;;  %4161 = vmatprep.subr.msk.mxu1 %vm565_vm0, %v3780_v40 }
  0x37   : > { %4079 = vmatmul.mubr.msk.f32.gmra.mrb[2].mxu0 %vm556_vm1, %v4392_v41  ;;  %4089 = vmatprep.subr.msk.mxu0 %vm565_vm0, %v3780_v40 }
  0x38   : > { %4151 = vmatmul.mubr.msk.f32.gmra.mrb[2].mxu1 %vm556_vm1, %v4393_v42  ;;  %4083 = vmatprep.mubr.msk.f32.mxu0 %vm556_vm1, %v4379_v26 }
  0x39   : > { %4155 = vmatprep.mubr.msk.f32.mxu1 %vm556_vm1, %v4394_v43 }
  0x3b   : > { %4084 = vmatmul.mubr.msk.f32.vlgmr.msra.gmra.mrb[0].mxu0 %vm556_vm1, %v4381_v28 }
  0x3c   : > { %4156 = vmatmul.mubr.msk.f32.vlgmr.msra.gmra.mrb[0].mxu1 %vm556_vm1, %v4395_v44  ;;  %4086 = vmatprep.mubr.msk.f32.mxu0 %vm556_vm1, %v4383_v30 }
  0x3d   : > { %4162 = vmatpush3.msk.msra.mxu1 %vm565_vm0, %v3780_v40  ;;  %4158 = vmatprep.mubr.msk.f32.mxu1 %vm556_vm1, %v4396_v45 }
  0x3e   : > { %4090 = vmatpush3.msk.msra.mxu0 %vm565_vm0, %v3780_v40  ;;  %4169 = vmatprep.subr.msk.mxu1 %vm565_vm0, %v3794_v46 }
  0x3f   : > { %4087 = vmatmul.mubr.msk.f32.gmra.mrb[2].mxu0 %vm556_vm1, %v4385_v33  ;;  %4097 = vmatprep.subr.msk.mxu0 %vm565_vm0, %v3794_v46 }
  0x40   : > { %4159 = vmatmul.mubr.msk.f32.gmra.mrb[2].mxu1 %vm556_vm1, %v4397_v47  ;;  %4091 = vmatprep.mubr.msk.f32.mxu0 %vm556_vm1, %v4398_v48 }
  0x41   : > { %4163 = vmatprep.mubr.msk.f32.mxu1 %vm556_vm1, %v4399_v49 }
  0x43   : > { %4092 = vmatmul.mubr.msk.f32.vlgmr.msra.gmra.mrb[0].mxu0 %vm556_vm1, %v4400_v50 }
  0x44   : > { %4164 = vmatmul.mubr.msk.f32.vlgmr.msra.gmra.mrb[0].mxu1 %vm556_vm1, %v4401_v51  ;;  %4094 = vmatprep.mubr.msk.f32.mxu0 %vm556_vm1, %v4402_v52 }
  0x45   : > { %4170 = vmatpush3.msk.msra.mxu1 %vm565_vm0, %v3794_v46  ;;  %4166 = vmatprep.mubr.msk.f32.mxu1 %vm556_vm1, %v4403_v53 }
  0x46   : > { %4098 = vmatpush3.msk.msra.mxu0 %vm565_vm0, %v3794_v46  ;;  %4177 = vmatprep.subr.msk.mxu1 %vm565_vm0, %v3808_v54 }
  0x47   : > { %4095 = vmatmul.mubr.msk.f32.gmra.mrb[2].mxu0 %vm556_vm1, %v4404_v55  ;;  %4105 = vmatprep.subr.msk.mxu0 %vm565_vm0, %v3808_v54 }
  0x48   : > { %4167 = vmatmul.mubr.msk.f32.gmra.mrb[2].mxu1 %vm556_vm1, %v4405_v56  ;;  %4099 = vmatprep.mubr.msk.f32.mxu0 %vm556_vm1, %v4406_v57 }
  0x49   : > { %4171 = vmatprep.mubr.msk.f32.mxu1 %vm556_vm1, %v4407_v58 }
  0x4b   : > { %4100 = vmatmul.mubr.msk.f32.vlgmr.msra.gmra.mrb[0].mxu0 %vm556_vm1, %v4408_v59 }
  0x4c   : > { %4172 = vmatmul.mubr.msk.f32.vlgmr.msra.gmra.mrb[0].mxu1 %vm556_vm1, %v4409_v60  ;;  %4102 = vmatprep.mubr.msk.f32.mxu0 %vm556_vm1, %v4410_v61 }
  0x4d   : > { %4178 = vmatpush3.msk.msra.mxu1 %vm565_vm0, %v3808_v54  ;;  %4174 = vmatprep.mubr.msk.f32.mxu1 %vm556_vm1, %v4411_v62 }
  0x4e   : > { %4106 = vmatpush3.msk.msra.mxu0 %vm565_vm0, %v3808_v54  ;;  %4253 = vmatprep.subr.bf16.mxu1 %v4252_v10 }
  0x4f   : > { %4103 = vmatmul.mubr.msk.f32.gmra.mrb[2].mxu0 %vm556_vm1, %v4412_v63  ;;  %4249 = vmatprep.subr.bf16.mxu0 %v4248_v8 }
  0x50   : > { %4175 = vmatmul.mubr.msk.f32.gmra.mrb[2].mxu1 %vm556_vm1, %v4413_v0  ;;  %4107 = vmatprep.mubr.msk.f32.mxu0 %vm556_vm1, %v4399_v49 }
  0x51   : > { %4179 = vmatprep.mubr.msk.f32.mxu1 %vm556_vm1, %v4414_v1 }
  0x53   : > { %4108 = vmatmul.mubr.msk.f32.vlgmr.msra.gmra.mrb[0].mxu0 %vm556_vm1, %v4401_v51 }
  0x54   : > { %4180 = vmatmul.mubr.msk.f32.vlgmr.msra.gmra.mrb[0].mxu1 %vm556_vm1, %v4415_v2  ;;  %4110 = vmatprep.mubr.msk.f32.mxu0 %vm556_vm1, %v4403_v53 }
  0x55   : > { %4182 = vmatprep.mubr.msk.f32.mxu1 %vm556_vm1, %v4416_v3  ;;  %4251 = vmatpush3.bf16.msra.mxu0 %v4248_v8 }
  0x56   : > { %4255 = vmatpush3.bf16.msra.mxu1 %v4252_v10  ;;  %4257 = vmatprep.subr.bf16.mxu0 %v4764_v14 }
  0x57   : > { %4111 = vmatmul.mubr.msk.f32.gmra.mrb[2].mxu0 %vm556_vm1, %v4405_v56  ;;  %4261 = vmatprep.subr.bf16.mxu1 %v4769_v16 }
  0x58   : > { %4183 = vmatmul.mubr.msk.f32.gmra.mrb[2].mxu1 %vm556_vm1, %v4417_v4 }
 0x126   : > { %v4109_v25 = vpop.f32.mrb[0].mxu0 }
 0x127   : > { %v2587_v26 = vmul.f32 %v4109_v25, %v2585_v23  ;;  %v4181_v27 = vpop.f32.mrb[0].mxu1  ;;  %v1596_v28 = vpop.f32.mrb[1].mxu0 }
 0x128   : > { %v2619_v29 = vmul.f32 %v4181_v27, %v2585_v23  ;;  %v2586_v30 = vmul.f32 %v2585_v23, %v1596_v28  ;;  %v2558_v31 = vpop.f32.mrb[1].mxu1 }
 0x129   : > { %v2595_v32 = vadd.f32 %v2593_v24, %v2587_v26  ;;  %v2618_v33 = vmul.f32 %v2585_v23, %v2558_v31  ;;  %v3894_v31 = vld [vmem:[%s4920_s10 + $0x48] sm:$0xff] }
 0x12a   : > { %v2623_v34 = vadd.f32 %v2619_v29, %v2593_v24  ;;  %v2594_v35 = vadd.f32 %v2593_v24, %v2586_v30  ;;  %v4112_v36 = vpop.f32.mrb[2].mxu0  ;;  %v3893_v30 = vld [vmem:[%s4920_s10 + $0x40] sm:$0xff] }
 0x12b   : > { %v2603_v37 = vmul.f32 0.70710677, %v2595_v32  ;;  %v2622_v38 = vadd.f32 %v2618_v33, %v2593_v24  ;;  %v2589_v39 = vmul.f32 %v4112_v36, %v2585_v23  ;;  %v4184_v40 = vpop.f32.mrb[2].mxu1  ;;  %v1606_v41 = vpop.f32.mrb[3].mxu0  ;;  %v2599_v59 = vmul.f32 0.5, %v2595_v32  ;;  %v3897_v33 = vld [vmem:[%s4920_s10 + $0x50] sm:$0xff] }
 0x12c   : > { %v2631_v42 = vmul.f32 0.70710677, %v2623_v34  ;;  %v2602_v43 = vmul.f32 0.70710677, %v2594_v35  ;;  %v2568_v46 = vpop.f32.mrb[3].mxu1  ;;  %v2621_v47 = vmul.f32 %v4184_v40, %v2585_v23  ;;  %v2588_v48 = vmul.f32 %v2585_v23, %v1606_v41  ;;  %v3901_v41 = vld [vmem:[%s4920_s10 + $0x60] sm:$0xff] }
 0x12d   : > { %4420 = verf.f32 %v2603_v37  ;;  %v2630_v44 = vmul.f32 0.70710677, %v2622_v38  ;;  %v2597_v45 = vadd.f32 %v2593_v24, %v2589_v39  ;;  %v2620_v49 = vmul.f32 %v2585_v23, %v2568_v46  ;;  %v3909_v46 = vld [vmem:[%s4920_s10 + $0x80] sm:$0xff] }
 0x12e   : > { %4422 = verf.f32 %v2631_v42  ;;  %v2625_v51 = vadd.f32 %v2621_v47, %v2593_v24  ;;  %v2596_v52 = vadd.f32 %v2593_v24, %v2588_v48  ;;  %v2627_v62 = vmul.f32 0.5, %v2623_v34  ;;  %v3898_v34 = vld [vmem:[%s4920_s10 + $0x58] sm:$0xff]  ;;  %v3902_v42 = vld [vmem:[%s4920_s10 + $0x68] sm:$0xff] }
 0x12f   : > { %4424 = verf.f32 %v2602_v43  ;;  %v2605_v50 = vmul.f32 0.70710677, %v2597_v45  ;;  %v2624_v53 = vadd.f32 %v2620_v49, %v2593_v24  ;;  %v2598_v2 = vmul.f32 0.5, %v2594_v35  ;;  %v3905_v43 = vld [vmem:[%s4920_s10 + $0x70] sm:$0xff]  ;;  %v3910_v47 = vld [vmem:[%s4920_s10 + $0x88] sm:$0xff] }
 0x130   : > { %4426 = verf.f32 %v2630_v44  ;;  %v2633_v54 = vmul.f32 0.70710677, %v2625_v51  ;;  %v2604_v55 = vmul.f32 0.70710677, %v2596_v52  ;;  %v2626_v6 = vmul.f32 0.5, %v2622_v38  ;;  %v3906_v44 = vld [vmem:[%s4920_s10 + $0x78] sm:$0xff] }
 0x131   : > { %4428 = verf.f32 %v2605_v50  ;;  %v2632_v56 = vmul.f32 0.70710677, %v2624_v53  ;;  %v2601_v12 = vmul.f32 0.5, %v2597_v45  ;;  %v2629_v18 = vmul.f32 0.5, %v2625_v51  ;;  %v2757_v48 = vld [vmem:[#allocation2 + $0xd] sm:$0x7] }
 0x132   : > { %4430 = verf.f32 %v2633_v54  ;;  %v2600_v24 = vmul.f32 0.5, %v2596_v52  ;;  %v2628_v27 = vmul.f32 0.5, %v2624_v53  ;;  %v4264_v39 = vpack.c.bf16 %v3894_v31, %v3893_v30  ;;  %v2755_v50 = vld [vmem:[#allocation2 + $0x5] sm:$0x7] }
 0x133   : > { %4432 = verf.f32 %v2604_v55  ;;  %v4268_v40 = vpack.c.bf16 %v3898_v34, %v3897_v33  ;;  %v4272_v45 = vpack.c.bf16 %v3902_v42, %v3901_v41  ;;  %v2756_v55 = vld [vmem:[#allocation2 + $0x9] sm:$0x7] }
 0x134   : > { %4434 = verf.f32 %v2632_v56 }
 0x137   : > { %v4421_v57 = vpop.eup %4420 }
 0x138   : > { %v4423_v58 = vpop.eup %4422  ;;  %v2611_v60 = vadd.f32 1.0, %v4421_v57 }
 0x139   : > { %v4425_v61 = vpop.eup %4424  ;;  %v2639_v63 = vadd.f32 1.0, %v4423_v58  ;;  %v3041_v58 = vld [vmem:[#allocation2 + $0x1] sm:$0x7] }
 0x13a   : > { %v4427_v0 = vpop.eup %4426  ;;  %v2615_v1 = vmul.f32 %v2611_v60, %v2599_v59  ;;  %v2610_v3 = vadd.f32 1.0, %v4425_v61 }
 0x13b   : > { %v4429_v4 = vpop.eup %4428  ;;  %v2643_v5 = vmul.f32 %v2639_v63, %v2627_v62  ;;  %v2638_v7 = vadd.f32 1.0, %v4427_v0 }
 0x13c   : > { %v2614_v8 = vmul.f32 %v2610_v3, %v2598_v2  ;;  %v2613_v9 = vadd.f32 1.0, %v4429_v4  ;;  %v4431_v11 = vpop.eup %4430 }
 0x13d   : > { %v2642_v10 = vmul.f32 %v2638_v7, %v2626_v6  ;;  %v4433_v17 = vpop.eup %4432  ;;  %v2641_v19 = vadd.f32 1.0, %v4431_v11 }
 0x13e   : > { %v3881_v13 = vcombine.high %v2614_v8, %v2615_v1  ;;  %v3056_v15 = vcombine.low %v2614_v8, %v2615_v1  ;;  %v4435_v22 = vpop.eup %4434  ;;  %v2617_v23 = vmul.f32 %v2613_v9, %v2601_v12  ;;  %v2612_v25 = vadd.f32 1.0, %v4433_v17 }
 0x13f   : > { %v3875_v20 = vcombine.high %v2642_v10, %v2643_v5  ;;  %v2954_v21 = vcombine.low %v2642_v10, %v2643_v5  ;;  %v2645_v26 = vmul.f32 %v2641_v19, %v2629_v18  ;;  %v2640_v28 = vadd.f32 1.0, %v4435_v22 }
 0x140   : > { %4196 = vmatprep.mubr.msk.f32.mxu1 %vm2671_vm3, %v3881_v13  ;;  %v2616_v29 = vmul.f32 %v2612_v25, %v2600_v24 }
 0x141   : > { %4189 = vmatprep.mubr.msk.f32.mxu0 %vm2671_vm3, %v3875_v20  ;;  %v2644_v32 = vmul.f32 %v2640_v28, %v2628_v27 }
 0x142   : > { %v3882_v35 = vcombine.high %v2616_v29, %v2617_v23  ;;  %v3057_v36 = vcombine.low %v2616_v29, %v2617_v23 }
 0x143   : > { %v3876_v37 = vcombine.high %v2644_v32, %v2645_v26  ;;  %v2955_v38 = vcombine.low %v2644_v32, %v2645_v26 }
 0x144   : > { %4197 = vmatmul.mubr.msk.f32.vlgmr.msra.gmra.mrb[4].mxu1 %vm2671_vm3, %v3882_v35 }
 0x145   : > { %4190 = vmatmul.mubr.msk.f32.vlgmr.msra.gmra.mrb[4].mxu0 %vm2671_vm3, %v3876_v37  ;;  %4263 = vmatpush3.bf16.msra.mxu1 %v4769_v16  ;;  %v4276_v16 = vpack.c.bf16 %v3906_v44, %v3905_v43 }
 0x146   : > { %4259 = vmatpush3.bf16.msra.mxu0 %v4764_v14  ;;  %4203 = vmatprep.mubr.msk.f32.mxu0 %vm2671_vm3, %v3875_v20  ;;  %v4280_v14 = vpack.c.bf16 %v3910_v47, %v3909_v46 }
 0x147   : > { %4210 = vmatprep.mubr.msk.f32.mxu1 %vm2671_vm3, %v2954_v21  ;;  %4265 = vmatprep.subr.bf16.mxu0 %v4264_v39 }
 0x148   : > { %4211 = vmatmul.mubr.msk.f32.vlgmr.msra.gmra.mrb[6].mxu1 %vm2671_vm3, %v2955_v38  ;;  %4269 = vmatprep.subr.bf16.mxu1 %v4268_v40 }
 0x149   : > { %4204 = vmatmul.mubr.msk.f32.vlgmr.msra.gmra.mrb[6].mxu0 %vm2671_vm3, %v3876_v37  ;;  %4271 = vmatpush3.bf16.msra.mxu1 %v4268_v40 }
 0x14a   : > { %4267 = vmatpush3.bf16.msra.mxu0 %v4264_v39  ;;  %4217 = vmatprep.mubr.msk.f32.mxu0 %vm2671_vm3, %v3056_v15 }
 0x14b   : > { %4224 = vmatprep.mubr.msk.f32.mxu1 %vm2671_vm3, %v2954_v21  ;;  %4273 = vmatprep.subr.bf16.mxu0 %v4272_v45 }
 0x14c   : > { %4225 = vmatmul.mubr.msk.f32.vlgmr.msra.gmra.mrb[8].mxu1 %vm2671_vm3, %v2955_v38  ;;  %4277 = vmatprep.subr.bf16.mxu1 %v4276_v16 }
 0x14d   : > { %4218 = vmatmul.mubr.msk.f32.vlgmr.msra.gmra.mrb[8].mxu0 %vm2671_vm3, %v3057_v36  ;;  %4279 = vmatpush3.bf16.msra.mxu1 %v4276_v16 }
 0x14e   : > { %4275 = vmatpush3.bf16.msra.mxu0 %v4272_v45  ;;  %4231 = vmatprep.mubr.msk.f32.mxu0 %vm2671_vm3, %v3875_v20 }
 0x14f   : > { %4238 = vmatprep.mubr.msk.f32.mxu1 %vm2671_vm3, %v3881_v13  ;;  %4281 = vmatprep.subr.bf16.mxu0 %v4280_v14 }
 0x150   : > { %4239 = vmatmul.mubr.msk.f32.vlgmr.msra.gmra.mrb[10].mxu1 %vm2671_vm3, %v3882_v35 }
 0x151   : > { %4232 = vmatmul.mubr.msk.f32.vlgmr.msra.gmra.mrb[10].mxu0 %vm2671_vm3, %v3876_v37 }
 0x152   : > { %4283 = vmatpush3.bf16.msra.mxu0 %v4280_v14  ;;  %4245 = vmatprep.mubr.msk.f32.mxu0 %vm2671_vm3, %v3875_v20 }
 0x155   : > { %4246 = vmatmul.mubr.msk.f32.vlgmr.msra.gmra.mrb[12].mxu0 %vm2671_vm3, %v3876_v37 }
 0x217   : > { %v4198_v49 = vpop.f32.mrb[4].mxu1 }
 0x218   : > { %v4191_v51 = vpop.f32.mrb[4].mxu0  ;;  %v2840_v52 = vpop.f32.mrb[5].mxu1 }
 0x219   : > { %v2760_v53 = vadd.f32 %v4191_v51, %v2757_v48  ;;  %v2742_v54 = vpop.f32.mrb[5].mxu0  ;;  %v2850_v9 = vcombine.high %v2840_v52, %v2840_v52 }
 0x21a   : > { %v2752_v56 = vcombine.high %v2742_v54, %v2742_v54  ;;  %v2758_v57 = vadd.f32 %v2755_v50, %v2742_v54 }
 0x21b   : > { %2764 = vst.msk [vmem:[#allocation2 + $0xd] sm:$0x7] %vm2761_vm4, %v2760_v53  ;;  %v4212_v59 = vpop.f32.mrb[6].mxu1 }
 0x21c   : > { %v2759_v60 = vadd.f32 %v2756_v55, %v2752_v56  ;;  %2762 = vst.msk [vmem:[#allocation2 + $0x5] sm:$0x7] %vm2761_vm4, %v2758_v57  ;;  %v4205_v61 = vpop.f32.mrb[6].mxu0  ;;  %v3026_v62 = vpop.f32.mrb[7].mxu1  ;;  %v3038_v31 = vcombine.high %v4212_v59, %v4212_v59 }
 0x21d   : > { %v2930_v63 = vpop.f32.mrb[7].mxu0  ;;  %v3045_v0 = vadd.f32 %v3041_v58, %v3026_v62  ;;  %v3037_v33 = vcombine.high %v3026_v62, %v3026_v62 }
 0x21e   : > { %2763 = vst.msk [vmem:[#allocation2 + $0x9] sm:$0x7] %vm2761_vm4, %v2759_v60  ;;  %v2940_v25 = vcombine.high %v2930_v63, %v2930_v63 }
 0x21f   : > { %3049 = vst.msk [vmem:[#allocation2 + $0x1] sm:$0x7] %vm2761_vm4, %v3045_v0  ;;  %v4834_v1 = vpop.f32.mrb[8].mxu1 }
 0x220   : > { %v4219_v2 = vpop.f32.mrb[8].mxu0  ;;  %v4836_v3 = vpop.f32.mrb[9].mxu1 }
 0x221   : > { %v3128_v4 = vpop.f32.mrb[9].mxu0  ;;  %v3140_v41 = vcombine.high %v4219_v2, %v4219_v2  ;;  %v3235_v51 = vcombine.high %v4836_v3, %v4836_v3 }
 0x222   : > { %v2854_v5 = vld [vmem:[#allocation2 + $0xc] sm:$0xf]  ;;  %v3139_v43 = vcombine.high %v3128_v4, %v3128_v4 }
 0x223   : > { %v2857_v6 = vadd.f32 %v4198_v49, %v2854_v5  ;;  %v2852_v7 = vld [vmem:[#allocation2 + $0x4] sm:$0xf]  ;;  %v4838_v8 = vpop.f32.mrb[10].mxu1  ;;  %v3236_v49 = vcombine.high %v4834_v1, %v4834_v1 }
 0x224   : > { %v2855_v10 = vadd.f32 %v2852_v7, %v2840_v52  ;;  %v4840_v11 = vpop.f32.mrb[10].mxu0  ;;  %v4842_v12 = vpop.f32.mrb[11].mxu1 }
 0x225   : > { %2860 = vst.msk [vmem:[#allocation2 + $0xc] sm:$0xf] %vm2662_vm2, %v2857_v6  ;;  %v2853_v13 = vld [vmem:[#allocation2 + $0x8] sm:$0xf]  ;;  %v4845_v15 = vpop.f32.mrb[11].mxu0  ;;  %v3427_v5 = vcombine.high %v4842_v12, %v4842_v12 }
 0x226   : > { %v2856_v17 = vadd.f32 %v2853_v13, %v2850_v9  ;;  %2858 = vst.msk [vmem:[#allocation2 + $0x4] sm:$0xf] %vm2662_vm2, %v2855_v10  ;;  %v3143_v18 = vld [vmem:[#allocation2] sm:$0xf] }
 0x227   : > { %v3147_v19 = vadd.f32 %v3143_v18, %v3128_v4 }
 0x228   : > { %2859 = vst.msk [vmem:[#allocation2 + $0x8] sm:$0xf] %vm2662_vm2, %v2856_v17  ;;  %v4849_v20 = vpop.f32.mrb[12].mxu0 }
 0x229   : > { %3151 = vst.msk [vmem:[#allocation2] sm:$0xf] %vm2662_vm2, %v3147_v19  ;;  %v4852_v21 = vpop.f32.mrb[13].mxu0 }
 0x22a   : > { %v3523_v17 = vcombine.high %v4852_v21, %v4852_v21 }
 0x22c   : > { %v2944_v22 = vld [vmem:[#allocation2 + $0xc] sm:$0xf] }
 0x22d   : > { %v2947_v23 = vadd.f32 %v4205_v61, %v2944_v22  ;;  %v2942_v24 = vld [vmem:[#allocation2 + $0x4] sm:$0xf]  ;;  %v3331_v61 = vcombine.high %v4845_v15, %v4845_v15 }
 0x22e   : > { %v2945_v26 = vadd.f32 %v2942_v24, %v2930_v63 }
 0x22f   : > { %2950 = vst.msk [vmem:[#allocation2 + $0xc] sm:$0xf] %vm2662_vm2, %v2947_v23  ;;  %v2943_v27 = vld [vmem:[#allocation2 + $0x8] sm:$0xf] }
 0x230   : > { %v2946_v28 = vadd.f32 %v2943_v27, %v2940_v25  ;;  %2948 = vst.msk [vmem:[#allocation2 + $0x4] sm:$0xf] %vm2662_vm2, %v2945_v26  ;;  %v3239_v29 = vld [vmem:[#allocation2] sm:$0xf] }
 0x231   : > { %v3243_v30 = vadd.f32 %v3239_v29, %v4836_v3  ;;  %v3428_v3 = vcombine.high %v4838_v8, %v4838_v8 }
 0x232   : > { %2949 = vst.msk [vmem:[#allocation2 + $0x8] sm:$0xf] %vm2662_vm2, %v2946_v28 }
 0x233   : > { %3247 = vst.msk [vmem:[#allocation2] sm:$0xf] %vm2662_vm2, %v3243_v30 }
 0x236   : > { %v3044_v32 = vld [vmem:[#allocation2 + $0xd] sm:$0x7] }
 0x237   : > { %v3048_v34 = vadd.f32 %v3044_v32, %v3038_v31  ;;  %v3042_v35 = vld [vmem:[#allocation2 + $0x5] sm:$0x7] }
 0x238   : > { %v3046_v36 = vadd.f32 %v3042_v35, %v3037_v33 }
 0x239   : > { %3052 = vst.msk [vmem:[#allocation2 + $0xd] sm:$0x7] %vm2761_vm4, %v3048_v34  ;;  %v3043_v37 = vld [vmem:[#allocation2 + $0x9] sm:$0x7] }
 0x23a   : > { %v3047_v38 = vadd.f32 %v4212_v59, %v3043_v37  ;;  %3050 = vst.msk [vmem:[#allocation2 + $0x5] sm:$0x7] %vm2761_vm4, %v3046_v36  ;;  %v3335_v39 = vld [vmem:[#allocation2 + $0x1] sm:$0x7]  ;;  %v3332_v59 = vcombine.high %v4840_v11, %v4840_v11 }
 0x23b   : > { %v3339_v40 = vadd.f32 %v3335_v39, %v4845_v15 }
 0x23c   : > { %3051 = vst.msk [vmem:[#allocation2 + $0x9] sm:$0x7] %vm2761_vm4, %v3047_v38 }
 0x23d   : > { %3343 = vst.msk [vmem:[#allocation2 + $0x1] sm:$0x7] %vm2761_vm4, %v3339_v40 }
 0x240   : > { %v3146_v42 = vld [vmem:[#allocation2 + $0xc] sm:$0xf] }
 0x241   : > { %v3150_v44 = vadd.f32 %v3146_v42, %v3140_v41  ;;  %v3144_v45 = vld [vmem:[#allocation2 + $0x4] sm:$0xf] }
 0x242   : > { %v3148_v16 = vadd.f32 %v3144_v45, %v3139_v43 }
 0x243   : > { %v3145_v46 = vld [vmem:[#allocation2 + $0x8] sm:$0xf]  ;;  %3154 = vst.msk [vmem:[#allocation2 + $0xc] sm:$0xf] %vm2662_vm2, %v3150_v44 }
 0x244   : > { %v3149_v47 = vadd.f32 %v4219_v2, %v3145_v46  ;;  %3152 = vst.msk [vmem:[#allocation2 + $0x4] sm:$0xf] %vm2662_vm2, %v3148_v16  ;;  %v3431_v14 = vld [vmem:[#allocation2] sm:$0xf] }
 0x245   : > { %v3435_v48 = vadd.f32 %v3431_v14, %v4842_v12 }
 0x246   : > { %3153 = vst.msk [vmem:[#allocation2 + $0x8] sm:$0xf] %vm2662_vm2, %v3149_v47 }
 0x247   : > { %3439 = vst.msk [vmem:[#allocation2] sm:$0xf] %vm2662_vm2, %v3435_v48 }
 0x24a   : > { %v3242_v50 = vld [vmem:[#allocation2 + $0xc] sm:$0xf] }
 0x24b   : > { %v3246_v52 = vadd.f32 %v3242_v50, %v3236_v49  ;;  %v3240_v53 = vld [vmem:[#allocation2 + $0x4] sm:$0xf] }
 0x24c   : > { %v3244_v54 = vadd.f32 %v3240_v53, %v3235_v51 }
 0x24d   : > { %v3241_v55 = vld [vmem:[#allocation2 + $0x8] sm:$0xf]  ;;  %3250 = vst.msk [vmem:[#allocation2 + $0xc] sm:$0xf] %vm2662_vm2, %v3246_v52 }
 0x24e   : > { %v3245_v56 = vadd.f32 %v4834_v1, %v3241_v55  ;;  %3248 = vst.msk [vmem:[#allocation2 + $0x4] sm:$0xf] %vm2662_vm2, %v3244_v54  ;;  %v3527_v57 = vld [vmem:[#allocation2] sm:$0xf] }
 0x24f   : > { %v3531_v58 = vadd.f32 %v3527_v57, %v4852_v21 }
 0x250   : > { %3249 = vst.msk [vmem:[#allocation2 + $0x8] sm:$0xf] %vm2662_vm2, %v3245_v56 }
 0x251   : > { %3535 = vst.msk [vmem:[#allocation2] sm:$0xf] %vm2662_vm2, %v3531_v58 }
 0x254   : > { %v3338_v60 = vld [vmem:[#allocation2 + $0xd] sm:$0x7] }
 0x255   : > { %v3342_v62 = vadd.f32 %v3338_v60, %v3332_v59  ;;  %v3336_v63 = vld [vmem:[#allocation2 + $0x5] sm:$0x7] }
 0x256   : > { %v3340_v0 = vadd.f32 %v3336_v63, %v3331_v61 }
 0x257   : > { %v3337_v1 = vld [vmem:[#allocation2 + $0x9] sm:$0x7]  ;;  %3346 = vst.msk [vmem:[#allocation2 + $0xd] sm:$0x7] %vm2761_vm4, %v3342_v62 }
 0x258   : > { %v3341_v2 = vadd.f32 %v4840_v11, %v3337_v1  ;;  %3344 = vst.msk [vmem:[#allocation2 + $0x5] sm:$0x7] %vm2761_vm4, %v3340_v0  ;;  %v3524_v11 = vcombine.high %v4849_v20, %v4849_v20 }
 0x25a   : > { %3345 = vst.msk [vmem:[#allocation2 + $0x9] sm:$0x7] %vm2761_vm4, %v3341_v2 }
 0x25e   : > { %v3434_v4 = vld [vmem:[#allocation2 + $0xc] sm:$0xf] }
 0x25f   : > { %v3438_v6 = vadd.f32 %v3434_v4, %v3428_v3  ;;  %v3432_v7 = vld [vmem:[#allocation2 + $0x4] sm:$0xf] }
 0x260   : > { %v3436_v9 = vadd.f32 %v3432_v7, %v3427_v5 }
 0x261   : > { %v3433_v10 = vld [vmem:[#allocation2 + $0x8] sm:$0xf]  ;;  %3442 = vst.msk [vmem:[#allocation2 + $0xc] sm:$0xf] %vm2662_vm2, %v3438_v6 }
 0x262   : > { %v3437_v13 = vadd.f32 %v4838_v8, %v3433_v10  ;;  %3440 = vst.msk [vmem:[#allocation2 + $0x4] sm:$0xf] %vm2662_vm2, %v3436_v9  ;;  %v3539_v8 = vld [vmem:[#allocation2] sm:$0xf] }
 0x263   : > { %v3561_v27 = vmul.f32 %v3539_v8, %v3539_v8 }
 0x264   : > { %3441 = vst.msk [vmem:[#allocation2 + $0x8] sm:$0xf] %vm2662_vm2, %v3437_v13 }
 0x268   : > { %v3530_v15 = vld [vmem:[#allocation2 + $0xc] sm:$0xf] }
 0x269   : > { %v3534_v12 = vadd.f32 %v3530_v15, %v3524_v11  ;;  %v3528_v18 = vld [vmem:[#allocation2 + $0x4] sm:$0xf] }
 0x26a   : > { %v3532_v19 = vadd.f32 %v3528_v18, %v3523_v17 }
 0x26b   : > { %v3529_v22 = vld [vmem:[#allocation2 + $0x8] sm:$0xf]  ;;  %3538 = vst.msk [vmem:[#allocation2 + $0xc] sm:$0xf] %vm2662_vm2, %v3534_v12 }
 0x26c   : > { %v3533_v23 = vadd.f32 %v4849_v20, %v3529_v22  ;;  %3536 = vst.msk [vmem:[#allocation2 + $0x4] sm:$0xf] %vm2662_vm2, %v3532_v19 }
 0x26e   : > { %3537 = vst.msk [vmem:[#allocation2 + $0x8] sm:$0xf] %vm2662_vm2, %v3533_v23 }
 0x272   : > { %v3542_v25 = vld [vmem:[#allocation2 + $0xc] sm:$0xf] }
 0x273   : > { %v3540_v24 = vld [vmem:[#allocation2 + $0x4] sm:$0xf]  ;;  %v3564_v31 = vmul.f32 %v3542_v25, %v3542_v25 }
 0x274   : > { %v3547_v26 = vcombine.low %v3539_v8, %v3540_v24  ;;  %v3562_v28 = vmul.f32 %v3540_v24, %v3540_v24 }
 0x275   : > { %v3541_v29 = vld [vmem:[#allocation2 + $0x8] sm:$0xf] }
 0x276   : > { %v3548_v21 = vcombine.low %v3541_v29, %v3542_v25  ;;  %v3563_v30 = vmul.f32 %v3541_v29, %v3541_v29  ;;  %v3569_v32 = vcombine.low %v3561_v27, %v3562_v28  ;;  %v3552_v33 = vsel %vm3551_vm5, %v3547_v26, 0.0 }
 0x278   : > { %v3553_v34 = vsel %vm3551_vm5, %v3548_v21, 0.0  ;;  %v3570_v20 = vcombine.low %v3563_v30, %v3564_v31  ;;  %v3573_v36 = vsel %vm3551_vm5, %v3569_v32, 0.0 }
 0x279   : > { %v3554_v35 = vadd.f32 %v3553_v34, %v3552_v33 }
 0x27a   : > { %v3574_v37 = vsel %vm3551_vm5, %v3570_v20, 0.0 }
 0x27b   : > { %v3555_v38 = vrot.slane %v3554_v35, 4  ;;  %v3575_v39 = vadd.f32 %v3574_v37, %v3573_v36 }
 0x27d   : > { %v3556_v40 = vadd.f32 %v3555_v38, %v3554_v35  ;;  %v3576_v41 = vrot.slane %v3575_v39, 4 }
 0x27f   : > { %v3557_v42 = vrot.slane %v3556_v40, 2  ;;  %v3577_v43 = vadd.f32 %v3576_v41, %v3575_v39 }
 0x281   : > { %v3558_v44 = vadd.f32 %v3557_v42, %v3556_v40  ;;  %v3578_v45 = vrot.slane %v3577_v43, 2 }
 0x283   : > { %v3559_v16 = vrot.slane %v3558_v44, 1  ;;  %v3579_v46 = vadd.f32 %v3578_v45, %v3577_v43 }
 0x285   : > { %v3580_v47 = vrot.slane %v3579_v46, 1  ;;  %v3560_v14 = vadd.f32 %v3559_v16, %v3558_v44 }
 0x287   : > { %v3581_v48 = vadd.f32 %v3580_v47, %v3579_v46 }
 0x289   : > { %v3583_v49 = vsel %vm3582_vm6, %v3560_v14, %v3581_v48 }
 0x28a   : > { %3585 = vst.msk [vmem:[%s524_s24] sm:$0x3] %vm3584_vm7, %v3583_v49 }
 0x28b PF: > { %s21_s17 = sadd.s32 1, %s4442_s17  }
 0x28c   : > { %p18_p4 = scmp.ge.s32.totalorder %s21_s17, 4  }
 0x28e   :  { %20 = sbr.rel (!%p18_p4) target bundleno = 1 (0x1), region = 136 }

// kernel: svtr_patch_embed.5
= control target key start
LH: loop header
LB: loop body
LE: loop exit
PB: predicated region body
PF: predicated region fallthrough
CT: control target
= control target key end

     0   :  { %s5174_s0 = inlined_call_operand.vmem [shape: f32[2,9,5,4], index: 0, kind: input, shape index: {}]   ;;  %s5175_s1 = inlined_call_operand.vmem [shape: f32[2,9,5,4], index: 1, kind: input, shape index: {}]   ;;  %s5176_s2 = inlined_call_operand.vmem [shape: f32[2,9,5,4], index: 2, kind: input, shape index: {}]   ;;  %s5177_s3 = inlined_call_operand.vmem [shape: f32[2,9,5,4], index: 3, kind: input, shape index: {}]   ;;  %s5178_s4 = inlined_call_operand.vmem [shape: f32[2,9,5,4], index: 4, kind: input, shape index: {}]   ;;  %s5179_s5 = inlined_call_operand.vmem [shape: f32[2,9,5,4], index: 5, kind: input, shape index: {}]   ;;  %s5180_s6 = inlined_call_operand.vmem [shape: f32[2,9,5,4], index: 6, kind: input, shape index: {}]   ;;  %s5181_s7 = inlined_call_operand.vmem [shape: f32[2,9,5,4], index: 7, kind: input, shape index: {}]   ;;  %s5182_s8 = inlined_call_operand.vmem [shape: f32[9,4,16], index: 8, kind: input, shape index: {}]   ;;  %s5183_s9 = inlined_call_operand.vmem [shape: f32[2,16], index: 9, kind: input, shape index: {}]   ;;  %s5184_s10 = inlined_call_operand.vmem [shape: f32[9,16,32], index: 10, kind: input, shape index: {}]   ;;  %s5185_s11 = inlined_call_operand.vmem [shape: f32[2,32], index: 11, kind: input, shape index: {}]   ;;  %s5186_s12 = inlined_call_operand.hbm [shape: f32[2,16,32], index: 12, kind: output, shape index: {}]  }
   0x1   :  { %5187 = sst [smem:[#allocation6_spill]] %s5174_s0 }
   0x2   :  { %5188 = sst [smem:[#allocation7_spill]] %s5175_s1 }
   0x3   :  { %5189 = sst [smem:[#allocation8_spill]] %s5176_s2 }
   0x4   :  { %5190 = sst [smem:[#allocation9_spill]] %s5177_s3 }
   0x5   :  { %5191 = sst [smem:[#allocation10_spill]] %s5178_s4 }
   0x6   :  { %5192 = sst [smem:[#allocation11_spill]] %s5180_s6 }
   0x7   :  { %17 = vsyncpa [#allocation4], 0 }
   0x8   :  { %19 = vsyncpa [#allocation4 + $0x1], 0  ;;  %s4672_s21 = smov 0   ;;  %s4674_s22 = smov 0  }
   0x9   :  { %s4676_s23 = smov 0   ;;  %s4678_s24 = smov 0  }
   0xa LB: > { %s4693_s25 = sadd.s32 4294967295, %s4601_s24   ;;  %s3784_s26 = sadd.s32 4294967294, %s4601_s24   ;;  %s4601_s24 = sphi %s4678_s24, %s5204_s24   ;;  %s4597_s23 = sphi %s4676_s23, %s5203_s23   ;;  %s4593_s22 = sphi %s4674_s22, %s5202_s22   ;;  %s4589_s21 = sphi %s4672_s21, %s5201_s21  }
   0xb   : > { %s4697_s27 = sadd.s32 1, %s4601_s24   ;;  %s324_s28 = sadd.s32 1, %s4597_s23 }
   0xc   : > { %s321_s29 = ssub.s32 %s4601_s24, %s4697_s27  ;;  %p334_p0 = scmp.ne.s32.totalorder %s4597_s23, %s4593_s22 }
   0xd   : > { %p322_p1 = scmp.eq.s32.totalorder %s321_s29, 0  ;;  %p335_p2 = scmp.eq.s32.totalorder %s4693_s25, 1 }
   0xe   : > { %p340_p3 = scmp.ne.s32.totalorder %s4593_s22, %s4589_s21  ;;  %p341_p4 = scmp.eq.s32.totalorder %s3784_s26, 1 }
   0xf   : > { %s4708_s30 = scalar_select %p322_p1, %s4597_s23, %s324_s28  }
  0x10   : > { %p4710_p5 = por %p335_p2, %p334_p0  ;;  %p4714_p6 = por %p341_p4, %p340_p3 }
  0x11   : > { %p3787_p7 = scmp.ge.s32.totalorder %s4601_s24, 1  ;;  %p435_p8 = scmp.lt.s32.totalorder %s4601_s24, 3 }
  0x13   : > { %p436_p9 = pnand %p3787_p7, %p435_p8 }
  0x14   : > { %v3797_v0 = vld [vmem:[%s5182_s8 + $0x4] sm:$0xf] (!%p436_p9)  ;;  %vm592_vm0 = vcmask (!%p436_p9), 1043456   ;;  %p512_p10 = scmp.lt.s32.totalorder (!%p436_p9), %s4693_s25, 1  ;;  %v560_v1 = vld [vmem:[%s5182_s8] sm:$0xf] (!%p436_p9) }
  0x15   : > { %439 = sbr.rel (%p436_p9) target bundleno = 684 (0x2ac), region = 68  ;;  %4177 = vmatprep.subr.msk.mxu1 (!%p436_p9), %vm592_vm0, %v3797_v0  ;;  %4105 = vmatprep.subr.msk.mxu0 (!%p436_p9), %vm592_vm0, %v3797_v0  ;;  %s5195_s1 = sld [smem:[#allocation7_spill]] (!%p436_p9)  ;;  %vm583_vm1 = vcmask (!%p436_p9), 31744   ;;  %v3808_v5 = vld [vmem:[%s5182_s8 + $0x8] sm:$0xf] (!%p436_p9)  ;;  %vm2689_vm2 = vcmask (!%p436_p9), 257024  }
  0x16   : > { %4178 = vmatpush3.msk.msra.mxu1 (!%p436_p9), %vm592_vm0, %v3797_v0  ;;  %4106 = vmatpush3.msk.msra.mxu0 (!%p436_p9), %vm592_vm0, %v3797_v0  ;;  %s5196_s3 = sld [smem:[#allocation9_spill]] (!%p436_p9)  ;;  %s5197_s0 = sld [smem:[#allocation6_spill]] (!%p436_p9)  ;;  %v3814_v14 = vld [vmem:[%s5182_s8 + $0xc] sm:$0xf] (!%p436_p9)  ;;  %v3820_v23 = vld [vmem:[%s5182_s8 + $0x10] sm:$0xf] (!%p436_p9) }
  0x17   : > { %4185 = vmatprep.subr.msk.mxu1 (!%p436_p9), %vm592_vm0, %v560_v1  ;;  %4113 = vmatprep.subr.msk.mxu0 (!%p436_p9), %vm592_vm0, %v560_v1  ;;  %s5198_s2 = sld [smem:[#allocation8_spill]] (!%p436_p9)  ;;  %s5199_s4 = sld [smem:[#allocation10_spill]] (!%p436_p9)  ;;  %v3826_v31 = vld [vmem:[%s5182_s8 + $0x14] sm:$0xf] (!%p436_p9)  ;;  %v3840_v40 = vld [vmem:[%s5182_s8 + $0x18] sm:$0xf] (!%p436_p9) }
  0x18   : > { %s5200_s6 = sld [smem:[#allocation11_spill]] (!%p436_p9)  ;;  %v3854_v46 = vld [vmem:[%s5182_s8 + $0x1c] sm:$0xf] (!%p436_p9)  ;;  %v3868_v54 = vld [vmem:[%s5182_s8 + $0x20] sm:$0xf] (!%p436_p9)  ;;  %vm2698_vm3 = vcmask (!%p436_p9), 130048  }
  0x19   : > { %vm2788_vm4 = vcmask (!%p436_p9), 256000   ;;  %vm3621_vm5 = vcmask (!%p436_p9), 261120  }
  0x1c   : > { %s513_s19 = scalar_select %p512_p10, %s4693_s25, 1 }
  0x1e   : > { %s4734_s20 = smul.u32 72, %s513_s19 }
  0x20   : > { %s4740_s29 = scalar_lea.vmem %s5195_s1, %s4734_s20  ;;  %s4747_s17 = scalar_lea.vmem %s5196_s3, %s4734_s20 }
  0x21   : > { %v4455_v2 = vld [vmem:[%s4740_s29] ss:$8 sps:$4 sm:$0xff]   ;;  %v4457_v4 = vld [vmem:[%s4740_s29 + $0x10] ss:$8 sps:$4 sm:$0xff]   ;;  %s4763_s15 = scalar_lea.vmem %s5197_s0, %s4734_s20  ;;  %s4775_s19 = scalar_lea.vmem %s5198_s2, %s4734_s20 }
  0x22   : > { %v4456_v3 = vld [vmem:[%s4747_s17] ss:$8 sps:$4 sm:$0xff]   ;;  %4107 = vmatprep.mubr.msk.f32.mxu0 %vm583_vm1, %v4455_v2  ;;  %v4458_v6 = vld [vmem:[%s4747_s17 + $0x10] ss:$8 sps:$4 sm:$0xff]   ;;  %s4815_s26 = scalar_lea.vmem %s5199_s4, %s4734_s20  ;;  %s546_s1 = scalar_lea.vmem %s5200_s6, %s4734_s20 }
  0x23   : > { %4179 = vmatprep.mubr.msk.f32.mxu1 %vm583_vm1, %v4456_v3  ;;  %4108 = vmatmul.mubr.msk.f32.vlgmr.msra.gmra.mrb[0].mxu0 %vm583_vm1, %v4457_v4  ;;  %v4459_v7 = vld [vmem:[%s4740_s29 + $0x20] ss:$8 sps:$4 sm:$0xff]   ;;  %v4461_v9 = vld [vmem:[%s4740_s29 + $0x30] ss:$8 sps:$4 sm:$0xff]   ;;  %s541_s3 = scalar_lea.vmem %s5179_s5, %s4734_s20  ;;  %s551_s6 = scalar_lea.vmem %s5181_s7, %s4734_s20 }
  0x24   : > { %4180 = vmatmul.mubr.msk.f32.vlgmr.msra.gmra.mrb[0].mxu1 %vm583_vm1, %v4458_v6  ;;  %v4460_v8 = vld [vmem:[%s4747_s17 + $0x20] ss:$8 sps:$4 sm:$0xff]   ;;  %4114 = vmatpush3.msk.msra.mxu0 %vm592_vm0, %v560_v1  ;;  %v4462_v10 = vld [vmem:[%s4747_s17 + $0x30] ss:$8 sps:$4 sm:$0xff]   ;;  %s509_s4 = sand.u32 1, %s4593_s22   ;;  %s3978_s20 = sshll.u32 %s4693_s25, 8 }
  0x25   : > { %4186 = vmatpush3.msk.msra.mxu1 %vm592_vm0, %v560_v1  ;;  %4110 = vmatprep.mubr.msk.f32.mxu0 %vm583_vm1, %v4459_v7  ;;  %v4463_v11 = vld [vmem:[%s4763_s15] ss:$8 sps:$4 sm:$0xff]   ;;  %v4465_v13 = vld [vmem:[%s4763_s15 + $0x10] ss:$8 sps:$4 sm:$0xff]   ;;  %s5133_s25 = scalar_lea.sflag [#allocation4], %s509_s4 }
  0x26   : > { %4182 = vmatprep.mubr.msk.f32.mxu1 %vm583_vm1, %v4460_v8  ;;  %4193 = vmatprep.subr.msk.mxu1 %vm592_vm0, %v3808_v5  ;;  %v4464_v12 = vld [vmem:[%s4775_s19] ss:$8 sps:$4 sm:$0xff]   ;;  %v4466_v15 = vld [vmem:[%s4775_s19 + $0x10] ss:$8 sps:$4 sm:$0xff]  }
  0x27   : > { %4111 = vmatmul.mubr.msk.f32.gmra.mrb[2].mxu0 %vm583_vm1, %v4461_v9  ;;  %4121 = vmatprep.subr.msk.mxu0 %vm592_vm0, %v3808_v5  ;;  %v4467_v16 = vld [vmem:[%s4763_s15 + $0x20] ss:$8 sps:$4 sm:$0xff]   ;;  %v4469_v18 = vld [vmem:[%s4763_s15 + $0x30] ss:$8 sps:$4 sm:$0xff]  }
  0x28   : > { %4183 = vmatmul.mubr.msk.f32.gmra.mrb[2].mxu1 %vm583_vm1, %v4462_v10  ;;  %4115 = vmatprep.mubr.msk.f32.mxu0 %vm583_vm1, %v4463_v11  ;;  %v4468_v17 = vld [vmem:[%s4775_s19 + $0x20] ss:$8 sps:$4 sm:$0xff]   ;;  %v4470_v19 = vld [vmem:[%s4775_s19 + $0x30] ss:$8 sps:$4 sm:$0xff]  }
  0x29   : > { %4187 = vmatprep.mubr.msk.f32.mxu1 %vm583_vm1, %v4464_v12  ;;  %v4471_v20 = vld [vmem:[%s4763_s15 + $0x1] ss:$8 sps:$4 sm:$0xff]   ;;  %v4472_v21 = vld [vmem:[%s4763_s15 + $0x11] ss:$8 sps:$4 sm:$0xff]  }
  0x2a   : > { %v4473_v22 = vld [vmem:[%s4763_s15 + $0x21] ss:$8 sps:$4 sm:$0xff]   ;;  %v4474_v24 = vld [vmem:[%s4763_s15 + $0x31] ss:$8 sps:$4 sm:$0xff]  }
  0x2b   : > { %4116 = vmatmul.mubr.msk.f32.vlgmr.msra.gmra.mrb[0].mxu0 %vm583_vm1, %v4465_v13  ;;  %v4475_v25 = vld [vmem:[%s4815_s26] ss:$8 sps:$4 sm:$0xff]   ;;  %v4477_v27 = vld [vmem:[%s4815_s26 + $0x10] ss:$8 sps:$4 sm:$0xff]  }
  0x2c   : > { %4188 = vmatmul.mubr.msk.f32.vlgmr.msra.gmra.mrb[0].mxu1 %vm583_vm1, %v4466_v15  ;;  %4122 = vmatpush3.msk.msra.mxu0 %vm592_vm0, %v3808_v5  ;;  %v4476_v26 = vld [vmem:[%s546_s1] ss:$8 sps:$4 sm:$0xff]   ;;  %v4478_v28 = vld [vmem:[%s546_s1 + $0x10] ss:$8 sps:$4 sm:$0xff]  }
  0x2d   : > { %4194 = vmatpush3.msk.msra.mxu1 %vm592_vm0, %v3808_v5  ;;  %4118 = vmatprep.mubr.msk.f32.mxu0 %vm583_vm1, %v4467_v16  ;;  %v4479_v29 = vld [vmem:[%s4815_s26 + $0x20] ss:$8 sps:$4 sm:$0xff]   ;;  %v4481_v32 = vld [vmem:[%s4815_s26 + $0x30] ss:$8 sps:$4 sm:$0xff]  }
  0x2e   : > { %4190 = vmatprep.mubr.msk.f32.mxu1 %vm583_vm1, %v4468_v17  ;;  %4201 = vmatprep.subr.msk.mxu1 %vm592_vm0, %v3814_v14  ;;  %v4480_v30 = vld [vmem:[%s546_s1 + $0x20] ss:$8 sps:$4 sm:$0xff]   ;;  %v4482_v33 = vld [vmem:[%s546_s1 + $0x30] ss:$8 sps:$4 sm:$0xff]  }
  0x2f   : > { %4119 = vmatmul.mubr.msk.f32.gmra.mrb[2].mxu0 %vm583_vm1, %v4469_v18  ;;  %4129 = vmatprep.subr.msk.mxu0 %vm592_vm0, %v3814_v14  ;;  %v4483_v34 = vld [vmem:[%s541_s3] ss:$8 sps:$4 sm:$0xff]   ;;  %v4485_v36 = vld [vmem:[%s541_s3 + $0x10] ss:$8 sps:$4 sm:$0xff]   ;;  %v2609_v18 = vlaneseq }
  0x30   : > { %4191 = vmatmul.mubr.msk.f32.gmra.mrb[2].mxu1 %vm583_vm1, %v4470_v19  ;;  %4123 = vmatprep.mubr.msk.f32.mxu0 %vm583_vm1, %v4464_v12  ;;  %v4484_v35 = vld [vmem:[%s551_s6] ss:$8 sps:$4 sm:$0xff]   ;;  %v4486_v37 = vld [vmem:[%s551_s6 + $0x10] ss:$8 sps:$4 sm:$0xff]  }
  0x31   : > { %4195 = vmatprep.mubr.msk.f32.mxu1 %vm583_vm1, %v4471_v20  ;;  %v4487_v38 = vld [vmem:[%s541_s3 + $0x20] ss:$8 sps:$4 sm:$0xff]   ;;  %v4489_v41 = vld [vmem:[%s541_s3 + $0x30] ss:$8 sps:$4 sm:$0xff]   ;;  %s4604_s3 = smov [#allocation3]  }
  0x32   : > { %v4488_v39 = vld [vmem:[%s551_s6 + $0x20] ss:$8 sps:$4 sm:$0xff]   ;;  %v4490_v42 = vld [vmem:[%s551_s6 + $0x30] ss:$8 sps:$4 sm:$0xff]   ;;  %s3788_s6 = sshll.u32 %s509_s4, 4  ;;  %s4543_s16 = sshll.u32 %s4604_s3, 4  ;;  %s4544_s16 = int_to_ptr.vmem [resolvable:$false] %s4543_s16 }
  0x33   : > { %4124 = vmatmul.mubr.msk.f32.vlgmr.msra.gmra.mrb[0].mxu0 %vm583_vm1, %v4466_v15  ;;  %v4491_v43 = vld [vmem:[%s4815_s26 + $0x1] ss:$8 sps:$4 sm:$0xff]   ;;  %v4492_v44 = vld [vmem:[%s4815_s26 + $0x11] ss:$8 sps:$4 sm:$0xff]  }
  0x34   : > { %4196 = vmatmul.mubr.msk.f32.vlgmr.msra.gmra.mrb[0].mxu1 %vm583_vm1, %v4472_v21  ;;  %4126 = vmatprep.mubr.msk.f32.mxu0 %vm583_vm1, %v4468_v17  ;;  %v4493_v45 = vld [vmem:[%s4815_s26 + $0x21] ss:$8 sps:$4 sm:$0xff]   ;;  %v4494_v47 = vld [vmem:[%s4815_s26 + $0x31] ss:$8 sps:$4 sm:$0xff]   ;;  %v4603_v17 = vmov 0.0   ;;  %s511_s26 = scalar_lea.vmem [#allocation3], %s3788_s6 }
  0x35   : > { %4202 = vmatpush3.msk.msra.mxu1 %vm592_vm0, %v3814_v14  ;;  %4198 = vmatprep.mubr.msk.f32.mxu1 %vm583_vm1, %v4473_v22  ;;  %v4495_v48 = vld [vmem:[%s4763_s15 + $0x8] ss:$8 sps:$4 sm:$0xff]   ;;  %v4497_v50 = vld [vmem:[%s4763_s15 + $0x18] ss:$8 sps:$4 sm:$0xff]   ;;  %2693 = vst.msk [vmem:[#allocation2 + $0xc] sm:$0xf] %vm2689_vm2, %v4603_v17 }
  0x36   : > { %4130 = vmatpush3.msk.msra.mxu0 %vm592_vm0, %v3814_v14  ;;  %4209 = vmatprep.subr.msk.mxu1 %vm592_vm0, %v3820_v23  ;;  %v4496_v49 = vld [vmem:[%s4775_s19 + $0x8] ss:$8 sps:$4 sm:$0xff]   ;;  %v4498_v51 = vld [vmem:[%s4775_s19 + $0x18] ss:$8 sps:$4 sm:$0xff]   ;;  %2690 = vst.msk [vmem:[#allocation2] sm:$0xf] %vm2689_vm2, %v4603_v17 }
  0x37   : > { %4127 = vmatmul.mubr.msk.f32.gmra.mrb[2].mxu0 %vm583_vm1, %v4470_v19  ;;  %4137 = vmatprep.subr.msk.mxu0 %vm592_vm0, %v3820_v23  ;;  %v4499_v52 = vld [vmem:[%s4763_s15 + $0x28] ss:$8 sps:$4 sm:$0xff]   ;;  %v4501_v55 = vld [vmem:[%s4763_s15 + $0x38] ss:$8 sps:$4 sm:$0xff]   ;;  %2691 = vst.msk [vmem:[#allocation2 + $0x4] sm:$0xf] %vm2689_vm2, %v4603_v17 }
  0x38   : > { %4199 = vmatmul.mubr.msk.f32.gmra.mrb[2].mxu1 %vm583_vm1, %v4474_v24  ;;  %4131 = vmatprep.mubr.msk.f32.mxu0 %vm583_vm1, %v4475_v25  ;;  %v4500_v53 = vld [vmem:[%s4775_s19 + $0x28] ss:$8 sps:$4 sm:$0xff]   ;;  %v4502_v56 = vld [vmem:[%s4775_s19 + $0x38] ss:$8 sps:$4 sm:$0xff]   ;;  %2692 = vst.msk [vmem:[#allocation2 + $0x8] sm:$0xf] %vm2689_vm2, %v4603_v17  ;;  %s5129_s19 = scalar_lea.hbm %s5186_s12, %s3978_s20 }
  0x39   : > { %4203 = vmatprep.mubr.msk.f32.mxu1 %vm583_vm1, %v4476_v26  ;;  %v4503_v57 = vld [vmem:[%s4740_s29 + $0x8] ss:$8 sps:$4 sm:$0xff]   ;;  %v4505_v59 = vld [vmem:[%s4740_s29 + $0x18] ss:$8 sps:$4 sm:$0xff]   ;;  %v4983_v19 = vshrl.u32 %v2609_v18, 7  ;;  %s3638_s0 = sshll.u32 %s511_s26, 4  ;;  %s5131_s0 = int_to_ptr.vmem [resolvable:$true] %s3638_s0 }
  0x3a   : > { %v4504_v58 = vld [vmem:[%s4747_s17 + $0x8] ss:$8 sps:$4 sm:$0xff]   ;;  %v4506_v60 = vld [vmem:[%s4747_s17 + $0x18] ss:$8 sps:$4 sm:$0xff]   ;;  %s4539_s2 = scalar_lea.vmem %s5131_s0, 256  ;;  %p4546_p0 = scmp.lt.s32.totalorder %s5131_s0, %s4544_s16 }
  0x3b   : > { %4132 = vmatmul.mubr.msk.f32.vlgmr.msra.gmra.mrb[0].mxu0 %vm583_vm1, %v4477_v27  ;;  %v4507_v61 = vld [vmem:[%s4740_s29 + $0x28] ss:$8 sps:$4 sm:$0xff]   ;;  %v4509_v63 = vld [vmem:[%s4740_s29 + $0x38] ss:$8 sps:$4 sm:$0xff]   ;;  %v2611_v20 = vsub.s32 0, %v4983_v19  ;;  %v2619_v22 = vsub.s32 1, %v4983_v19  ;;  %p4540_p11 = scmp.ne.s32.totalorder %s5131_s0, %s4539_s2 }
  0x3c   : > { %4204 = vmatmul.mubr.msk.f32.vlgmr.msra.gmra.mrb[0].mxu1 %vm583_vm1, %v4478_v28  ;;  %4134 = vmatprep.mubr.msk.f32.mxu0 %vm583_vm1, %v4479_v29  ;;  %v4508_v62 = vld [vmem:[%s4747_s17 + $0x28] ss:$8 sps:$4 sm:$0xff]   ;;  %v4510_v0 = vld [vmem:[%s4747_s17 + $0x38] ss:$8 sps:$4 sm:$0xff]  }
  0x3d   : > { %4210 = vmatpush3.msk.msra.mxu1 %vm592_vm0, %v3820_v23  ;;  %4206 = vmatprep.mubr.msk.f32.mxu1 %vm583_vm1, %v4480_v30  ;;  %v4511_v1 = vld [vmem:[%s4763_s15 + $0x9] ss:$8 sps:$4 sm:$0xff]   ;;  %v4512_v2 = vld [vmem:[%s4763_s15 + $0x19] ss:$8 sps:$4 sm:$0xff]   ;;  %p4541_p12 = pnand %p4540_p11, %p4710_p5 }
  0x3e   : > { %4138 = vmatpush3.msk.msra.mxu0 %vm592_vm0, %v3820_v23  ;;  %4217 = vmatprep.subr.msk.mxu1 %vm592_vm0, %v3826_v31  ;;  %v4513_v3 = vld [vmem:[%s4763_s15 + $0x29] ss:$8 sps:$4 sm:$0xff]   ;;  %v4514_v4 = vld [vmem:[%s4763_s15 + $0x39] ss:$8 sps:$4 sm:$0xff]   ;;  %s4545_s15 = scalar_lea.vmem %s4544_s16, 512 }
  0x3f   : > { %4135 = vmatmul.mubr.msk.f32.gmra.mrb[2].mxu0 %vm583_vm1, %v4481_v32  ;;  %4145 = vmatprep.subr.msk.mxu0 %vm592_vm0, %v3826_v31  ;;  %v2694_v5 = vld [vmem:[%s5184_s10] sm:$0xff]  ;;  %v2695_v6 = vld [vmem:[%s5184_s10 + $0x8] sm:$0xff]  ;;  %v3939_v7 = vld [vmem:[%s5184_s10 + $0x10] sm:$0xff]  ;;  %p4542_p13 = pneg %p4541_p12  ;;  %p4547_p1 = scmp.lt.s32.totalorder %s4545_s15, %s4539_s2 }
  0x40   : > { %4207 = vmatmul.mubr.msk.f32.gmra.mrb[2].mxu1 %vm583_vm1, %v4482_v33  ;;  %4139 = vmatprep.mubr.msk.f32.mxu0 %vm583_vm1, %v4483_v34  ;;  %v4312_v8 = vpack.c.bf16 %v2695_v6, %v2694_v5  ;;  %v3940_v9 = vld [vmem:[%s5184_s10 + $0x18] sm:$0xff]  ;;  %v3945_v11 = vld [vmem:[%s5184_s10 + $0x20] sm:$0xff]  ;;  %v3946_v12 = vld [vmem:[%s5184_s10 + $0x28] sm:$0xff] }
  0x41   : > { %4211 = vmatprep.mubr.msk.f32.mxu1 %vm583_vm1, %v4484_v35  ;;  %v4316_v10 = vpack.c.bf16 %v3940_v9, %v3939_v7  ;;  %v3949_v13 = vld [vmem:[%s5184_s10 + $0x30] sm:$0xff]  ;;  %v4970_v14 = vpack.c.bf16 %v3946_v12, %v3945_v11  ;;  %v3950_v15 = vld [vmem:[%s5184_s10 + $0x38] sm:$0xff]  ;;  %v2608_v21 = vld [vmem:[%s5183_s9] sm:$0x3]  ;;  %p4548_p2 = por %p4547_p1, %p4546_p0 }
  0x42   : > { %v4975_v16 = vpack.c.bf16 %v3950_v15, %v3949_v13  ;;  %v2612_v23 = vrot.slane %v2608_v21, %v2611_v20  ;;  %v2620_v24 = vrot.slane %v2608_v21, %v2619_v22 }
  0x43   : > { %4140 = vmatmul.mubr.msk.f32.vlgmr.msra.gmra.mrb[0].mxu0 %vm583_vm1, %v4485_v36  ;;  %p4549_p3 = pnand %p4548_p2, %p4542_p13 }
  0x44   : > { %4212 = vmatmul.mubr.msk.f32.vlgmr.msra.gmra.mrb[0].mxu1 %vm583_vm1, %v4486_v37  ;;  %4142 = vmatprep.mubr.msk.f32.mxu0 %vm583_vm1, %v4487_v38 }
  0x45   : > { %4218 = vmatpush3.msk.msra.mxu1 %vm592_vm0, %v3826_v31  ;;  %4214 = vmatprep.mubr.msk.f32.mxu1 %vm583_vm1, %v4488_v39 }
  0x46   : > { %4146 = vmatpush3.msk.msra.mxu0 %vm592_vm0, %v3826_v31  ;;  %4225 = vmatprep.subr.msk.mxu1 %vm592_vm0, %v3840_v40 }
  0x47   : > { %4143 = vmatmul.mubr.msk.f32.gmra.mrb[2].mxu0 %vm583_vm1, %v4489_v41  ;;  %4153 = vmatprep.subr.msk.mxu0 %vm592_vm0, %v3840_v40 }
  0x48   : > { %4215 = vmatmul.mubr.msk.f32.gmra.mrb[2].mxu1 %vm583_vm1, %v4490_v42  ;;  %4147 = vmatprep.mubr.msk.f32.mxu0 %vm583_vm1, %v4476_v26 }
  0x49   : > { %4219 = vmatprep.mubr.msk.f32.mxu1 %vm583_vm1, %v4491_v43 }
  0x4b   : > { %4148 = vmatmul.mubr.msk.f32.vlgmr.msra.gmra.mrb[0].mxu0 %vm583_vm1, %v4478_v28 }
  0x4c   : > { %4220 = vmatmul.mubr.msk.f32.vlgmr.msra.gmra.mrb[0].mxu1 %vm583_vm1, %v4492_v44  ;;  %4150 = vmatprep.mubr.msk.f32.mxu0 %vm583_vm1, %v4480_v30 }
  0x4d   : > { %4226 = vmatpush3.msk.msra.mxu1 %vm592_vm0, %v3840_v40  ;;  %4222 = vmatprep.mubr.msk.f32.mxu1 %vm583_vm1, %v4493_v45 }
  0x4e   : > { %4154 = vmatpush3.msk.msra.mxu0 %vm592_vm0, %v3840_v40  ;;  %4233 = vmatprep.subr.msk.mxu1 %vm592_vm0, %v3854_v46 }
  0x4f   : > { %4151 = vmatmul.mubr.msk.f32.gmra.mrb[2].mxu0 %vm583_vm1, %v4482_v33  ;;  %4161 = vmatprep.subr.msk.mxu0 %vm592_vm0, %v3854_v46 }
  0x50   : > { %4223 = vmatmul.mubr.msk.f32.gmra.mrb[2].mxu1 %vm583_vm1, %v4494_v47  ;;  %4155 = vmatprep.mubr.msk.f32.mxu0 %vm583_vm1, %v4495_v48 }
  0x51   : > { %4227 = vmatprep.mubr.msk.f32.mxu1 %vm583_vm1, %v4496_v49 }
  0x53   : > { %4156 = vmatmul.mubr.msk.f32.vlgmr.msra.gmra.mrb[0].mxu0 %vm583_vm1, %v4497_v50 }
  0x54   : > { %4228 = vmatmul.mubr.msk.f32.vlgmr.msra.gmra.mrb[0].mxu1 %vm583_vm1, %v4498_v51  ;;  %4158 = vmatprep.mubr.msk.f32.mxu0 %vm583_vm1, %v4499_v52 }
  0x55   : > { %4234 = vmatpush3.msk.msra.mxu1 %vm592_vm0, %v3854_v46  ;;  %4230 = vmatprep.mubr.msk.f32.mxu1 %vm583_vm1, %v4500_v53 }
  0x56   : > { %4162 = vmatpush3.msk.msra.mxu0 %vm592_vm0, %v3854_v46  ;;  %4241 = vmatprep.subr.msk.mxu1 %vm592_vm0, %v3868_v54 }
  0x57   : > { %4159 = vmatmul.mubr.msk.f32.gmra.mrb[2].mxu0 %vm583_vm1, %v4501_v55  ;;  %4169 = vmatprep.subr.msk.mxu0 %vm592_vm0, %v3868_v54 }
  0x58   : > { %4231 = vmatmul.mubr.msk.f32.gmra.mrb[2].mxu1 %vm583_vm1, %v4502_v56  ;;  %4163 = vmatprep.mubr.msk.f32.mxu0 %vm583_vm1, %v4503_v57 }
  0x59   : > { %4235 = vmatprep.mubr.msk.f32.mxu1 %vm583_vm1, %v4504_v58 }
  0x5b   : > { %4164 = vmatmul.mubr.msk.f32.vlgmr.msra.gmra.mrb[0].mxu0 %vm583_vm1, %v4505_v59 }
  0x5c   : > { %4236 = vmatmul.mubr.msk.f32.vlgmr.msra.gmra.mrb[0].mxu1 %vm583_vm1, %v4506_v60  ;;  %4166 = vmatprep.mubr.msk.f32.mxu0 %vm583_vm1, %v4507_v61 }
  0x5d   : > { %4242 = vmatpush3.msk.msra.mxu1 %vm592_vm0, %v3868_v54  ;;  %4238 = vmatprep.mubr.msk.f32.mxu1 %vm583_vm1, %v4508_v62 }
  0x5e   : > { %4170 = vmatpush3.msk.msra.mxu0 %vm592_vm0, %v3868_v54  ;;  %4317 = vmatprep.subr.bf16.mxu1 %v4316_v10 }
  0x5f   : > { %4167 = vmatmul.mubr.msk.f32.gmra.mrb[2].mxu0 %vm583_vm1, %v4509_v63  ;;  %4313 = vmatprep.subr.bf16.mxu0 %v4312_v8 }
  0x60   : > { %4239 = vmatmul.mubr.msk.f32.gmra.mrb[2].mxu1 %vm583_vm1, %v4510_v0  ;;  %4171 = vmatprep.mubr.msk.f32.mxu0 %vm583_vm1, %v4496_v49 }
  0x61   : > { %4243 = vmatprep.mubr.msk.f32.mxu1 %vm583_vm1, %v4511_v1 }
  0x63   : > { %4172 = vmatmul.mubr.msk.f32.vlgmr.msra.gmra.mrb[0].mxu0 %vm583_vm1, %v4498_v51 }
  0x64   : > { %4244 = vmatmul.mubr.msk.f32.vlgmr.msra.gmra.mrb[0].mxu1 %vm583_vm1, %v4512_v2  ;;  %4174 = vmatprep.mubr.msk.f32.mxu0 %vm583_vm1, %v4500_v53 }
  0x65   : > { %4246 = vmatprep.mubr.msk.f32.mxu1 %vm583_vm1, %v4513_v3  ;;  %4315 = vmatpush3.bf16.msra.mxu0 %v4312_v8 }
  0x66   : > { %4319 = vmatpush3.bf16.msra.mxu1 %v4316_v10  ;;  %4321 = vmatprep.subr.bf16.mxu0 %v4970_v14 }
  0x67   : > { %4175 = vmatmul.mubr.msk.f32.gmra.mrb[2].mxu0 %vm583_vm1, %v4502_v56  ;;  %4325 = vmatprep.subr.bf16.mxu1 %v4975_v16 }
  0x68   : > { %4247 = vmatmul.mubr.msk.f32.gmra.mrb[2].mxu1 %vm583_vm1, %v4514_v4 }
 0x136   : > { %v4173_v25 = vpop.f32.mrb[0].mxu0 }
 0x137   : > { %v2614_v26 = vmul.f32 %v4173_v25, %v2612_v23  ;;  %v4245_v27 = vpop.f32.mrb[0].mxu1  ;;  %v1623_v28 = vpop.f32.mrb[1].mxu0 }
 0x138   : > { %v2646_v29 = vmul.f32 %v4245_v27, %v2612_v23  ;;  %v2613_v30 = vmul.f32 %v2612_v23, %v1623_v28  ;;  %v2585_v31 = vpop.f32.mrb[1].mxu1 }
 0x139   : > { %v2622_v32 = vadd.f32 %v2620_v24, %v2614_v26  ;;  %v2645_v33 = vmul.f32 %v2612_v23, %v2585_v31 }
 0x13a   : > { %v2650_v34 = vadd.f32 %v2646_v29, %v2620_v24  ;;  %v2621_v35 = vadd.f32 %v2620_v24, %v2613_v30  ;;  %v4176_v36 = vpop.f32.mrb[2].mxu0 }
 0x13b   : > { %v2630_v37 = vmul.f32 0.70710677, %v2622_v32  ;;  %v2649_v38 = vadd.f32 %v2645_v33, %v2620_v24  ;;  %v2616_v39 = vmul.f32 %v4176_v36, %v2612_v23  ;;  %v4248_v40 = vpop.f32.mrb[2].mxu1  ;;  %v1633_v41 = vpop.f32.mrb[3].mxu0  ;;  %v2626_v59 = vmul.f32 0.5, %v2622_v32  ;;  %v3953_v33 = vld [vmem:[%s5184_s10 + $0x40] sm:$0xff] }
 0x13c   : > { %v2658_v42 = vmul.f32 0.70710677, %v2650_v34  ;;  %v2629_v43 = vmul.f32 0.70710677, %v2621_v35  ;;  %v2595_v46 = vpop.f32.mrb[3].mxu1  ;;  %v2648_v47 = vmul.f32 %v4248_v40, %v2612_v23  ;;  %v2615_v48 = vmul.f32 %v2612_v23, %v1633_v41  ;;  %v3957_v36 = vld [vmem:[%s5184_s10 + $0x50] sm:$0xff] }
 0x13d   : > { %4515 = verf.f32 %v2630_v37  ;;  %v2657_v44 = vmul.f32 0.70710677, %v2649_v38  ;;  %v2624_v45 = vadd.f32 %v2620_v24, %v2616_v39  ;;  %v2647_v49 = vmul.f32 %v2612_v23, %v2595_v46  ;;  %v3958_v37 = vld [vmem:[%s5184_s10 + $0x58] sm:$0xff]  ;;  %v3965_v46 = vld [vmem:[%s5184_s10 + $0x70] sm:$0xff] }
 0x13e   : > { %4517 = verf.f32 %v2658_v42  ;;  %v2652_v51 = vadd.f32 %v2648_v47, %v2620_v24  ;;  %v2623_v52 = vadd.f32 %v2620_v24, %v2615_v48  ;;  %v2654_v62 = vmul.f32 0.5, %v2650_v34  ;;  %v3954_v34 = vld [vmem:[%s5184_s10 + $0x48] sm:$0xff]  ;;  %v3966_v47 = vld [vmem:[%s5184_s10 + $0x78] sm:$0xff] }
 0x13f   : > { %4519 = verf.f32 %v2629_v43  ;;  %v2632_v50 = vmul.f32 0.70710677, %v2624_v45  ;;  %v2651_v53 = vadd.f32 %v2647_v49, %v2620_v24  ;;  %v2625_v2 = vmul.f32 0.5, %v2621_v35  ;;  %v3969_v49 = vld [vmem:[%s5184_s10 + $0x80] sm:$0xff] }
 0x140   : > { %4521 = verf.f32 %v2657_v44  ;;  %v2660_v54 = vmul.f32 0.70710677, %v2652_v51  ;;  %v2631_v55 = vmul.f32 0.70710677, %v2623_v52  ;;  %v2653_v6 = vmul.f32 0.5, %v2649_v38  ;;  %v3961_v44 = vld [vmem:[%s5184_s10 + $0x60] sm:$0xff] }
 0x141   : > { %4523 = verf.f32 %v2632_v50  ;;  %v2659_v56 = vmul.f32 0.70710677, %v2651_v53  ;;  %v2628_v12 = vmul.f32 0.5, %v2624_v45  ;;  %v2656_v18 = vmul.f32 0.5, %v2652_v51  ;;  %v3962_v45 = vld [vmem:[%s5184_s10 + $0x68] sm:$0xff] }
 0x142   : > { %4525 = verf.f32 %v2660_v54  ;;  %v2627_v27 = vmul.f32 0.5, %v2623_v52  ;;  %v2655_v30 = vmul.f32 0.5, %v2651_v53  ;;  %v4328_v42 = vpack.c.bf16 %v3954_v34, %v3953_v33  ;;  %v3970_v50 = vld [vmem:[%s5184_s10 + $0x88] sm:$0xff]  ;;  %v2782_v53 = vld [vmem:[#allocation2 + $0x5] sm:$0x7] }
 0x143   : > { %4527 = verf.f32 %v2631_v55  ;;  %v4332_v43 = vpack.c.bf16 %v3958_v37, %v3957_v36  ;;  %v4336_v48 = vpack.c.bf16 %v3962_v45, %v3961_v44  ;;  %v2784_v51 = vld [vmem:[#allocation2 + $0xd] sm:$0x7] }
 0x144   : > { %4529 = verf.f32 %v2659_v56 }
 0x147   : > { %v4516_v57 = vpop.eup %4515 }
 0x148   : > { %v4518_v58 = vpop.eup %4517  ;;  %v2638_v60 = vadd.f32 1.0, %v4516_v57 }
 0x149   : > { %v4520_v61 = vpop.eup %4519  ;;  %v2666_v63 = vadd.f32 1.0, %v4518_v58  ;;  %v2783_v58 = vld [vmem:[#allocation2 + $0x9] sm:$0x7] }
 0x14a   : > { %v4522_v0 = vpop.eup %4521  ;;  %v2642_v1 = vmul.f32 %v2638_v60, %v2626_v59  ;;  %v2637_v3 = vadd.f32 1.0, %v4520_v61  ;;  %v3068_v61 = vld [vmem:[#allocation2 + $0x1] sm:$0x7] }
 0x14b   : > { %v4524_v4 = vpop.eup %4523  ;;  %v2670_v5 = vmul.f32 %v2666_v63, %v2654_v62  ;;  %v2665_v7 = vadd.f32 1.0, %v4522_v0 }
 0x14c   : > { %v2641_v8 = vmul.f32 %v2637_v3, %v2625_v2  ;;  %v2640_v9 = vadd.f32 1.0, %v4524_v4  ;;  %v4526_v11 = vpop.eup %4525 }
 0x14d   : > { %v2669_v10 = vmul.f32 %v2665_v7, %v2653_v6  ;;  %v4528_v17 = vpop.eup %4527  ;;  %v2668_v21 = vadd.f32 1.0, %v4526_v11 }
 0x14e   : > { %v3941_v13 = vcombine.high %v2641_v8, %v2642_v1  ;;  %v3083_v15 = vcombine.low %v2641_v8, %v2642_v1  ;;  %v4530_v25 = vpop.eup %4529  ;;  %v2644_v26 = vmul.f32 %v2640_v9, %v2628_v12  ;;  %v2639_v28 = vadd.f32 1.0, %v4528_v17 }
 0x14f   : > { %v3935_v23 = vcombine.high %v2669_v10, %v2670_v5  ;;  %v2981_v24 = vcombine.low %v2669_v10, %v2670_v5  ;;  %v2672_v29 = vmul.f32 %v2668_v21, %v2656_v18  ;;  %v2667_v31 = vadd.f32 1.0, %v4530_v25 }
 0x150   : > { %4260 = vmatprep.mubr.msk.f32.mxu1 %vm2698_vm3, %v3941_v13  ;;  %v2643_v32 = vmul.f32 %v2639_v28, %v2627_v27 }
 0x151   : > { %4253 = vmatprep.mubr.msk.f32.mxu0 %vm2698_vm3, %v3935_v23  ;;  %v2671_v35 = vmul.f32 %v2667_v31, %v2655_v30 }
 0x152   : > { %v3942_v38 = vcombine.high %v2643_v32, %v2644_v26  ;;  %v3084_v39 = vcombine.low %v2643_v32, %v2644_v26 }
 0x153   : > { %v3936_v40 = vcombine.high %v2671_v35, %v2672_v29  ;;  %v2982_v41 = vcombine.low %v2671_v35, %v2672_v29 }
 0x154   : > { %4261 = vmatmul.mubr.msk.f32.vlgmr.msra.gmra.mrb[4].mxu1 %vm2698_vm3, %v3942_v38 }
 0x155   : > { %4254 = vmatmul.mubr.msk.f32.vlgmr.msra.gmra.mrb[4].mxu0 %vm2698_vm3, %v3936_v40  ;;  %4327 = vmatpush3.bf16.msra.mxu1 %v4975_v16  ;;  %v4340_v16 = vpack.c.bf16 %v3966_v47, %v3965_v46 }
 0x156   : > { %4323 = vmatpush3.bf16.msra.mxu0 %v4970_v14  ;;  %4267 = vmatprep.mubr.msk.f32.mxu0 %vm2698_vm3, %v3935_v23  ;;  %v4344_v14 = vpack.c.bf16 %v3970_v50, %v3969_v49 }
 0x157   : > { %4274 = vmatprep.mubr.msk.f32.mxu1 %vm2698_vm3, %v2981_v24  ;;  %4329 = vmatprep.subr.bf16.mxu0 %v4328_v42 }
 0x158   : > { %4275 = vmatmul.mubr.msk.f32.vlgmr.msra.gmra.mrb[6].mxu1 %vm2698_vm3, %v2982_v41  ;;  %4333 = vmatprep.subr.bf16.mxu1 %v4332_v43 }
 0x159   : > { %4268 = vmatmul.mubr.msk.f32.vlgmr.msra.gmra.mrb[6].mxu0 %vm2698_vm3, %v3936_v40  ;;  %4335 = vmatpush3.bf16.msra.mxu1 %v4332_v43 }
 0x15a   : > { %4331 = vmatpush3.bf16.msra.mxu0 %v4328_v42  ;;  %4281 = vmatprep.mubr.msk.f32.mxu0 %vm2698_vm3, %v3083_v15 }
 0x15b   : > { %4288 = vmatprep.mubr.msk.f32.mxu1 %vm2698_vm3, %v2981_v24  ;;  %4337 = vmatprep.subr.bf16.mxu0 %v4336_v48 }
 0x15c   : > { %4289 = vmatmul.mubr.msk.f32.vlgmr.msra.gmra.mrb[8].mxu1 %vm2698_vm3, %v2982_v41  ;;  %4341 = vmatprep.subr.bf16.mxu1 %v4340_v16 }
 0x15d   : > { %4282 = vmatmul.mubr.msk.f32.vlgmr.msra.gmra.mrb[8].mxu0 %vm2698_vm3, %v3084_v39  ;;  %4343 = vmatpush3.bf16.msra.mxu1 %v4340_v16 }
 0x15e   : > { %4339 = vmatpush3.bf16.msra.mxu0 %v4336_v48  ;;  %4295 = vmatprep.mubr.msk.f32.mxu0 %vm2698_vm3, %v3935_v23 }
 0x15f   : > { %4302 = vmatprep.mubr.msk.f32.mxu1 %vm2698_vm3, %v3941_v13  ;;  %4345 = vmatprep.subr.bf16.mxu0 %v4344_v14 }
 0x160   : > { %4303 = vmatmul.mubr.msk.f32.vlgmr.msra.gmra.mrb[10].mxu1 %vm2698_vm3, %v3942_v38 }
 0x161   : > { %4296 = vmatmul.mubr.msk.f32.vlgmr.msra.gmra.mrb[10].mxu0 %vm2698_vm3, %v3936_v40 }
 0x162   : > { %4347 = vmatpush3.bf16.msra.mxu0 %v4344_v14  ;;  %4309 = vmatprep.mubr.msk.f32.mxu0 %vm2698_vm3, %v3935_v23 }
 0x165   : > { %4310 = vmatmul.mubr.msk.f32.vlgmr.msra.gmra.mrb[12].mxu0 %vm2698_vm3, %v3936_v40 }
 0x227   : > { %v4262_v52 = vpop.f32.mrb[4].mxu1 }
 0x228   : > { %v4255_v54 = vpop.f32.mrb[4].mxu0  ;;  %v2867_v55 = vpop.f32.mrb[5].mxu1 }
 0x229   : > { %v2787_v56 = vadd.f32 %v4255_v54, %v2784_v51  ;;  %v2769_v57 = vpop.f32.mrb[5].mxu0  ;;  %v2877_v12 = vcombine.high %v2867_v55, %v2867_v55 }
 0x22a   : > { %v2779_v59 = vcombine.high %v2769_v57, %v2769_v57  ;;  %v2785_v60 = vadd.f32 %v2782_v53, %v2769_v57 }
 0x22b   : > { %2791 = vst.msk [vmem:[#allocation2 + $0xd] sm:$0x7] %vm2788_vm4, %v2787_v56  ;;  %v4276_v62 = vpop.f32.mrb[6].mxu1 }
 0x22c   : > { %v2786_v63 = vadd.f32 %v2783_v58, %v2779_v59  ;;  %2789 = vst.msk [vmem:[#allocation2 + $0x5] sm:$0x7] %vm2788_vm4, %v2785_v60  ;;  %v4269_v0 = vpop.f32.mrb[6].mxu0  ;;  %v3053_v1 = vpop.f32.mrb[7].mxu1  ;;  %v3065_v37 = vcombine.high %v4276_v62, %v4276_v62 }
 0x22d   : > { %v2957_v2 = vpop.f32.mrb[7].mxu0  ;;  %v3072_v3 = vadd.f32 %v3068_v61, %v3053_v1  ;;  %v3064_v39 = vcombine.high %v3053_v1, %v3053_v1 }
 0x22e   : > { %2790 = vst.msk [vmem:[#allocation2 + $0x9] sm:$0x7] %vm2788_vm4, %v2786_v63  ;;  %v2967_v31 = vcombine.high %v2957_v2, %v2957_v2 }
 0x22f   : > { %3076 = vst.msk [vmem:[#allocation2 + $0x1] sm:$0x7] %vm2788_vm4, %v3072_v3  ;;  %v5048_v4 = vpop.f32.mrb[8].mxu1 }
 0x230   : > { %v4283_v5 = vpop.f32.mrb[8].mxu0  ;;  %v5050_v6 = vpop.f32.mrb[9].mxu1 }
 0x231   : > { %v3155_v7 = vpop.f32.mrb[9].mxu0  ;;  %v3167_v47 = vcombine.high %v4283_v5, %v4283_v5  ;;  %v3262_v57 = vcombine.high %v5050_v6, %v5050_v6 }
 0x232   : > { %v2881_v8 = vld [vmem:[#allocation2 + $0xc] sm:$0xf]  ;;  %v3166_v16 = vcombine.high %v3155_v7, %v3155_v7 }
 0x233   : > { %v2884_v9 = vadd.f32 %v4262_v52, %v2881_v8  ;;  %v2879_v10 = vld [vmem:[#allocation2 + $0x4] sm:$0xf]  ;;  %v5052_v11 = vpop.f32.mrb[10].mxu1 }
 0x234   : > { %v2882_v13 = vadd.f32 %v2879_v10, %v2867_v55  ;;  %v5054_v15 = vpop.f32.mrb[10].mxu0  ;;  %v5056_v17 = vpop.f32.mrb[11].mxu1  ;;  %v3263_v55 = vcombine.high %v5048_v4, %v5048_v4 }
 0x235   : > { %2887 = vst.msk [vmem:[#allocation2 + $0xc] sm:$0xf] %vm2689_vm2, %v2884_v9  ;;  %v2880_v18 = vld [vmem:[#allocation2 + $0x8] sm:$0xf]  ;;  %v5059_v21 = vpop.f32.mrb[11].mxu0  ;;  %v3359_v1 = vcombine.high %v5054_v15, %v5054_v15  ;;  %v3455_v9 = vcombine.high %v5052_v11, %v5052_v11 }
 0x236   : > { %v2883_v23 = vadd.f32 %v2880_v18, %v2877_v12  ;;  %2885 = vst.msk [vmem:[#allocation2 + $0x4] sm:$0xf] %vm2689_vm2, %v2882_v13  ;;  %v3170_v24 = vld [vmem:[#allocation2] sm:$0xf]  ;;  %v3358_v3 = vcombine.high %v5059_v21, %v5059_v21  ;;  %v3454_v12 = vcombine.high %v5056_v17, %v5056_v17 }
 0x237   : > { %v3174_v25 = vadd.f32 %v3170_v24, %v3155_v7 }
 0x238   : > { %2886 = vst.msk [vmem:[#allocation2 + $0x8] sm:$0xf] %vm2689_vm2, %v2883_v23  ;;  %v5063_v26 = vpop.f32.mrb[12].mxu0 }
 0x239   : > { %3178 = vst.msk [vmem:[#allocation2] sm:$0xf] %vm2689_vm2, %v3174_v25  ;;  %v5066_v27 = vpop.f32.mrb[13].mxu0 }
 0x23c   : > { %v2971_v28 = vld [vmem:[#allocation2 + $0xc] sm:$0xf] }
 0x23d   : > { %v2974_v29 = vadd.f32 %v4269_v0, %v2971_v28  ;;  %v2969_v30 = vld [vmem:[#allocation2 + $0x4] sm:$0xf]  ;;  %v3551_v28 = vcombine.high %v5063_v26, %v5063_v26 }
 0x23e   : > { %v2972_v32 = vadd.f32 %v2969_v30, %v2957_v2  ;;  %v3550_v30 = vcombine.high %v5066_v27, %v5066_v27 }
 0x23f   : > { %2977 = vst.msk [vmem:[#allocation2 + $0xc] sm:$0xf] %vm2689_vm2, %v2974_v29  ;;  %v2970_v33 = vld [vmem:[#allocation2 + $0x8] sm:$0xf] }
 0x240   : > { %v2973_v34 = vadd.f32 %v2970_v33, %v2967_v31  ;;  %2975 = vst.msk [vmem:[#allocation2 + $0x4] sm:$0xf] %vm2689_vm2, %v2972_v32  ;;  %v3266_v35 = vld [vmem:[#allocation2] sm:$0xf] }
 0x241   : > { %v3270_v36 = vadd.f32 %v3266_v35, %v5050_v6 }
 0x242   : > { %2976 = vst.msk [vmem:[#allocation2 + $0x8] sm:$0xf] %vm2689_vm2, %v2973_v34 }
 0x243   : > { %3274 = vst.msk [vmem:[#allocation2] sm:$0xf] %vm2689_vm2, %v3270_v36 }
 0x246   : > { %v3071_v38 = vld [vmem:[#allocation2 + $0xd] sm:$0x7] }
 0x247   : > { %v3075_v40 = vadd.f32 %v3071_v38, %v3065_v37  ;;  %v3069_v41 = vld [vmem:[#allocation2 + $0x5] sm:$0x7] }
 0x248   : > { %v3073_v42 = vadd.f32 %v3069_v41, %v3064_v39 }
 0x249   : > { %3079 = vst.msk [vmem:[#allocation2 + $0xd] sm:$0x7] %vm2788_vm4, %v3075_v40  ;;  %v3070_v43 = vld [vmem:[#allocation2 + $0x9] sm:$0x7] }
 0x24a   : > { %v3074_v44 = vadd.f32 %v4276_v62, %v3070_v43  ;;  %3077 = vst.msk [vmem:[#allocation2 + $0x5] sm:$0x7] %vm2788_vm4, %v3073_v42  ;;  %v3362_v45 = vld [vmem:[#allocation2 + $0x1] sm:$0x7] }
 0x24b   : > { %v3366_v46 = vadd.f32 %v3362_v45, %v5059_v21 }
 0x24c   : > { %3078 = vst.msk [vmem:[#allocation2 + $0x9] sm:$0x7] %vm2788_vm4, %v3074_v44 }
 0x24d   : > { %3370 = vst.msk [vmem:[#allocation2 + $0x1] sm:$0x7] %vm2788_vm4, %v3366_v46 }
 0x250   : > { %v3173_v48 = vld [vmem:[#allocation2 + $0xc] sm:$0xf] }
 0x251   : > { %v3177_v49 = vadd.f32 %v3173_v48, %v3167_v47  ;;  %v3171_v50 = vld [vmem:[#allocation2 + $0x4] sm:$0xf] }
 0x252   : > { %v3175_v14 = vadd.f32 %v3171_v50, %v3166_v16 }
 0x253   : > { %v3172_v51 = vld [vmem:[#allocation2 + $0x8] sm:$0xf]  ;;  %3181 = vst.msk [vmem:[#allocation2 + $0xc] sm:$0xf] %vm2689_vm2, %v3177_v49 }
 0x254   : > { %v3176_v52 = vadd.f32 %v4283_v5, %v3172_v51  ;;  %3179 = vst.msk [vmem:[#allocation2 + $0x4] sm:$0xf] %vm2689_vm2, %v3175_v14  ;;  %v3458_v53 = vld [vmem:[#allocation2] sm:$0xf] }
 0x255   : > { %v3462_v54 = vadd.f32 %v3458_v53, %v5056_v17 }
 0x256   : > { %3180 = vst.msk [vmem:[#allocation2 + $0x8] sm:$0xf] %vm2689_vm2, %v3176_v52 }
 0x257   : > { %3466 = vst.msk [vmem:[#allocation2] sm:$0xf] %vm2689_vm2, %v3462_v54 }
 0x25a   : > { %v3269_v56 = vld [vmem:[#allocation2 + $0xc] sm:$0xf] }
 0x25b   : > { %v3273_v58 = vadd.f32 %v3269_v56, %v3263_v55  ;;  %v3267_v59 = vld [vmem:[#allocation2 + $0x4] sm:$0xf] }
 0x25c   : > { %v3271_v60 = vadd.f32 %v3267_v59, %v3262_v57 }
 0x25d   : > { %v3268_v61 = vld [vmem:[#allocation2 + $0x8] sm:$0xf]  ;;  %3277 = vst.msk [vmem:[#allocation2 + $0xc] sm:$0xf] %vm2689_vm2, %v3273_v58 }
 0x25e   : > { %v3272_v62 = vadd.f32 %v5048_v4, %v3268_v61  ;;  %3275 = vst.msk [vmem:[#allocation2 + $0x4] sm:$0xf] %vm2689_vm2, %v3271_v60  ;;  %v3554_v63 = vld [vmem:[#allocation2] sm:$0xf] }
 0x25f   : > { %v3558_v0 = vadd.f32 %v3554_v63, %v5066_v27 }
 0x260   : > { %3276 = vst.msk [vmem:[#allocation2 + $0x8] sm:$0xf] %vm2689_vm2, %v3272_v62 }
 0x261   : > { %3562 = vst.msk [vmem:[#allocation2] sm:$0xf] %vm2689_vm2, %v3558_v0 }
 0x264   : > { %v3365_v2 = vld [vmem:[#allocation2 + $0xd] sm:$0x7] }
 0x265   : > { %v3369_v5 = vadd.f32 %v3365_v2, %v3359_v1  ;;  %v3363_v6 = vld [vmem:[#allocation2 + $0x5] sm:$0x7] }
 0x266   : > { %v3367_v7 = vadd.f32 %v3363_v6, %v3358_v3 }
 0x267   : > { %v3364_v4 = vld [vmem:[#allocation2 + $0x9] sm:$0x7]  ;;  %3373 = vst.msk [vmem:[#allocation2 + $0xd] sm:$0x7] %vm2788_vm4, %v3369_v5 }
 0x268   : > { %v3368_v8 = vadd.f32 %v5054_v15, %v3364_v4  ;;  %3371 = vst.msk [vmem:[#allocation2 + $0x5] sm:$0x7] %vm2788_vm4, %v3367_v7  ;;  %v3570_v15 = vld [vmem:[%s5185_s11] sm:$0x3] }
 0x269   : > { %v3574_v25 = vrot.slane %v3570_v15, %v2611_v20  ;;  %v3566_v17 = vld [vmem:[#allocation2] sm:$0xf]  ;;  %v3585_v33 = vrot.slane %v3570_v15, %v2619_v22 }
 0x26a   : > { %3372 = vst.msk [vmem:[#allocation2 + $0x9] sm:$0x7] %vm2788_vm4, %v3368_v8 }
 0x26b   : > { %v3578_v32 = vmul.f32 %v3574_v25, %v3566_v17  ;;  %v3576_v37 = vcombine.high %v3574_v25, %v3574_v25  ;;  %v3587_v38 = vcombine.high %v3585_v33, %v3585_v33 }
 0x26d   : > { %v3589_v36 = vadd.f32 %v3585_v33, %v3578_v32 }
 0x26e   : > { %v3461_v10 = vld [vmem:[#allocation2 + $0xc] sm:$0xf] }
 0x26f   : > { %v3465_v13 = vadd.f32 %v3461_v10, %v3455_v9  ;;  %v3459_v18 = vld [vmem:[#allocation2 + $0x4] sm:$0xf]  ;;  %v3597_v27 = vmul.f32 0.70710677, %v3589_v36  ;;  %v3593_v14 = vmul.f32 0.5, %v3589_v36 }
 0x270   : > { %v3463_v21 = vadd.f32 %v3459_v18, %v3454_v12 }
 0x271   : > { %v3460_v23 = vld [vmem:[#allocation2 + $0x8] sm:$0xf]  ;;  %3469 = vst.msk [vmem:[#allocation2 + $0xc] sm:$0xf] %vm2689_vm2, %v3465_v13  ;;  %4531 = verf.f32 %v3597_v27 }
 0x272   : > { %v3464_v24 = vadd.f32 %v5052_v11, %v3460_v23  ;;  %3467 = vst.msk [vmem:[#allocation2 + $0x4] sm:$0xf] %vm2689_vm2, %v3463_v21 }
 0x274   : > { %3468 = vst.msk [vmem:[#allocation2 + $0x8] sm:$0xf] %vm2689_vm2, %v3464_v24 }
 0x278   : > { %v3557_v29 = vld [vmem:[#allocation2 + $0xc] sm:$0xf] }
 0x279   : > { %v3561_v11 = vadd.f32 %v3557_v29, %v3551_v28  ;;  %v3555_v31 = vld [vmem:[#allocation2 + $0x4] sm:$0xf] }
 0x27a   : > { %v3559_v34 = vadd.f32 %v3555_v31, %v3550_v30 }
 0x27b   : > { %v3556_v35 = vld [vmem:[#allocation2 + $0x8] sm:$0xf]  ;;  %3565 = vst.msk [vmem:[#allocation2 + $0xc] sm:$0xf] %vm2689_vm2, %v3561_v11  ;;  %v4532_v48 = vpop.eup %4531 }
 0x27c   : > { %v3560_v20 = vadd.f32 %v5063_v26, %v3556_v35  ;;  %3563 = vst.msk [vmem:[#allocation2 + $0x4] sm:$0xf] %vm2689_vm2, %v3559_v34  ;;  %v3605_v16 = vadd.f32 1.0, %v4532_v48 }
 0x27e   : > { %3564 = vst.msk [vmem:[#allocation2 + $0x8] sm:$0xf] %vm2689_vm2, %v3560_v20  ;;  %v3609_v55 = vmul.f32 %v3605_v16, %v3593_v14 }
 0x282   : > { %v3569_v39 = vld [vmem:[#allocation2 + $0xc] sm:$0xf] }
 0x283   : > { %v3567_v40 = vld [vmem:[#allocation2 + $0x4] sm:$0xf]  ;;  %v3581_v41 = vmul.f32 %v3576_v37, %v3569_v39 }
 0x284   : > { %v3579_v19 = vmul.f32 %v3576_v37, %v3567_v40 }
 0x285   : > { %v3568_v22 = vld [vmem:[#allocation2 + $0x8] sm:$0xf]  ;;  %v3592_v42 = vadd.f32 %v3587_v38, %v3581_v41 }
 0x286   : > { %v3580_v43 = vmul.f32 %v3574_v25, %v3568_v22  ;;  %v3590_v44 = vadd.f32 %v3587_v38, %v3579_v19 }
 0x287   : > { %v3600_v45 = vmul.f32 0.70710677, %v3592_v42  ;;  %v3596_v57 = vmul.f32 0.5, %v3592_v42 }
 0x288   : > { %v3591_v26 = vadd.f32 %v3585_v33, %v3580_v43  ;;  %v3598_v46 = vmul.f32 0.70710677, %v3590_v44  ;;  %v3594_v51 = vmul.f32 0.5, %v3590_v44 }
 0x289   : > { %4533 = verf.f32 %v3600_v45 }
 0x28a   : > { %v3599_v47 = vmul.f32 0.70710677, %v3591_v26  ;;  %4535 = verf.f32 %v3598_v46  ;;  %v3595_v56 = vmul.f32 0.5, %v3591_v26 }
 0x28c   : > { %4537 = verf.f32 %v3599_v47 }
 0x293   : > { %v4534_v49 = vpop.eup %4533 }
 0x294   : > { %v4536_v50 = vpop.eup %4535  ;;  %v3608_v53 = vadd.f32 1.0, %v4534_v49 }
 0x295   : > { %v3606_v52 = vadd.f32 1.0, %v4536_v50 }
 0x296   : > { %v4538_v54 = vpop.eup %4537  ;;  %v3612_v61 = vmul.f32 %v3608_v53, %v3596_v57 }
 0x297   : > { %v3607_v58 = vadd.f32 1.0, %v4538_v54  ;;  %v3610_v59 = vmul.f32 %v3606_v52, %v3594_v51 }
 0x299   : > { %v3611_v60 = vmul.f32 %v3607_v58, %v3595_v56  ;;  %v3617_v62 = vcombine.low %v3609_v55, %v3610_v59 }
 0x29b   : > { %v3618_v63 = vcombine.low %v3611_v60, %v3612_v61  ;;  %3622 = vst.msk [vmem:[%s511_s26] sm:$0xff] %vm3621_vm5, %v3617_v62 }
 0x29d   : > { %3623 = vst.msk [vmem:[%s511_s26 + $0x8] sm:$0xff] %vm3621_vm5, %v3618_v63 }
 0x29e   : > { %4552 = shalt.err (!%p4549_p3)
}
 0x29f   : > { %s4553_s18 = scalar_lea.hbm %s5129_s19, 256  ;;  %s4557_s4 = scalar_lea.hbm %s5186_s12, 512 }
 0x2a0   : > { %p4554_p4 = scmp.ne.s32.totalorder %s5129_s19, %s4553_s18  ;;  %p4558_p9 = scmp.lt.u32.totalorder %s5129_s19, %s5186_s12 }
 0x2a1   : > { %p4559_p10 = scmp.lt.u32.totalorder %s4557_s4, %s4553_s18  ;;  %p4561_p12 = scmp.lt.u32.totalorder %s4553_s18, %s5129_s19 }
 0x2a2   : > { %p4555_p7 = pnand %p4554_p4, %p4710_p5 }
 0x2a3   : > { %p4560_p11 = por %p4559_p10, %p4558_p9 }
 0x2a4   : > { %p4556_p8 = pneg %p4555_p7 }
 0x2a5   : > { %p4562_p13 = por %p4561_p12, %p4560_p11 }
 0x2a7   : > { %p4563_p0 = pnand %p4562_p13, %p4556_p8 }
 0x2a9   : > { %4566 = shalt.err (!%p4563_p0)
}
 0x2aa   : > { %s4605_s26 = smov 128   ;;  %s4606_s29 = smov 8  }
 0x2ab   : > { %4413 = dma.vmem_to_hbm [thread:$0]  (%p4710_p5), %s5131_s0, 256, %s5129_s19, %s5133_s25, %s4605_s26, %s4605_s26, %s4606_s29  }
 0x2ac PF: > { %p4419_p1 = scmp.ge.s32.totalorder %s4601_s24, 2  ;;  %s3653_s17 = sand.u32 1, %s4589_s21  }
 0x2ad   : > { %s3654_s2 = scalar_lea.sflag [#allocation4], %s3653_s17 }
 0x2ae   : > { %p4416_p2 = pnand %p4419_p1, %p4714_p6 }
 0x2b0   : > { %4584 = dma.done.wait (!%p4416_p2), %s3654_s2, 256  }
 0x2b1   : > { %4586 = vsyncadd (!%p4416_p2), %s3654_s2, 4294967040  ;;  %p22_p3 = scmp.ge.s32.totalorder %s4697_s27, 4   ;;  %s5201_s21 = smov %s4593_s22 }
 0x2b2   : > { %s5202_s22 = smov %s4597_s23  ;;  %s5203_s23 = smov %s4708_s30 }
 0x2b3   : > { %s5204_s24 = smov %s4697_s27  ;;  %24 = sbr.rel (!%p22_p3) target bundleno = 10 (0xa), region = 145 }
 0x2ba   :  { %3659 = vsyncpa [#allocation4], 1 }
 0x2bb   :  { %3661 = vsyncpa [#allocation4 + $0x1], 1 }

</bundles_post_ra>
